<compile_context>
chip_gen: v7x
topology: tpu7x:2x2x1
jax: 0.10.0
libtpu: 0.0.40
codegen_flags: <defaults>
</compile_context>

<pallas_src>
import functools

import jax
import jax.numpy as jnp
import numpy as np
from jax import lax
from jax.experimental import pallas as pl
from jax.experimental.pallas import tpu as pltpu

BN_EPS = 1e-5
_INV_SQRT2 = np.float32(1.0 / np.sqrt(2.0))
_LANES = 128


def _round_up(x, m):
    return (x + m - 1) // m * m


def _gelu(y):
    # exact GELU (erf), matching torch.nn.GELU() default
    return 0.5 * y * (1.0 + lax.erf(y * _INV_SQRT2))


# ----------------------------- Pallas kernels ------------------------------ #

def _conv_stats_kernel(x0_ref, x1_ref, x2_ref, w_ref, conv_ref, stats_ref):
    """3x3 conv (no bias) as a single deep-K matmul + per-tile BN partial stats.

    x{dy}_ref : (tr, W+2, Cin)  rows shifted by dy-1 (zero padded), W zero-padded
    w_ref     : (9*Cin, Cp)     taps folded into the contraction dim
    conv_ref  : (tr, W, Cp)     raw conv output tile (pre-BN)
    stats_ref : (1, 2, Cp)      row 0: sum over tile, row 1: sum of squares
    """
    tr, wp, cin = x0_ref.shape
    ww = wp - 2
    cp = w_ref.shape[-1]

    taps = []
    for x_ref in (x0_ref, x1_ref, x2_ref):        # dy = 0, 1, 2
        x = x_ref[...]
        for dx in range(3):                       # static slices along padded W
            taps.append(x[:, dx:dx + ww, :])      # (tr, W, Cin)
    patches = jnp.concatenate(taps, axis=-1)      # (tr, W, 9*Cin), built in VMEM
    patches = patches.reshape(tr * ww, 9 * cin)

    # one MXU push with K = 9*Cin instead of 9 pushes with K = Cin
    acc = jnp.dot(patches, w_ref[...], preferred_element_type=jnp.float32)
    conv_ref[...] = acc.reshape(tr, ww, cp)

    s = jnp.sum(acc, axis=0, keepdims=True)          # (1, Cp)
    ss = jnp.sum(acc * acc, axis=0, keepdims=True)   # (1, Cp)
    stats_ref[...] = jnp.concatenate([s, ss], axis=0).reshape(1, 2, cp)


def _bn_gelu_kernel(conv_ref, scale_ref, shift_ref, o_ref):
    # y = (conv - mean) * rsqrt(var+eps) * gamma + beta, pre-folded into scale/shift
    y = conv_ref[...] * scale_ref[...] + shift_ref[...]
    o_ref[...] = _gelu(y).astype(o_ref.dtype)


def _bn_gelu_pool_kernel(conv_ref, scale_ref, shift_ref, o_ref):
    # same as above, with the 2x2 max-pool fused into the epilogue
    tr, ww, cp = conv_ref.shape
    y = conv_ref[...] * scale_ref[...] + shift_ref[...]
    y = _gelu(y)
    y = jnp.max(y.reshape(tr, ww // 2, 2, cp), axis=2)        # pool along W
    y = jnp.max(y.reshape(tr // 2, 2, ww // 2, cp), axis=1)   # pool along rows
    o_ref[...] = y.astype(o_ref.dtype)


# ------------------------------- JAX glue ---------------------------------- #

def _conv_bn_gelu_block(x_nhwc, w_mat, gamma_p, beta_p, *, block_rows, pool):
    """One conv3x3 + training-mode BN + GELU sub-layer (optionally fused 2x2 pool).

    Returns (N*H, W, Cp) f32, or (N*H//2, W//2, Cp) when pool=True.
    """
    n, h, w, cin = x_nhwc.shape
    cp = w_mat.shape[-1]
    r = n * h
    assert r % block_rows == 0 and block_rows % 2 == 0
    assert w % 2 == 0
    t = r // block_rows

    # 3 dy-shifted, W-zero-padded row views. The shift is applied per image BEFORE
    # flattening rows, so arbitrary row tiling below is halo-free and pool pairs
    # never cross image boundaries (H is even).
    # TODO(synk): replace with a single HBM-resident padded input + manual halo DMA
    # (memory_space=pl.ANY + make_async_copy) to remove the remaining 3x input reads.
    xp = jnp.pad(x_nhwc, ((0, 0), (1, 1), (1, 1), (0, 0)))      # (N, H+2, W+2, Cin)
    shifts = [xp[:, dy:dy + h].reshape(r, w + 2, cin) for dy in range(3)]

    cparams = pltpu.CompilerParams(
        dimension_semantics=("parallel",),          # megacore sharding on v7x
        vmem_limit_bytes=32 * 1024 * 1024,
    )

    # ---- pass 1: conv tiles + per-tile (sum, sum_sq) partials ----
    conv_out, stats = pl.pallas_call(
        _conv_stats_kernel,
        grid=(t,),
        in_specs=[pl.BlockSpec((block_rows, w + 2, cin), lambda i: (i, 0, 0))] * 3
        + [pl.BlockSpec((9 * cin, cp), lambda i: (0, 0))],
        out_specs=[
            pl.BlockSpec((block_rows, w, cp), lambda i: (i, 0, 0)),
            pl.BlockSpec((1, 2, cp), lambda i: (i, 0, 0)),
        ],
        out_shape=[
            jax.ShapeDtypeStruct((r, w, cp), jnp.float32),
            jax.ShapeDtypeStruct((t, 2, cp), jnp.float32),
        ],
        compiler_params=cparams,
    )(*shifts, w_mat)

    # ---- finalize batch statistics (tiny per-channel XLA ops) ----
    m = float(r * w)
    mean = jnp.sum(stats[:, 0, :], axis=0) / m
    var = jnp.maximum(jnp.sum(stats[:, 1, :], axis=0) / m - mean * mean, 0.0)
    inv = lax.rsqrt(var + BN_EPS)
    scale = (gamma_p * inv).reshape(1, cp)
    shift = (beta_p - mean * gamma_p * inv).reshape(1, cp)

    # ---- pass 2: normalize + GELU (+ fused 2x2 max-pool for the last block) ----
    if pool:
        kernel = _bn_gelu_pool_kernel
        out_shape = jax.ShapeDtypeStruct((r // 2, w // 2, cp), jnp.float32)
        out_spec = pl.BlockSpec((block_rows // 2, w // 2, cp), lambda i: (i, 0, 0))
    else:
        kernel = _bn_gelu_kernel
        out_shape = jax.ShapeDtypeStruct((r, w, cp), jnp.float32)
        out_spec = pl.BlockSpec((block_rows, w, cp), lambda i: (i, 0, 0))

    return pl.pallas_call(
        kernel,
        grid=(t,),
        in_specs=[
            pl.BlockSpec((block_rows, w, cp), lambda i: (i, 0, 0)),
            pl.BlockSpec((1, cp), lambda i: (0, 0)),
            pl.BlockSpec((1, cp), lambda i: (0, 0)),
        ],
        out_specs=out_spec,
        out_shape=out_shape,
        compiler_params=cparams,
    )(conv_out, scale, shift)


def _prep_conv_weight(w_pt, cp):
    """PyTorch (Cout, Cin, 3, 3) -> (9*Cin, Cp): taps folded into K, lane-padded."""
    cout, cin = w_pt.shape[0], w_pt.shape[1]
    w = jnp.transpose(w_pt, (2, 3, 1, 0)).reshape(9 * cin, cout)  # (dy, dx, ci) major
    return jnp.pad(w, ((0, 0), (0, cp - cout)))


def _prep_vec(v, cp):
    return jnp.pad(v, (0, cp - v.shape[0]))


def unet_down(x_nchw, params, *, block_rows=8):
    """UnetDown.forward: ResidualConvBlock(is_res=False) -> MaxPool2d(2). NCHW in/out.

    params use PyTorch layouts: w* (Cout, Cin, 3, 3); b*, g*, be* (Cout,). Conv biases
    b1/b2 are accepted but unused: a per-channel constant added before training-mode
    BatchNorm cancels exactly in (x - mean).
    """
    n, _, h, w = x_nchw.shape
    cout = params["g1"].shape[0]
    cp = _round_up(cout, _LANES)

    x = jnp.transpose(x_nchw, (0, 2, 3, 1)).astype(jnp.float32)   # -> NHWC

    w1 = _prep_conv_weight(params["w1"], cp)
    w2 = _prep_conv_weight(params["w2"], cp)
    g1, be1 = _prep_vec(params["g1"], cp), _prep_vec(params["be1"], cp)
    g2, be2 = _prep_vec(params["g2"], cp), _prep_vec(params["be2"], cp)

    h1 = _conv_bn_gelu_block(x, w1, g1, be1, block_rows=block_rows, pool=False)
    h1 = h1[..., :cout].reshape(n, h, w, cout)     # identity when Cout % 128 == 0

    y = _conv_bn_gelu_block(h1, w2, g2, be2, block_rows=block_rows, pool=True)
    y = y[..., :cout].reshape(n, h // 2, w // 2, cout)
    return jnp.transpose(y, (0, 3, 1, 2))          # -> NCHW


# --------------------------- pure-JAX reference ----------------------------- #

def _ref_forward(x_nchw, params):
    x = jnp.transpose(x_nchw, (0, 2, 3, 1))

    def block(x, w_pt, b, g, be):
        w_hwio = jnp.transpose(w_pt, (2, 3, 1, 0))   # (3,3,Cin,Cout)
        y = lax.conv_general_dilated(
            x, w_hwio, (1, 1), "SAME",
            dimension_numbers=("NHWC", "HWIO", "NHWC")) + b
        mean = jnp.mean(y, axis=(0, 1, 2), keepdims=True)
        var = jnp.mean((y - mean) ** 2, axis=(0, 1, 2), keepdims=True)
        y = (y - mean) * lax.rsqrt(var + BN_EPS) * g + be
        return _gelu(y)

    hh = block(x, params["w1"], params["b1"], params["g1"], params["be1"])
    hh = block(hh, params["w2"], params["b2"], params["g2"], params["be2"])
    n, hd, wd, c = hh.shape
    y = hh.reshape(n, hd // 2, 2, wd // 2, 2, c).max(axis=(2, 4))
    return jnp.transpose(y, (0, 3, 1, 2))


# ----------------------------------- main ----------------------------------- #

if __name__ == "__main__":
    N, Cin, Cout, H, W = 2, 4, 8, 16, 16
    ks = jax.random.split(jax.random.PRNGKey(0), 9)
    # weights in PyTorch Conv2d layout (Cout, Cin, 3, 3); biases present but cancel in BN
    params = dict(
        w1=0.2 * jax.random.normal(ks[0], (Cout, Cin, 3, 3), jnp.float32),
        b1=0.1 * jax.random.normal(ks[1], (Cout,), jnp.float32),
        g1=1.0 + 0.1 * jax.random.normal(ks[2], (Cout,), jnp.float32),
        be1=0.1 * jax.random.normal(ks[3], (Cout,), jnp.float32),
        w2=0.2 * jax.random.normal(ks[4], (Cout, Cout, 3, 3), jnp.float32),
        b2=0.1 * jax.random.normal(ks[5], (Cout,), jnp.float32),
        g2=1.0 + 0.1 * jax.random.normal(ks[6], (Cout,), jnp.float32),
        be2=0.1 * jax.random.normal(ks[7], (Cout,), jnp.float32),
    )
    x = jax.random.normal(ks[8], (N, Cin, H, W), jnp.float32)  # NCHW like PyTorch

    # block_rows=8 -> a 4-step, double-buffered grid at this toy size; tune larger
    # (hundreds of rows, i.e. 512-2048 M-rows per tile) at real UNet sizes.
    fn = jax.jit(functools.partial(unet_down, block_rows=8))
    out = jax.block_until_ready(fn(x, params))
    assert out.shape == (N, Cout, H // 2, W // 2)

    ref = _ref_forward(x, params)
    np.testing.assert_allclose(np.asarray(out), np.asarray(ref),
                               rtol=2e-3, atol=2e-3)
    print("KERNEL_OK")
</pallas_src>

<mosaic_0001>
module attributes {stable_mosaic.version = 11 : i64} {
  func.func @_conv_stats_kernel(%arg0: i32, %arg1: memref<8x18x4xf32, #tpu.memory_space<vmem>>, %arg2: memref<8x18x4xf32, #tpu.memory_space<vmem>>, %arg3: memref<8x18x4xf32, #tpu.memory_space<vmem>>, %arg4: memref<36x128xf32, #tpu.memory_space<vmem>>, %arg5: memref<8x16x128xf32, #tpu.memory_space<vmem>>, %arg6: memref<1x2x128xf32, #tpu.memory_space<vmem>>) attributes {dimension_semantics = [#tpu.dimension_semantics<parallel>], iteration_bounds = array<i64: 4>, scalar_prefetch = 0 : i64, scratch_operands = 0 : i64, tpu.core_type = #tpu.core_type<tc>, window_params = [{transform_indices = @transform_0, window_bounds = array<i64: 8, 18, 4>}, {transform_indices = @transform_1, window_bounds = array<i64: 8, 18, 4>}, {transform_indices = @transform_2, window_bounds = array<i64: 8, 18, 4>}, {pipeline_mode = #tpu.pipeline_mode<synchronous>, transform_indices = @transform_3, window_bounds = array<i64: 36, 128>}, {transform_indices = @transform_4, window_bounds = array<i64: 8, 16, 128>}, {transform_indices = @transform_5, window_bounds = array<i64: 1, 2, 128>}]} {
    %c0 = arith.constant 0 : index
    %c0_0 = arith.constant 0 : index
    %c0_1 = arith.constant 0 : index
    %0 = vector.load %arg1[%c0, %c0_0, %c0_1] : memref<8x18x4xf32, #tpu.memory_space<vmem>>, vector<8x18x4xf32>
    %1 = vector.extract_strided_slice %0 {offsets = [0, 0, 0], sizes = [8, 16, 4], strides = [1, 1, 1]} : vector<8x18x4xf32> to vector<8x16x4xf32>
    %2 = vector.extract_strided_slice %0 {offsets = [0, 1, 0], sizes = [8, 16, 4], strides = [1, 1, 1]} : vector<8x18x4xf32> to vector<8x16x4xf32>
    %3 = vector.extract_strided_slice %0 {offsets = [0, 2, 0], sizes = [8, 16, 4], strides = [1, 1, 1]} : vector<8x18x4xf32> to vector<8x16x4xf32>
    %c0_2 = arith.constant 0 : index
    %c0_3 = arith.constant 0 : index
    %c0_4 = arith.constant 0 : index
    %4 = vector.load %arg2[%c0_2, %c0_3, %c0_4] : memref<8x18x4xf32, #tpu.memory_space<vmem>>, vector<8x18x4xf32>
    %5 = vector.extract_strided_slice %4 {offsets = [0, 0, 0], sizes = [8, 16, 4], strides = [1, 1, 1]} : vector<8x18x4xf32> to vector<8x16x4xf32>
    %6 = vector.extract_strided_slice %4 {offsets = [0, 1, 0], sizes = [8, 16, 4], strides = [1, 1, 1]} : vector<8x18x4xf32> to vector<8x16x4xf32>
    %7 = vector.extract_strided_slice %4 {offsets = [0, 2, 0], sizes = [8, 16, 4], strides = [1, 1, 1]} : vector<8x18x4xf32> to vector<8x16x4xf32>
    %c0_5 = arith.constant 0 : index
    %c0_6 = arith.constant 0 : index
    %c0_7 = arith.constant 0 : index
    %8 = vector.load %arg3[%c0_5, %c0_6, %c0_7] : memref<8x18x4xf32, #tpu.memory_space<vmem>>, vector<8x18x4xf32>
    %9 = vector.extract_strided_slice %8 {offsets = [0, 0, 0], sizes = [8, 16, 4], strides = [1, 1, 1]} : vector<8x18x4xf32> to vector<8x16x4xf32>
    %10 = vector.extract_strided_slice %8 {offsets = [0, 1, 0], sizes = [8, 16, 4], strides = [1, 1, 1]} : vector<8x18x4xf32> to vector<8x16x4xf32>
    %11 = vector.extract_strided_slice %8 {offsets = [0, 2, 0], sizes = [8, 16, 4], strides = [1, 1, 1]} : vector<8x18x4xf32> to vector<8x16x4xf32>
    %12 = tpu.concatenate %1, %2, %3, %5, %6, %7, %9, %10, %11 in 2 : vector<8x16x4xf32>, vector<8x16x4xf32>, vector<8x16x4xf32>, vector<8x16x4xf32>, vector<8x16x4xf32>, vector<8x16x4xf32>, vector<8x16x4xf32>, vector<8x16x4xf32>, vector<8x16x4xf32> -> vector<8x16x36xf32>
    %13 = vector.shape_cast %12 : vector<8x16x36xf32> to vector<128x36xf32>
    %c0_8 = arith.constant 0 : index
    %c0_9 = arith.constant 0 : index
    %14 = vector.load %arg4[%c0_8, %c0_9] : memref<36x128xf32, #tpu.memory_space<vmem>>, vector<36x128xf32>
    %cst = arith.constant dense<0.000000e+00> : vector<128x128xf32>
    %15 = tpu.matmul %13, %14, %cst {dimension_numbers = #tpu.dot_dimension_numbers<[1], [0], [0], [1], [0, 0, 1, 1], [], []>} : vector<128x36xf32>, vector<36x128xf32>, vector<128x128xf32> -> vector<128x128xf32>
    %16 = vector.shape_cast %15 : vector<128x128xf32> to vector<8x16x128xf32>
    %c0_10 = arith.constant 0 : index
    %c0_11 = arith.constant 0 : index
    %c0_12 = arith.constant 0 : index
    %17 = vector.load %arg5[%c0_10, %c0_11, %c0_12] : memref<8x16x128xf32, #tpu.memory_space<vmem>>, vector<8x16x128xf32>
    tpu.vector_store %arg5[%c0_10, %c0_11, %c0_12], %16 {strides = array<i32>} : memref<8x16x128xf32, #tpu.memory_space<vmem>>, vector<8x16x128xf32>,
    %cst_13 = arith.constant dense<0.000000e+00> : vector<128xf32>
    %18 = vector.multi_reduction <add>, %15, %cst_13 [0] : vector<128x128xf32> to vector<128xf32>
    %19 = vector.shape_cast %18 : vector<128xf32> to vector<1x128xf32>
    %20 = arith.mulf %15, %15 : vector<128x128xf32>
    %cst_14 = arith.constant dense<0.000000e+00> : vector<128xf32>
    %21 = vector.multi_reduction <add>, %20, %cst_14 [0] : vector<128x128xf32> to vector<128xf32>
    %22 = vector.shape_cast %21 : vector<128xf32> to vector<1x128xf32>
    %23 = tpu.concatenate %19, %22 in 0 : vector<1x128xf32>, vector<1x128xf32> -> vector<2x128xf32>
    %24 = vector.shape_cast %23 : vector<2x128xf32> to vector<1x2x128xf32>
    %c0_15 = arith.constant 0 : index
    %c0_16 = arith.constant 0 : index
    %c0_17 = arith.constant 0 : index
    %25 = vector.load %arg6[%c0_15, %c0_16, %c0_17] : memref<1x2x128xf32, #tpu.memory_space<vmem>>, vector<1x2x128xf32>
    tpu.vector_store %arg6[%c0_15, %c0_16, %c0_17], %24 {strides = array<i32>} : memref<1x2x128xf32, #tpu.memory_space<vmem>>, vector<1x2x128xf32>,
    return
  }
  func.func @transform_0(%arg0: i32) -> (i32, i32, i32) {
    %c0_i32 = arith.constant 0 : i32
    %c0_i32_0 = arith.constant 0 : i32
    %c0_i32_1 = arith.constant 0 : i32
    return %arg0, %c0_i32, %c0_i32_0 : i32, i32, i32
  }
  func.func @transform_1(%arg0: i32) -> (i32, i32, i32) {
    %c0_i32 = arith.constant 0 : i32
    %c0_i32_0 = arith.constant 0 : i32
    %c0_i32_1 = arith.constant 0 : i32
    return %arg0, %c0_i32, %c0_i32_0 : i32, i32, i32
  }
  func.func @transform_2(%arg0: i32) -> (i32, i32, i32) {
    %c0_i32 = arith.constant 0 : i32
    %c0_i32_0 = arith.constant 0 : i32
    %c0_i32_1 = arith.constant 0 : i32
    return %arg0, %c0_i32, %c0_i32_0 : i32, i32, i32
  }
  func.func @transform_3(%arg0: i32) -> (i32, i32) {
    %c0_i32 = arith.constant 0 : i32
    %c0_i32_0 = arith.constant 0 : i32
    %c0_i32_1 = arith.constant 0 : i32
    return %c0_i32, %c0_i32_0 : i32, i32
  }
  func.func @transform_4(%arg0: i32) -> (i32, i32, i32) {
    %c0_i32 = arith.constant 0 : i32
    %c0_i32_0 = arith.constant 0 : i32
    %c0_i32_1 = arith.constant 0 : i32
    return %arg0, %c0_i32, %c0_i32_0 : i32, i32, i32
  }
  func.func @transform_5(%arg0: i32) -> (i32, i32, i32) {
    %c0_i32 = arith.constant 0 : i32
    %c0_i32_0 = arith.constant 0 : i32
    %c0_i32_1 = arith.constant 0 : i32
    return %arg0, %c0_i32, %c0_i32_0 : i32, i32, i32
  }
}

module attributes {stable_mosaic.version = 11 : i64} {
  func.func @_bn_gelu_kernel(%arg0: i32, %arg1: memref<8x16x128xf32, #tpu.memory_space<vmem>>, %arg2: memref<1x128xf32, #tpu.memory_space<vmem>>, %arg3: memref<1x128xf32, #tpu.memory_space<vmem>>, %arg4: memref<8x16x128xf32, #tpu.memory_space<vmem>>) attributes {dimension_semantics = [#tpu.dimension_semantics<parallel>], iteration_bounds = array<i64: 4>, scalar_prefetch = 0 : i64, scratch_operands = 0 : i64, tpu.core_type = #tpu.core_type<tc>, window_params = [{transform_indices = @transform_0, window_bounds = array<i64: 8, 16, 128>}, {pipeline_mode = #tpu.pipeline_mode<synchronous>, transform_indices = @transform_1, window_bounds = array<i64: 1, 128>}, {pipeline_mode = #tpu.pipeline_mode<synchronous>, transform_indices = @transform_2, window_bounds = array<i64: 1, 128>}, {transform_indices = @transform_3, window_bounds = array<i64: 8, 16, 128>}]} {
    %c0 = arith.constant 0 : index
    %c0_0 = arith.constant 0 : index
    %c0_1 = arith.constant 0 : index
    %0 = vector.load %arg1[%c0, %c0_0, %c0_1] : memref<8x16x128xf32, #tpu.memory_space<vmem>>, vector<8x16x128xf32>
    %c0_2 = arith.constant 0 : index
    %c0_3 = arith.constant 0 : index
    %1 = vector.load %arg2[%c0_2, %c0_3] : memref<1x128xf32, #tpu.memory_space<vmem>>, vector<1x128xf32>
    %2 = vector.shape_cast %1 : vector<1x128xf32> to vector<1x1x128xf32>
    %3 = vector.broadcast %2 : vector<1x1x128xf32> to vector<8x16x128xf32>
    %4 = arith.mulf %0, %3 : vector<8x16x128xf32>
    %c0_4 = arith.constant 0 : index
    %c0_5 = arith.constant 0 : index
    %5 = vector.load %arg3[%c0_4, %c0_5] : memref<1x128xf32, #tpu.memory_space<vmem>>, vector<1x128xf32>
    %6 = vector.shape_cast %5 : vector<1x128xf32> to vector<1x1x128xf32>
    %7 = vector.broadcast %6 : vector<1x1x128xf32> to vector<8x16x128xf32>
    %8 = arith.addf %4, %7 : vector<8x16x128xf32>
    %cst = arith.constant 5.000000e-01 : f32
    %9 = vector.broadcast %cst : f32 to vector<8x16x128xf32>
    %10 = arith.mulf %9, %8 : vector<8x16x128xf32>
    %cst_6 = arith.constant 0.707106769 : f32
    %11 = vector.broadcast %cst_6 : f32 to vector<8x16x128xf32>
    %12 = arith.mulf %8, %11 : vector<8x16x128xf32>
    %13 = math.erf %12 : vector<8x16x128xf32>
    %cst_7 = arith.constant 1.000000e+00 : f32
    %14 = vector.broadcast %cst_7 : f32 to vector<8x16x128xf32>
    %15 = arith.addf %14, %13 : vector<8x16x128xf32>
    %16 = arith.mulf %10, %15 : vector<8x16x128xf32>
    %c0_8 = arith.constant 0 : index
    %c0_9 = arith.constant 0 : index
    %c0_10 = arith.constant 0 : index
    %17 = vector.load %arg4[%c0_8, %c0_9, %c0_10] : memref<8x16x128xf32, #tpu.memory_space<vmem>>, vector<8x16x128xf32>
    tpu.vector_store %arg4[%c0_8, %c0_9, %c0_10], %16 {strides = array<i32>} : memref<8x16x128xf32, #tpu.memory_space<vmem>>, vector<8x16x128xf32>,
    return
  }
  func.func @transform_0(%arg0: i32) -> (i32, i32, i32) {
    %c0_i32 = arith.constant 0 : i32
    %c0_i32_0 = arith.constant 0 : i32
    %c0_i32_1 = arith.constant 0 : i32
    return %arg0, %c0_i32, %c0_i32_0 : i32, i32, i32
  }
  func.func @transform_1(%arg0: i32) -> (i32, i32) {
    %c0_i32 = arith.constant 0 : i32
    %c0_i32_0 = arith.constant 0 : i32
    %c0_i32_1 = arith.constant 0 : i32
    return %c0_i32, %c0_i32_0 : i32, i32
  }
  func.func @transform_2(%arg0: i32) -> (i32, i32) {
    %c0_i32 = arith.constant 0 : i32
    %c0_i32_0 = arith.constant 0 : i32
    %c0_i32_1 = arith.constant 0 : i32
    return %c0_i32, %c0_i32_0 : i32, i32
  }
  func.func @transform_3(%arg0: i32) -> (i32, i32, i32) {
    %c0_i32 = arith.constant 0 : i32
    %c0_i32_0 = arith.constant 0 : i32
    %c0_i32_1 = arith.constant 0 : i32
    return %arg0, %c0_i32, %c0_i32_0 : i32, i32, i32
  }
}

module attributes {stable_mosaic.version = 11 : i64} {
  func.func @_conv_stats_kernel(%arg0: i32, %arg1: memref<8x18x8xf32, #tpu.memory_space<vmem>>, %arg2: memref<8x18x8xf32, #tpu.memory_space<vmem>>, %arg3: memref<8x18x8xf32, #tpu.memory_space<vmem>>, %arg4: memref<72x128xf32, #tpu.memory_space<vmem>>, %arg5: memref<8x16x128xf32, #tpu.memory_space<vmem>>, %arg6: memref<1x2x128xf32, #tpu.memory_space<vmem>>) attributes {dimension_semantics = [#tpu.dimension_semantics<parallel>], iteration_bounds = array<i64: 4>, scalar_prefetch = 0 : i64, scratch_operands = 0 : i64, tpu.core_type = #tpu.core_type<tc>, window_params = [{transform_indices = @transform_0, window_bounds = array<i64: 8, 18, 8>}, {transform_indices = @transform_1, window_bounds = array<i64: 8, 18, 8>}, {transform_indices = @transform_2, window_bounds = array<i64: 8, 18, 8>}, {pipeline_mode = #tpu.pipeline_mode<synchronous>, transform_indices = @transform_3, window_bounds = array<i64: 72, 128>}, {transform_indices = @transform_4, window_bounds = array<i64: 8, 16, 128>}, {transform_indices = @transform_5, window_bounds = array<i64: 1, 2, 128>}]} {
    %c0 = arith.constant 0 : index
    %c0_0 = arith.constant 0 : index
    %c0_1 = arith.constant 0 : index
    %0 = vector.load %arg1[%c0, %c0_0, %c0_1] : memref<8x18x8xf32, #tpu.memory_space<vmem>>, vector<8x18x8xf32>
    %1 = vector.extract_strided_slice %0 {offsets = [0, 0, 0], sizes = [8, 16, 8], strides = [1, 1, 1]} : vector<8x18x8xf32> to vector<8x16x8xf32>
    %2 = vector.extract_strided_slice %0 {offsets = [0, 1, 0], sizes = [8, 16, 8], strides = [1, 1, 1]} : vector<8x18x8xf32> to vector<8x16x8xf32>
    %3 = vector.extract_strided_slice %0 {offsets = [0, 2, 0], sizes = [8, 16, 8], strides = [1, 1, 1]} : vector<8x18x8xf32> to vector<8x16x8xf32>
    %c0_2 = arith.constant 0 : index
    %c0_3 = arith.constant 0 : index
    %c0_4 = arith.constant 0 : index
    %4 = vector.load %arg2[%c0_2, %c0_3, %c0_4] : memref<8x18x8xf32, #tpu.memory_space<vmem>>, vector<8x18x8xf32>
    %5 = vector.extract_strided_slice %4 {offsets = [0, 0, 0], sizes = [8, 16, 8], strides = [1, 1, 1]} : vector<8x18x8xf32> to vector<8x16x8xf32>
    %6 = vector.extract_strided_slice %4 {offsets = [0, 1, 0], sizes = [8, 16, 8], strides = [1, 1, 1]} : vector<8x18x8xf32> to vector<8x16x8xf32>
    %7 = vector.extract_strided_slice %4 {offsets = [0, 2, 0], sizes = [8, 16, 8], strides = [1, 1, 1]} : vector<8x18x8xf32> to vector<8x16x8xf32>
    %c0_5 = arith.constant 0 : index
    %c0_6 = arith.constant 0 : index
    %c0_7 = arith.constant 0 : index
    %8 = vector.load %arg3[%c0_5, %c0_6, %c0_7] : memref<8x18x8xf32, #tpu.memory_space<vmem>>, vector<8x18x8xf32>
    %9 = vector.extract_strided_slice %8 {offsets = [0, 0, 0], sizes = [8, 16, 8], strides = [1, 1, 1]} : vector<8x18x8xf32> to vector<8x16x8xf32>
    %10 = vector.extract_strided_slice %8 {offsets = [0, 1, 0], sizes = [8, 16, 8], strides = [1, 1, 1]} : vector<8x18x8xf32> to vector<8x16x8xf32>
    %11 = vector.extract_strided_slice %8 {offsets = [0, 2, 0], sizes = [8, 16, 8], strides = [1, 1, 1]} : vector<8x18x8xf32> to vector<8x16x8xf32>
    %12 = tpu.concatenate %1, %2, %3, %5, %6, %7, %9, %10, %11 in 2 : vector<8x16x8xf32>, vector<8x16x8xf32>, vector<8x16x8xf32>, vector<8x16x8xf32>, vector<8x16x8xf32>, vector<8x16x8xf32>, vector<8x16x8xf32>, vector<8x16x8xf32>, vector<8x16x8xf32> -> vector<8x16x72xf32>
    %13 = vector.shape_cast %12 : vector<8x16x72xf32> to vector<128x72xf32>
    %c0_8 = arith.constant 0 : index
    %c0_9 = arith.constant 0 : index
    %14 = vector.load %arg4[%c0_8, %c0_9] : memref<72x128xf32, #tpu.memory_space<vmem>>, vector<72x128xf32>
    %cst = arith.constant dense<0.000000e+00> : vector<128x128xf32>
    %15 = tpu.matmul %13, %14, %cst {dimension_numbers = #tpu.dot_dimension_numbers<[1], [0], [0], [1], [0, 0, 1, 1], [], []>} : vector<128x72xf32>, vector<72x128xf32>, vector<128x128xf32> -> vector<128x128xf32>
    %16 = vector.shape_cast %15 : vector<128x128xf32> to vector<8x16x128xf32>
    %c0_10 = arith.constant 0 : index
    %c0_11 = arith.constant 0 : index
    %c0_12 = arith.constant 0 : index
    %17 = vector.load %arg5[%c0_10, %c0_11, %c0_12] : memref<8x16x128xf32, #tpu.memory_space<vmem>>, vector<8x16x128xf32>
    tpu.vector_store %arg5[%c0_10, %c0_11, %c0_12], %16 {strides = array<i32>} : memref<8x16x128xf32, #tpu.memory_space<vmem>>, vector<8x16x128xf32>,
    %cst_13 = arith.constant dense<0.000000e+00> : vector<128xf32>
    %18 = vector.multi_reduction <add>, %15, %cst_13 [0] : vector<128x128xf32> to vector<128xf32>
    %19 = vector.shape_cast %18 : vector<128xf32> to vector<1x128xf32>
    %20 = arith.mulf %15, %15 : vector<128x128xf32>
    %cst_14 = arith.constant dense<0.000000e+00> : vector<128xf32>
    %21 = vector.multi_reduction <add>, %20, %cst_14 [0] : vector<128x128xf32> to vector<128xf32>
    %22 = vector.shape_cast %21 : vector<128xf32> to vector<1x128xf32>
    %23 = tpu.concatenate %19, %22 in 0 : vector<1x128xf32>, vector<1x128xf32> -> vector<2x128xf32>
    %24 = vector.shape_cast %23 : vector<2x128xf32> to vector<1x2x128xf32>
    %c0_15 = arith.constant 0 : index
    %c0_16 = arith.constant 0 : index
    %c0_17 = arith.constant 0 : index
    %25 = vector.load %arg6[%c0_15, %c0_16, %c0_17] : memref<1x2x128xf32, #tpu.memory_space<vmem>>, vector<1x2x128xf32>
    tpu.vector_store %arg6[%c0_15, %c0_16, %c0_17], %24 {strides = array<i32>} : memref<1x2x128xf32, #tpu.memory_space<vmem>>, vector<1x2x128xf32>,
    return
  }
  func.func @transform_0(%arg0: i32) -> (i32, i32, i32) {
    %c0_i32 = arith.constant 0 : i32
    %c0_i32_0 = arith.constant 0 : i32
    %c0_i32_1 = arith.constant 0 : i32
    return %arg0, %c0_i32, %c0_i32_0 : i32, i32, i32
  }
  func.func @transform_1(%arg0: i32) -> (i32, i32, i32) {
    %c0_i32 = arith.constant 0 : i32
    %c0_i32_0 = arith.constant 0 : i32
    %c0_i32_1 = arith.constant 0 : i32
    return %arg0, %c0_i32, %c0_i32_0 : i32, i32, i32
  }
  func.func @transform_2(%arg0: i32) -> (i32, i32, i32) {
    %c0_i32 = arith.constant 0 : i32
    %c0_i32_0 = arith.constant 0 : i32
    %c0_i32_1 = arith.constant 0 : i32
    return %arg0, %c0_i32, %c0_i32_0 : i32, i32, i32
  }
  func.func @transform_3(%arg0: i32) -> (i32, i32) {
    %c0_i32 = arith.constant 0 : i32
    %c0_i32_0 = arith.constant 0 : i32
    %c0_i32_1 = arith.constant 0 : i32
    return %c0_i32, %c0_i32_0 : i32, i32
  }
  func.func @transform_4(%arg0: i32) -> (i32, i32, i32) {
    %c0_i32 = arith.constant 0 : i32
    %c0_i32_0 = arith.constant 0 : i32
    %c0_i32_1 = arith.constant 0 : i32
    return %arg0, %c0_i32, %c0_i32_0 : i32, i32, i32
  }
  func.func @transform_5(%arg0: i32) -> (i32, i32, i32) {
    %c0_i32 = arith.constant 0 : i32
    %c0_i32_0 = arith.constant 0 : i32
    %c0_i32_1 = arith.constant 0 : i32
    return %arg0, %c0_i32, %c0_i32_0 : i32, i32, i32
  }
}

module attributes {stable_mosaic.version = 11 : i64} {
  func.func @_bn_gelu_pool_kernel(%arg0: i32, %arg1: memref<8x16x128xf32, #tpu.memory_space<vmem>>, %arg2: memref<1x128xf32, #tpu.memory_space<vmem>>, %arg3: memref<1x128xf32, #tpu.memory_space<vmem>>, %arg4: memref<4x8x128xf32, #tpu.memory_space<vmem>>) attributes {dimension_semantics = [#tpu.dimension_semantics<parallel>], iteration_bounds = array<i64: 4>, scalar_prefetch = 0 : i64, scratch_operands = 0 : i64, tpu.core_type = #tpu.core_type<tc>, window_params = [{transform_indices = @transform_0, window_bounds = array<i64: 8, 16, 128>}, {pipeline_mode = #tpu.pipeline_mode<synchronous>, transform_indices = @transform_1, window_bounds = array<i64: 1, 128>}, {pipeline_mode = #tpu.pipeline_mode<synchronous>, transform_indices = @transform_2, window_bounds = array<i64: 1, 128>}, {transform_indices = @transform_3, window_bounds = array<i64: 4, 8, 128>}]} {
    %c0 = arith.constant 0 : index
    %c0_0 = arith.constant 0 : index
    %c0_1 = arith.constant 0 : index
    %0 = vector.load %arg1[%c0, %c0_0, %c0_1] : memref<8x16x128xf32, #tpu.memory_space<vmem>>, vector<8x16x128xf32>
    %c0_2 = arith.constant 0 : index
    %c0_3 = arith.constant 0 : index
    %1 = vector.load %arg2[%c0_2, %c0_3] : memref<1x128xf32, #tpu.memory_space<vmem>>, vector<1x128xf32>
    %2 = vector.shape_cast %1 : vector<1x128xf32> to vector<1x1x128xf32>
    %3 = vector.broadcast %2 : vector<1x1x128xf32> to vector<8x16x128xf32>
    %4 = arith.mulf %0, %3 : vector<8x16x128xf32>
    %c0_4 = arith.constant 0 : index
    %c0_5 = arith.constant 0 : index
    %5 = vector.load %arg3[%c0_4, %c0_5] : memref<1x128xf32, #tpu.memory_space<vmem>>, vector<1x128xf32>
    %6 = vector.shape_cast %5 : vector<1x128xf32> to vector<1x1x128xf32>
    %7 = vector.broadcast %6 : vector<1x1x128xf32> to vector<8x16x128xf32>
    %8 = arith.addf %4, %7 : vector<8x16x128xf32>
    %cst = arith.constant 5.000000e-01 : f32
    %9 = vector.broadcast %cst : f32 to vector<8x16x128xf32>
    %10 = arith.mulf %9, %8 : vector<8x16x128xf32>
    %cst_6 = arith.constant 0.707106769 : f32
    %11 = vector.broadcast %cst_6 : f32 to vector<8x16x128xf32>
    %12 = arith.mulf %8, %11 : vector<8x16x128xf32>
    %13 = math.erf %12 : vector<8x16x128xf32>
    %cst_7 = arith.constant 1.000000e+00 : f32
    %14 = vector.broadcast %cst_7 : f32 to vector<8x16x128xf32>
    %15 = arith.addf %14, %13 : vector<8x16x128xf32>
    %16 = arith.mulf %10, %15 : vector<8x16x128xf32>
    %17 = vector.shape_cast %16 : vector<8x16x128xf32> to vector<8x8x2x128xf32>
    %cst_8 = arith.constant dense<0xFF800000> : vector<8x8x128xf32>
    %18 = vector.multi_reduction <maximumf>, %17, %cst_8 [2] : vector<8x8x2x128xf32> to vector<8x8x128xf32>
    %19 = vector.shape_cast %18 : vector<8x8x128xf32> to vector<4x2x8x128xf32>
    %cst_9 = arith.constant dense<0xFF800000> : vector<4x8x128xf32>
    %20 = vector.multi_reduction <maximumf>, %19, %cst_9 [1] : vector<4x2x8x128xf32> to vector<4x8x128xf32>
    %c0_10 = arith.constant 0 : index
    %c0_11 = arith.constant 0 : index
    %c0_12 = arith.constant 0 : index
    %21 = vector.load %arg4[%c0_10, %c0_11, %c0_12] : memref<4x8x128xf32, #tpu.memory_space<vmem>>, vector<4x8x128xf32>
    tpu.vector_store %arg4[%c0_10, %c0_11, %c0_12], %20 {strides = array<i32>} : memref<4x8x128xf32, #tpu.memory_space<vmem>>, vector<4x8x128xf32>,
    return
  }
  func.func @transform_0(%arg0: i32) -> (i32, i32, i32) {
    %c0_i32 = arith.constant 0 : i32
    %c0_i32_0 = arith.constant 0 : i32
    %c0_i32_1 = arith.constant 0 : i32
    return %arg0, %c0_i32, %c0_i32_0 : i32, i32, i32
  }
  func.func @transform_1(%arg0: i32) -> (i32, i32) {
    %c0_i32 = arith.constant 0 : i32
    %c0_i32_0 = arith.constant 0 : i32
    %c0_i32_1 = arith.constant 0 : i32
    return %c0_i32, %c0_i32_0 : i32, i32
  }
  func.func @transform_2(%arg0: i32) -> (i32, i32) {
    %c0_i32 = arith.constant 0 : i32
    %c0_i32_0 = arith.constant 0 : i32
    %c0_i32_1 = arith.constant 0 : i32
    return %c0_i32, %c0_i32_0 : i32, i32
  }
  func.func @transform_3(%arg0: i32) -> (i32, i32, i32) {
    %c0_i32 = arith.constant 0 : i32
    %c0_i32_0 = arith.constant 0 : i32
    %c0_i32_1 = arith.constant 0 : i32
    return %arg0, %c0_i32, %c0_i32_0 : i32, i32, i32
  }
}

</mosaic_0001>

<bundles_post_ra>
// kernel: unet_down.5
= control target key start
LH: loop header
LB: loop body
LE: loop exit
PB: predicated region body
PF: predicated region fallthrough
CT: control target
= control target key end

     0   :  { %s480_s12 = smov 0   ;;  %s622_s0 = inlined_call_operand.vmem [shape: f32[32,16,128], index: 0, kind: input, shape index: {}]   ;;  %s623_s1 = inlined_call_operand.vmem [shape: f32[1,128], index: 1, kind: input, shape index: {}]   ;;  %s624_s2 = inlined_call_operand.vmem [shape: f32[1,128], index: 2, kind: input, shape index: {}]   ;;  %s625_s3 = inlined_call_operand.vmem [shape: f32[32,16,128], index: 3, kind: output, shape index: {}]  }
   0x1 LB: > { %s395_s13 = sadd.s32 4294967295, %s458_s12   ;;  %p399_p0 = scmp.ge.s32.totalorder %s458_s12, 1  ;;  %s458_s12 = sphi %s480_s12, %s13_s12  }
   0x2   : > { %p139_p1 = scmp.lt.s32.totalorder %s458_s12, 5 }
   0x4   : > { %p140_p2 = pnand %p399_p0, %p139_p1 }
   0x5   : > { %s400_s14 = sshll.u32 (!%p140_p2), %s395_s13, 3  ;;  %v494_v0 = vld [vmem:[%s623_s1] ss:$0 sm:$0xff] (!%p140_p2) }
   0x6   : > { %143 = sbr.rel (%p140_p2) target bundleno = 54 (0x36), region = 32  ;;  %p166_p3 = scmp.lt.s32.totalorder (!%p140_p2), %s400_s14, 31  ;;  %v506_v1 = vld [vmem:[%s624_s2] ss:$0 sm:$0xff] (!%p140_p2) }
   0xd   : > { %s627_s14 = smov (!%p166_p3, %s400_s14), 31 }
   0xe   : > { %s410_s15 = sshll.u32 %s627_s14, 4 }
   0xf   : > { %s501_s20 = scalar_lea.vmem %s622_s0, %s410_s15  ;;  %s585_s25 = scalar_lea.vmem %s625_s3, %s410_s15 }
  0x10   : > { %v179_v2 = vld [vmem:[%s501_s20] sm:$0xff]  ;;  %v180_v3 = vld [vmem:[%s501_s20 + $0x8] sm:$0xff]  ;;  %v181_v4 = vld [vmem:[%s501_s20 + $0x10] sm:$0xff] }
  0x11   : > { %v202_v5 = vmul.f32 %v494_v0, %v179_v2  ;;  %v203_v6 = vmul.f32 %v494_v0, %v180_v3  ;;  %v204_v7 = vmul.f32 %v494_v0, %v181_v4  ;;  %v182_v8 = vld [vmem:[%s501_s20 + $0x18] sm:$0xff]  ;;  %v183_v9 = vld [vmem:[%s501_s20 + $0x20] sm:$0xff]  ;;  %v184_v10 = vld [vmem:[%s501_s20 + $0x28] sm:$0xff] }
  0x12   : > { %v205_v11 = vmul.f32 %v494_v0, %v182_v8  ;;  %v206_v12 = vmul.f32 %v494_v0, %v183_v9  ;;  %v207_v13 = vmul.f32 %v494_v0, %v184_v10  ;;  %v185_v14 = vld [vmem:[%s501_s20 + $0x30] sm:$0xff]  ;;  %v186_v15 = vld [vmem:[%s501_s20 + $0x38] sm:$0xff]  ;;  %v187_v26 = vld [vmem:[%s501_s20 + $0x40] sm:$0xff] }
  0x13   : > { %v225_v16 = vadd.f32 %v506_v1, %v202_v5  ;;  %v226_v17 = vadd.f32 %v506_v1, %v203_v6  ;;  %v227_v18 = vadd.f32 %v506_v1, %v204_v7  ;;  %v208_v19 = vmul.f32 %v494_v0, %v185_v14  ;;  %v188_v29 = vld [vmem:[%s501_s20 + $0x48] sm:$0xff]  ;;  %v189_v30 = vld [vmem:[%s501_s20 + $0x50] sm:$0xff]  ;;  %v190_v38 = vld [vmem:[%s501_s20 + $0x58] sm:$0xff] }
  0x14   : > { %v228_v20 = vadd.f32 %v506_v1, %v205_v11  ;;  %v229_v21 = vadd.f32 %v506_v1, %v206_v12  ;;  %v529_v22 = vadd.f32 %v506_v1, %v207_v13  ;;  %v209_v23 = vmul.f32 %v494_v0, %v186_v15  ;;  %v191_v39 = vld [vmem:[%s501_s20 + $0x60] sm:$0xff]  ;;  %v192_v47 = vld [vmem:[%s501_s20 + $0x68] sm:$0xff]  ;;  %v193_v49 = vld [vmem:[%s501_s20 + $0x70] sm:$0xff] }
  0x15   : > { %v257_v24 = vmul.f32 0.70710677, %v225_v16  ;;  %v258_v25 = vmul.f32 0.70710677, %v226_v17  ;;  %v259_v27 = vmul.f32 0.70710677, %v227_v18  ;;  %v231_v33 = vadd.f32 %v506_v1, %v208_v19 }
  0x16   : > { %v260_v28 = vmul.f32 0.70710677, %v228_v20  ;;  %v261_v31 = vmul.f32 0.70710677, %v229_v21  ;;  %v262_v32 = vmul.f32 0.70710677, %v529_v22  ;;  %v538_v34 = vadd.f32 %v506_v1, %v209_v23 }
  0x17   : > { %420 = verf.f32 %v257_v24  ;;  %v210_v35 = vmul.f32 %v494_v0, %v187_v26  ;;  %v211_v36 = vmul.f32 %v494_v0, %v188_v29  ;;  %v212_v37 = vmul.f32 %v494_v0, %v189_v30  ;;  %v194_v50 = vld [vmem:[%s501_s20 + $0x78] sm:$0xff] }
  0x18   : > { %422 = verf.f32 %v258_v25  ;;  %v263_v40 = vmul.f32 0.70710677, %v231_v33  ;;  %v264_v41 = vmul.f32 0.70710677, %v538_v34  ;;  %v213_v45 = vmul.f32 %v494_v0, %v190_v38 }
  0x19   : > { %424 = verf.f32 %v259_v27  ;;  %v547_v42 = vadd.f32 %v506_v1, %v210_v35  ;;  %v550_v43 = vadd.f32 %v506_v1, %v211_v36  ;;  %v553_v44 = vadd.f32 %v506_v1, %v212_v37 }
  0x1a   : > { %426 = verf.f32 %v260_v28  ;;  %v214_v46 = vmul.f32 %v494_v0, %v191_v39  ;;  %v241_v51 = vmul.f32 0.5, %v225_v16  ;;  %v564_v54 = vadd.f32 %v506_v1, %v213_v45 }
  0x1b   : > { %428 = verf.f32 %v261_v31  ;;  %v265_v48 = vmul.f32 0.70710677, %v547_v42  ;;  %v266_v52 = vmul.f32 0.70710677, %v550_v43  ;;  %v267_v53 = vmul.f32 0.70710677, %v553_v44 }
  0x1c   : > { %430 = verf.f32 %v262_v32  ;;  %v567_v55 = vadd.f32 %v506_v1, %v214_v46  ;;  %v215_v56 = vmul.f32 %v494_v0, %v192_v47  ;;  %v242_v57 = vmul.f32 0.5, %v226_v17 }
  0x1d   : > { %432 = verf.f32 %v263_v40  ;;  %v216_v58 = vmul.f32 %v494_v0, %v193_v49  ;;  %v217_v59 = vmul.f32 %v494_v0, %v194_v50  ;;  %v243_v61 = vmul.f32 0.5, %v227_v18 }
  0x1e   : > { %434 = verf.f32 %v264_v41  ;;  %v244_v62 = vmul.f32 0.5, %v228_v20  ;;  %v268_v63 = vmul.f32 0.70710677, %v564_v54  ;;  %v269_v4 = vmul.f32 0.70710677, %v567_v55 }
  0x1f   : > { %436 = verf.f32 %v265_v48  ;;  %v575_v5 = vadd.f32 %v506_v1, %v215_v56  ;;  %v578_v6 = vadd.f32 %v506_v1, %v216_v58  ;;  %v245_v8 = vmul.f32 0.5, %v229_v21 }
  0x20   : > { %438 = verf.f32 %v266_v52  ;;  %v588_v9 = vadd.f32 %v506_v1, %v217_v59  ;;  %v246_v13 = vmul.f32 0.5, %v529_v22  ;;  %v247_v17 = vmul.f32 0.5, %v231_v33 }
  0x21   : > { %v421_v60 = vpop.eup %420  ;;  %440 = verf.f32 %v267_v53  ;;  %v270_v18 = vmul.f32 0.70710677, %v575_v5  ;;  %v248_v1 = vmul.f32 0.5, %v538_v34  ;;  %v271_v23 = vmul.f32 0.70710677, %v578_v6 }
  0x22   : > { %v423_v2 = vpop.eup %422  ;;  %v289_v3 = vadd.f32 1.0, %v421_v60  ;;  %442 = verf.f32 %v268_v63  ;;  %v272_v26 = vmul.f32 0.70710677, %v588_v9  ;;  %v249_v30 = vmul.f32 0.5, %v547_v42 }
  0x23   : > { %v425_v7 = vpop.eup %424  ;;  %v290_v0 = vadd.f32 1.0, %v423_v2  ;;  %444 = verf.f32 %v269_v4  ;;  %v250_v34 = vmul.f32 0.5, %v550_v43  ;;  %v251_v38 = vmul.f32 0.5, %v553_v44 }
  0x24   : > { %v427_v10 = vpop.eup %426  ;;  %v305_v11 = vmul.f32 %v289_v3, %v241_v51  ;;  %v291_v12 = vadd.f32 1.0, %v425_v7  ;;  %446 = verf.f32 %v270_v18  ;;  %v252_v43 = vmul.f32 0.5, %v564_v54 }
  0x25   : > { %v429_v14 = vpop.eup %428  ;;  %v306_v15 = vmul.f32 %v290_v0, %v242_v57  ;;  %v292_v16 = vadd.f32 1.0, %v427_v10  ;;  %448 = verf.f32 %v271_v23  ;;  %v253_v48 = vmul.f32 0.5, %v567_v55 }
  0x26   : > { %v431_v19 = vpop.eup %430  ;;  %321 = vst [vmem:[%s585_s25] sm:$0xff] %v305_v11  ;;  %v307_v20 = vmul.f32 %v291_v12, %v243_v61  ;;  %v293_v21 = vadd.f32 1.0, %v429_v14  ;;  %450 = verf.f32 %v272_v26  ;;  %v254_v53 = vmul.f32 0.5, %v575_v5 }
  0x27   : > { %v433_v24 = vpop.eup %432  ;;  %322 = vst [vmem:[%s585_s25 + $0x8] sm:$0xff] %v306_v15  ;;  %v308_v22 = vmul.f32 %v292_v16, %v244_v62  ;;  %v294_v25 = vadd.f32 1.0, %v431_v19  ;;  %v255_v57 = vmul.f32 0.5, %v578_v6  ;;  %v256_v59 = vmul.f32 0.5, %v588_v9 }
  0x28   : > { %v435_v27 = vpop.eup %434  ;;  %323 = vst [vmem:[%s585_s25 + $0x10] sm:$0xff] %v307_v20  ;;  %v309_v28 = vmul.f32 %v293_v21, %v245_v8  ;;  %v295_v29 = vadd.f32 1.0, %v433_v24 }
  0x29   : > { %v437_v31 = vpop.eup %436  ;;  %324 = vst [vmem:[%s585_s25 + $0x18] sm:$0xff] %v308_v22  ;;  %v310_v32 = vmul.f32 %v294_v25, %v246_v13  ;;  %v296_v33 = vadd.f32 1.0, %v435_v27 }
  0x2a   : > { %v439_v35 = vpop.eup %438  ;;  %325 = vst [vmem:[%s585_s25 + $0x20] sm:$0xff] %v309_v28  ;;  %v311_v36 = vmul.f32 %v295_v29, %v247_v17  ;;  %v297_v37 = vadd.f32 1.0, %v437_v31 }
  0x2b   : > { %v441_v39 = vpop.eup %440  ;;  %326 = vst [vmem:[%s585_s25 + $0x28] sm:$0xff] %v310_v32  ;;  %v312_v40 = vmul.f32 %v296_v33, %v248_v1  ;;  %v298_v41 = vadd.f32 1.0, %v439_v35 }
  0x2c   : > { %327 = vst [vmem:[%s585_s25 + $0x30] sm:$0xff] %v311_v36  ;;  %v313_v42 = vmul.f32 %v297_v37, %v249_v30  ;;  %v299_v45 = vadd.f32 1.0, %v441_v39  ;;  %v443_v46 = vpop.eup %442 }
  0x2d   : > { %328 = vst [vmem:[%s585_s25 + $0x38] sm:$0xff] %v312_v40  ;;  %v314_v47 = vmul.f32 %v298_v41, %v250_v34  ;;  %v445_v49 = vpop.eup %444  ;;  %v300_v50 = vadd.f32 1.0, %v443_v46 }
  0x2e   : > { %329 = vst [vmem:[%s585_s25 + $0x40] sm:$0xff] %v313_v42  ;;  %v315_v44 = vmul.f32 %v299_v45, %v251_v38  ;;  %v301_v51 = vadd.f32 1.0, %v445_v49  ;;  %v447_v54 = vpop.eup %446 }
  0x2f   : > { %330 = vst [vmem:[%s585_s25 + $0x48] sm:$0xff] %v314_v47  ;;  %v316_v52 = vmul.f32 %v300_v50, %v252_v43  ;;  %v449_v58 = vpop.eup %448  ;;  %v302_v55 = vadd.f32 1.0, %v447_v54 }
  0x30   : > { %331 = vst [vmem:[%s585_s25 + $0x50] sm:$0xff] %v315_v44  ;;  %v317_v56 = vmul.f32 %v301_v51, %v253_v48  ;;  %v451_v60 = vpop.eup %450  ;;  %v303_v61 = vadd.f32 1.0, %v449_v58 }
  0x31   : > { %332 = vst [vmem:[%s585_s25 + $0x58] sm:$0xff] %v316_v52  ;;  %v318_v62 = vmul.f32 %v302_v55, %v254_v53  ;;  %v304_v63 = vadd.f32 1.0, %v451_v60 }
  0x32   : > { %333 = vst [vmem:[%s585_s25 + $0x60] sm:$0xff] %v317_v56  ;;  %v319_v2 = vmul.f32 %v303_v61, %v255_v57 }
  0x33   : > { %334 = vst [vmem:[%s585_s25 + $0x68] sm:$0xff] %v318_v62  ;;  %v320_v3 = vmul.f32 %v304_v63, %v256_v59 }
  0x34   : > { %335 = vst [vmem:[%s585_s25 + $0x70] sm:$0xff] %v319_v2 }
  0x35   : > { %336 = vst [vmem:[%s585_s25 + $0x78] sm:$0xff] %v320_v3 }
  0x36 PF: > { %s13_s12 = sadd.s32 1, %s458_s12  }
  0x37   : > { %p10_p4 = scmp.ge.s32.totalorder %s13_s12, 6  }
  0x39   :  { %12 = sbr.rel (!%p10_p4) target bundleno = 1 (0x1), region = 62 }

// kernel: unet_down.4
= control target key start
LH: loop header
LB: loop body
LE: loop exit
PB: predicated region body
PF: predicated region fallthrough
CT: control target
= control target key end

     0   :  { %s1760_s18 = smov 0   ;;  %s2502_s0 = inlined_call_operand.vmem [shape: f32[32,18,4], index: 0, kind: input, shape index: {}]   ;;  %s2503_s1 = inlined_call_operand.vmem [shape: f32[32,18,4], index: 1, kind: input, shape index: {}]   ;;  %s2504_s2 = inlined_call_operand.vmem [shape: f32[32,18,4], index: 2, kind: input, shape index: {}]   ;;  %s2505_s3 = inlined_call_operand.vmem [shape: f32[36,128], index: 3, kind: input, shape index: {}]   ;;  %s2506_s4 = inlined_call_operand.vmem [shape: f32[32,16,128], index: 4, kind: output, shape index: {0}]   ;;  %s2507_s5 = inlined_call_operand.vmem [shape: f32[4,2,128], index: 5, kind: output, shape index: {1}]  }
   0x1 LB: > { %s1766_s19 = sadd.s32 4294967295, %s1720_s18   ;;  %p1597_p0 = scmp.ge.s32.totalorder %s1720_s18, 1  ;;  %s1720_s18 = sphi %s1760_s18, %s16_s18  }
   0x2   : > { %p216_p1 = scmp.lt.s32.totalorder %s1720_s18, 5 }
   0x4   : > { %p217_p2 = pnand %p1597_p0, %p216_p1 }
   0x5   : > { %s1598_s20 = sshll.u32 (!%p217_p2), %s1766_s19, 3  ;;  %s1722_s28 = smov (!%p217_p2), 12   ;;  %vm479_vm0 = vcmask (!%p217_p2), 1045504   ;;  %vm390_vm1 = vcmask (!%p217_p2), 1046528   ;;  %v1200_v56 = vld [vmem:[%s2505_s3] sm:$0xff] (!%p217_p2)  ;;  %v1201_v57 = vld [vmem:[%s2505_s3 + $0x8] sm:$0xff] (!%p217_p2) }
   0x6   : > { %220 = sbr.rel (%p217_p2) target bundleno = 620 (0x26c), region = 36  ;;  %p263_p3 = scmp.lt.s32.totalorder (!%p217_p2), %s1598_s20, 31  ;;  %v1202_v59 = vld [vmem:[%s2505_s3 + $0x10] sm:$0xff] (!%p217_p2)  ;;  %v1203_v60 = vld [vmem:[%s2505_s3 + $0x18] sm:$0xff] (!%p217_p2)  ;;  %vm1254_vm2 = vcmask (!%p217_p2), 1043456   ;;  %vm1064_vm3 = vcmask (!%p217_p2), 31744  }
   0x7   : > { %s1723_s29 = smov (!%p217_p2), 8   ;;  %s1724_s30 = smov (!%p217_p2), 4   ;;  %vm1081_vm4 = vcmask (!%p217_p2), 64512   ;;  %vm1098_vm5 = vcmask (!%p217_p2), 97280   ;;  %vm1115_vm6 = vcmask (!%p217_p2), 130048   ;;  %vm1132_vm7 = vcmask (!%p217_p2), 162816  }
   0x8   : > { %s1725_s6 = smov (!%p217_p2), 16   ;;  %s1726_s7 = smov (!%p217_p2), 20   ;;  %vm1149_vm8 = vcmask (!%p217_p2), 195584   ;;  %vm1166_vm9 = vcmask (!%p217_p2), 228352   ;;  %vm1183_vm10 = vcmask (!%p217_p2), 261120   ;;  %vm1205_vm11 = vcmask (!%p217_p2), 293888  }
   0x9   : > { %s1727_s11 = smov (!%p217_p2), 24   ;;  %s1728_s12 = smov (!%p217_p2), 28   ;;  %vm1477_vm12 = vcmask (!%p217_p2), 1040384  }
   0xa   : > { %s1729_s25 = smov (!%p217_p2), 32   ;;  %p290_p4 = scmp.lt.s32.totalorder (!%p217_p2), %s1766_s19, 3 }
   0xd   : > { %s2509_s20 = smov (!%p263_p3, %s1598_s20), 31  ;;  %s2511_s19 = smov (!%p290_p4, %s1766_s19), 3 }
   0xe   : > { %s1774_s21 = smul.u32 24, %s2509_s20 }
  0x10   : > { %s1780_s24 = scalar_lea.vmem %s2503_s1, %s1774_s21  ;;  %s1786_s27 = scalar_lea.vmem %s2502_s0, %s1774_s21 }
  0x11   : > { %v319_v0 = vld [vmem:[%s1780_s24 + $0x8] sm:$0xff]  ;;  %v318_v1 = vld [vmem:[%s1780_s24] sm:$0xff]  ;;  %v296_v8 = vld [vmem:[%s1786_s27 + $0x10] sm:$0x3]  ;;  %s1837_s10 = scalar_lea.vmem %s2504_s2, %s1774_s21 }
  0x12   : > { %v1791_v2 = vld [vmem:[%s1786_s27] sm:$0xff]  ;;  %586 = vrot.lane.b32.xlu1 %v319_v0, %s1722_s28  ;;  %584 = vrot.lane.b32.xlu0 %v318_v1, %s1722_s28  ;;  %v1796_v3 = vld [vmem:[%s1786_s27 + $0x8] sm:$0xff]  ;;  %v483_v9 = vrot.slane %v296_v8, 2  ;;  %v394_v10 = vrot.slane %v296_v8, 1  ;;  %v641_v15 = vrot.slane %v319_v0, 1  ;;  %v640_v16 = vrot.slane %v318_v1, 1 }
  0x13   : > { %v480_v4 = vrot.slane %v1791_v2, 2  ;;  %v481_v5 = vrot.slane %v1796_v3, 2  ;;  %v391_v6 = vrot.slane %v1791_v2, 1  ;;  %v392_v7 = vrot.slane %v1796_v3, 1  ;;  %v1804_v11 = vld [vmem:[%s1786_s27 + $0x18] sm:$0xff]  ;;  %v1807_v12 = vld [vmem:[%s1786_s27 + $0x20] sm:$0xff] }
  0x14   : > { %v396_v19 = vrot.slane %v1804_v11, 1  ;;  %v397_v20 = vrot.slane %v1807_v12, 1  ;;  %v320_v21 = vld [vmem:[%s1780_s24 + $0x10] sm:$0x3]  ;;  %v729_v22 = vrot.slane %v319_v0, 2  ;;  %v728_v23 = vrot.slane %v318_v1, 2 }
  0x15   : > { %v482_v13 = vsel %vm479_vm0, %v480_v4, %v481_v5  ;;  %v393_v14 = vsel %vm390_vm1, %v391_v6, %v392_v7  ;;  %v484_v17 = vsel %vm479_vm0, %v481_v5, %v483_v9  ;;  %v395_v18 = vsel %vm390_vm1, %v392_v7, %v394_v10  ;;  %v299_v27 = vld [vmem:[%s1786_s27 + $0x28] sm:$0x3]  ;;  %v342_v36 = vld [vmem:[%s1837_s10] sm:$0xff]  ;;  %v321_v41 = vld [vmem:[%s1780_s24 + $0x18] sm:$0xff] }
  0x16   : > { %520 = vrot.lane.b32.xlu1 %v482_v13, %s1723_s29  ;;  %431 = vrot.lane.b32.xlu0 %v393_v14, %s1724_s30  ;;  %v398_v24 = vsel %vm390_vm1, %v396_v19, %v397_v20  ;;  %v642_v25 = vsel %vm390_vm1, %v640_v16, %v641_v15  ;;  %v643_v26 = vrot.slane %v320_v21, 1  ;;  %v730_v28 = vsel %vm479_vm0, %v728_v23, %v729_v22  ;;  %v343_v39 = vld [vmem:[%s1837_s10 + $0x8] sm:$0xff]  ;;  %v1849_v44 = vld [vmem:[%s1780_s24 + $0x20] sm:$0xff] }
  0x17   : > { %v485_v30 = vrot.slane %v1804_v11, 2  ;;  %v486_v31 = vrot.slane %v1807_v12, 2  ;;  %v399_v32 = vrot.slane %v299_v27, 1  ;;  %v731_v35 = vrot.slane %v320_v21, 2  ;;  %v344_v48 = vld [vmem:[%s1837_s10 + $0x10] sm:$0x3] }
  0x18   : > { %v644_v29 = vsel %vm390_vm1, %v641_v15, %v643_v26  ;;  %v488_v38 = vrot.slane %v299_v27, 2  ;;  %v888_v40 = vrot.slane %v342_v36, 1  ;;  %v889_v43 = vrot.slane %v343_v39, 1  ;;  %v323_v53 = vld [vmem:[%s1780_s24 + $0x28] sm:$0x3]  ;;  %v1861_v54 = vld [vmem:[%s1786_s27 + $0x30] sm:$0xff] }
  0x19   : > { %v487_v33 = vsel %vm479_vm0, %v485_v30, %v486_v31  ;;  %v400_v34 = vsel %vm390_vm1, %v397_v20, %v399_v32  ;;  %v732_v37 = vsel %vm479_vm0, %v729_v22, %v731_v35  ;;  %v645_v45 = vrot.slane %v321_v41, 1  ;;  %v1864_v55 = vld [vmem:[%s1786_s27 + $0x38] sm:$0xff]  ;;  %v302_v10 = vld [vmem:[%s1786_s27 + $0x40] sm:$0x3]  ;;  %v324_v27 = vld [vmem:[%s1780_s24 + $0x30] sm:$0xff] }
  0x1a   : > { %522 = vrot.lane.b32.xlu1 %v484_v17, %s1723_s29  ;;  %433 = vrot.lane.b32.xlu0 %v395_v18, %s1724_s30  ;;  %v489_v42 = vsel %vm479_vm0, %v486_v31, %v488_v38  ;;  %v890_v46 = vsel %vm390_vm1, %v888_v40, %v889_v43  ;;  %v646_v47 = vrot.slane %v1849_v44, 1  ;;  %v976_v49 = vrot.slane %v342_v36, 2  ;;  %v1204_v14 = vld [vmem:[%s2505_s3 + $0x20] sm:$0xf]  ;;  %v345_v22 = vld [vmem:[%s1837_s10 + $0x18] sm:$0xff] }
  0x1b   : > { %v977_v51 = vrot.slane %v343_v39, 2  ;;  %v891_v52 = vrot.slane %v344_v48, 1  ;;  %v648_v58 = vrot.slane %v323_v53, 1  ;;  %v401_v63 = vrot.slane %v1861_v54, 1  ;;  %v325_v30 = vld [vmem:[%s1780_s24 + $0x38] sm:$0xff]  ;;  %v1923_v40 = vld [vmem:[%s1786_s27 + $0x48] sm:$0xff] }
  0x1c   : > { %v647_v50 = vsel %vm390_vm1, %v645_v45, %v646_v47  ;;  %v402_v0 = vrot.slane %v1864_v55, 1  ;;  %v1683_v1 = vpack.c.bf16 %v1201_v57, %v1200_v56  ;;  %v1687_v4 = vpack.c.bf16 %v1203_v60, %v1202_v59 }
  0x1d   : > { %v978_v61 = vsel %vm479_vm0, %v976_v49, %v977_v51  ;;  %v892_v62 = vsel %vm390_vm1, %v889_v43, %v891_v52  ;;  %v733_v5 = vrot.slane %v321_v41, 2  ;;  %v649_v6 = vsel %vm390_vm1, %v646_v47, %v648_v58  ;;  %v305_v52 = vld [vmem:[%s1786_s27 + $0x58] sm:$0x3] }
  0x1e   : > { %435 = vrot.lane.b32.xlu1 %v398_v24, %s1724_s30  ;;  %680 = vrot.lane.b32.xlu0 %v642_v25, %s1725_s6  ;;  %v403_v7 = vsel %vm390_vm1, %v401_v63, %v402_v0  ;;  %v979_v8 = vrot.slane %v344_v48, 2  ;;  %v734_v9 = vrot.slane %v1849_v44, 2  ;;  %v490_v13 = vrot.slane %v1861_v54, 2  ;;  %v346_v25 = vld [vmem:[%s1837_s10 + $0x20] sm:$0xff]  ;;  %v348_v63 = vld [vmem:[%s1837_s10 + $0x30] sm:$0xff] }
  0x1f   : > { %1684 = vmatprep.subr.bf16.mxu0 %v1683_v1  ;;  %1691 = vmatprep.subr.bf16.mxu1 %v1683_v1  ;;  %v491_v17 = vrot.slane %v1864_v55, 2  ;;  %v404_v18 = vrot.slane %v302_v10, 1  ;;  %v736_v21 = vrot.slane %v323_v53, 2  ;;  %v493_v24 = vrot.slane %v302_v10, 2 }
  0x20   : > { %1686 = vmatpush3.bf16.msra.mxu0 %v1683_v1  ;;  %1694 = vmatpush3.bf16.msra.mxu1 %v1683_v1  ;;  %v980_v15 = vsel %vm479_vm0, %v977_v51, %v979_v8  ;;  %v735_v16 = vsel %vm479_vm0, %v733_v5, %v734_v9  ;;  %v893_v26 = vrot.slane %v345_v22, 1  ;;  %v650_v31 = vrot.slane %v324_v27, 1 }
  0x21   : > { %1688 = vmatprep.subr.bf16.mxu0 %v1687_v4  ;;  %1692 = vmatprep.subr.bf16.mxu1 %v1687_v4  ;;  %v492_v19 = vsel %vm479_vm0, %v490_v13, %v491_v17  ;;  %v405_v20 = vsel %vm390_vm1, %v402_v0, %v404_v18  ;;  %v737_v23 = vsel %vm479_vm0, %v734_v9, %v736_v21  ;;  %v981_v35 = vrot.slane %v345_v22, 2  ;;  %v328_v9 = vld [vmem:[%s1780_s24 + $0x50] sm:$0xff]  ;;  %v1968_v21 = vld [vmem:[%s1786_s27 + $0x60] sm:$0xff] }
  0x22   : > { %768 = vrot.lane.b32.xlu1 %v730_v28, %s1726_s7  ;;  %682 = vrot.lane.b32.xlu0 %v644_v29, %s1725_s6  ;;  %v494_v28 = vsel %vm479_vm0, %v491_v17, %v493_v24  ;;  %v894_v29 = vrot.slane %v346_v25, 1  ;;  %v406_v45 = vrot.slane %v1923_v40, 1  ;;  %v738_v47 = vrot.slane %v324_v27, 2 }
  0x23   : > { %v739_v51 = vrot.slane %v325_v30, 2  ;;  %v495_v53 = vrot.slane %v1923_v40, 2  ;;  %v409_v59 = vrot.slane %v305_v52, 1  ;;  %v498_v1 = vrot.slane %v305_v52, 2 }
  0x24   : > { %1690 = vmatpush3.bf16.msra.mxu0 %v1687_v4  ;;  %1695 = vmatpush3.bf16.msra.mxu1 %v1687_v4  ;;  %v895_v32 = vsel %vm390_vm1, %v893_v26, %v894_v29  ;;  %v349_v4 = vld [vmem:[%s1837_s10 + $0x38] sm:$0xff]  ;;  %v898_v5 = vrot.slane %v348_v63, 1  ;;  %v411_v26 = vrot.slane %v1968_v21, 1 }
  0x25   : > { %1657 = vmatprep.subr.msk.mxu0 %vm1254_vm2, %v1204_v14  ;;  %1693 = vmatprep.subr.msk.mxu1 %vm1254_vm2, %v1204_v14  ;;  %v740_v57 = vsel %vm479_vm0, %v738_v47, %v739_v51  ;;  %v899_v8 = vrot.slane %v349_v4, 1  ;;  %v987_v18 = vrot.slane %v349_v4, 2 }
  0x26   : > { %524 = vrot.lane.b32.xlu1 %v487_v33, %s1723_s29  ;;  %437 = vrot.lane.b32.xlu0 %v400_v34, %s1724_s30  ;;  %v651_v33 = vrot.slane %v325_v30, 1  ;;  %v347_v34 = vld [vmem:[%s1837_s10 + $0x28] sm:$0x3] }
  0x27   : > { %v896_v38 = vrot.slane %v347_v34, 1  ;;  %v900_v13 = vsel %vm390_vm1, %v898_v5, %v899_v8 }
  0x28   : > { %1658 = vmatpush3.msk.msra.mxu0 %vm1254_vm2, %v1204_v14  ;;  %1696 = vmatpush3.msk.msra.mxu1 %vm1254_vm2, %v1204_v14  ;;  %v656_v14 = vrot.slane %v328_v9, 1 }
  0x2a   : > { %832 = vrot.lane.b32.xlu1 %v342_v36, %s1727_s11  ;;  %770 = vrot.lane.b32.xlu0 %v732_v37, %s1726_s7  ;;  %v652_v36 = vsel %vm390_vm1, %v650_v31, %v651_v33  ;;  %v982_v37 = vrot.slane %v346_v25, 2 }
  0x2c   : > { %v983_v43 = vsel %vm479_vm0, %v981_v35, %v982_v37 }
  0x2e   : > { %588 = vrot.lane.b32.xlu1 %v321_v41, %s1722_s28  ;;  %526 = vrot.lane.b32.xlu0 %v489_v42, %s1723_s29  ;;  %v1926_v41 = vld [vmem:[%s1786_s27 + $0x50] sm:$0xff] }
  0x2f   : > { %v496_v58 = vrot.slane %v1926_v41, 2 }
  0x31   : > { %v497_v60 = vsel %vm479_vm0, %v495_v53, %v496_v58  ;;  %v330_v53 = vld [vmem:[%s1780_s24 + $0x60] sm:$0xff] }
  0x32   : > { %928 = vrot.lane.b32.xlu1 %v890_v46, %s1728_s12  ;;  %834 = vrot.lane.b32.xlu0 %v343_v39, %s1727_s11  ;;  %v326_v39 = vld [vmem:[%s1780_s24 + $0x40] sm:$0x3]  ;;  %v407_v46 = vrot.slane %v1926_v41, 1 }
  0x33   : > { %v653_v42 = vrot.slane %v326_v39, 1 }
  0x34   : > { %v408_v49 = vsel %vm390_vm1, %v406_v45, %v407_v46 }
  0x35   : > { %v654_v48 = vsel %vm390_vm1, %v651_v33, %v653_v42  ;;  %v308_v33 = vld [vmem:[%s1786_s27 + $0x70] sm:$0x3] }
  0x36   : > { %684 = vrot.lane.b32.xlu1 %v647_v50, %s1725_s6  ;;  %590 = vrot.lane.b32.xlu0 %v1849_v44, %s1722_s28  ;;  %v897_v44 = vsel %vm390_vm1, %v894_v29, %v896_v38  ;;  %v984_v50 = vrot.slane %v347_v34, 2  ;;  %v500_v34 = vrot.slane %v1968_v21, 2  ;;  %v414_v38 = vrot.slane %v308_v33, 1 }
  0x38   : > { %v985_v56 = vsel %vm479_vm0, %v982_v37, %v984_v50 }
  0x3a   : > { %1016 = vrot.lane.b32.xlu1 %v978_v61, %s1729_s25  ;;  %930 = vrot.lane.b32.xlu0 %v892_v62, %s1728_s12  ;;  %v410_v61 = vsel %vm390_vm1, %v407_v46, %v409_v59  ;;  %v741_v62 = vrot.slane %v326_v39, 2  ;;  %v351_v46 = vld [vmem:[%s1837_s10 + $0x48] sm:$0xff] }
  0x3b   : > { %v903_v52 = vrot.slane %v351_v46, 1  ;;  %v991_v5 = vrot.slane %v351_v46, 2 }
  0x3c   : > { %v742_v0 = vsel %vm479_vm0, %v739_v51, %v741_v62  ;;  %v352_v51 = vld [vmem:[%s1837_s10 + $0x50] sm:$0xff] }
  0x3e   : > { %686 = vrot.lane.b32.xlu1 %v649_v6, %s1725_s6  ;;  %439 = vrot.lane.b32.xlu0 %v403_v7, %s1724_s30  ;;  %v327_v6 = vld [vmem:[%s1780_s24 + $0x48] sm:$0xff]  ;;  %v499_v7 = vsel %vm479_vm0, %v496_v58, %v498_v1 }
  0x3f   : > { %v655_v10 = vrot.slane %v327_v6, 1 }
  0x41   : > { %v657_v17 = vsel %vm390_vm1, %v655_v10, %v656_v14 }
  0x42   : > { %1018 = vrot.lane.b32.xlu1 %v980_v15, %s1729_s25  ;;  %772 = vrot.lane.b32.xlu0 %v735_v16, %s1726_s7  ;;  %v350_v15 = vld [vmem:[%s1837_s10 + $0x40] sm:$0x3]  ;;  %v986_v16 = vrot.slane %v348_v63, 2 }
  0x43   : > { %v989_v31 = vrot.slane %v350_v15, 2 }
  0x44   : > { %v988_v24 = vsel %vm479_vm0, %v986_v16, %v987_v18 }
  0x45   : > { %v990_v35 = vsel %vm479_vm0, %v987_v18, %v989_v31 }
  0x46   : > { %528 = vrot.lane.b32.xlu1 %v492_v19, %s1723_s29  ;;  %441 = vrot.lane.b32.xlu0 %v405_v20, %s1724_s30  ;;  %v901_v19 = vrot.slane %v350_v15, 1  ;;  %v329_v20 = vld [vmem:[%s1780_s24 + $0x58] sm:$0x3]  ;;  %v2035_v15 = vld [vmem:[%s1786_s27 + $0x80] sm:$0xff] }
  0x4a   : > { %836 = vrot.lane.b32.xlu1 %v345_v22, %s1727_s11  ;;  %774 = vrot.lane.b32.xlu0 %v737_v23, %s1726_s7  ;;  %v1971_v22 = vld [vmem:[%s1786_s27 + $0x68] sm:$0xff]  ;;  %v658_v23 = vrot.slane %v329_v20, 1 }
  0x4b   : > { %v501_v37 = vrot.slane %v1971_v22, 2 }
  0x4c   : > { %v659_v29 = vsel %vm390_vm1, %v656_v14, %v658_v23  ;;  %v2032_v14 = vld [vmem:[%s1786_s27 + $0x78] sm:$0xff] }
  0x4d   : > { %v502_v39 = vsel %vm479_vm0, %v500_v34, %v501_v37 }
  0x4e   : > { %592 = vrot.lane.b32.xlu1 %v324_v27, %s1722_s28  ;;  %530 = vrot.lane.b32.xlu0 %v494_v28, %s1723_s29  ;;  %v412_v27 = vrot.slane %v1971_v22, 1  ;;  %v743_v28 = vrot.slane %v327_v6, 2 }
  0x50   : > { %v415_v42 = vsel %vm390_vm1, %v412_v27, %v414_v38 }
  0x52   : > { %932 = vrot.lane.b32.xlu1 %v895_v32, %s1728_s12  ;;  %838 = vrot.lane.b32.xlu0 %v346_v25, %s1727_s11  ;;  %v902_v25 = vsel %vm390_vm1, %v899_v8, %v901_v19  ;;  %v744_v32 = vrot.slane %v328_v9, 2  ;;  %v416_v19 = vrot.slane %v2032_v14, 1 }
  0x56   : > { %688 = vrot.lane.b32.xlu1 %v652_v36, %s1725_s6  ;;  %594 = vrot.lane.b32.xlu0 %v325_v30, %s1722_s28  ;;  %v413_v30 = vsel %vm390_vm1, %v411_v26, %v412_v27  ;;  %v745_v36 = vsel %vm479_vm0, %v743_v28, %v744_v32 }
  0x5a   : > { %1020 = vrot.lane.b32.xlu1 %v983_v43, %s1729_s25  ;;  %934 = vrot.lane.b32.xlu0 %v897_v44, %s1728_s12  ;;  %v746_v43 = vrot.slane %v329_v20, 2  ;;  %v417_v20 = vrot.slane %v2035_v15, 1 }
  0x5c   : > { %v747_v47 = vsel %vm479_vm0, %v744_v32, %v746_v43  ;;  %v418_v27 = vsel %vm390_vm1, %v416_v19, %v417_v20  ;;  %v311_v32 = vld [vmem:[%s1786_s27 + $0x88] sm:$0x3] }
  0x5e   : > { %690 = vrot.lane.b32.xlu1 %v654_v48, %s1725_s6  ;;  %443 = vrot.lane.b32.xlu0 %v408_v49, %s1724_s30  ;;  %v503_v48 = vrot.slane %v308_v33, 2  ;;  %v505_v33 = vrot.slane %v2032_v14, 2 }
  0x62   : > { %1022 = vrot.lane.b32.xlu1 %v985_v56, %s1729_s25  ;;  %776 = vrot.lane.b32.xlu0 %v740_v57, %s1726_s7  ;;  %v504_v56 = vsel %vm479_vm0, %v501_v37, %v503_v48  ;;  %v904_v57 = vrot.slane %v352_v51, 1  ;;  %v419_v37 = vrot.slane %v311_v32, 1 }
  0x64   : > { %v905_v62 = vsel %vm390_vm1, %v903_v52, %v904_v57 }
  0x66   : > { %532 = vrot.lane.b32.xlu1 %v497_v60, %s1723_s29  ;;  %445 = vrot.lane.b32.xlu0 %v410_v61, %s1724_s30  ;;  %v2014_v60 = vld [vmem:[%s1780_s24 + $0x68] sm:$0xff]  ;;  %v660_v61 = vrot.slane %v330_v53, 1 }
  0x6a   : > { %840 = vrot.lane.b32.xlu1 %v348_v63, %s1727_s11  ;;  %778 = vrot.lane.b32.xlu0 %v742_v0, %s1726_s7  ;;  %v661_v63 = vrot.slane %v2014_v60, 1 }
  0x6e   : > { %596 = vrot.lane.b32.xlu1 %v327_v6, %s1722_s28  ;;  %534 = vrot.lane.b32.xlu0 %v499_v7, %s1723_s29  ;;  %v662_v6 = vsel %vm390_vm1, %v660_v61, %v661_v63  ;;  %v992_v7 = vrot.slane %v352_v51, 2 }
  0x72   : > { %936 = vrot.lane.b32.xlu1 %v900_v13, %s1728_s12  ;;  %842 = vrot.lane.b32.xlu0 %v349_v4, %s1727_s11  ;;  %v353_v4 = vld [vmem:[%s1837_s10 + $0x58] sm:$0x3] }
  0x73   : > { %v906_v8 = vrot.slane %v353_v4, 1  ;;  %v994_v28 = vrot.slane %v353_v4, 2 }
  0x75   : > { %v907_v18 = vsel %vm390_vm1, %v904_v57, %v906_v8  ;;  %v995_v34 = vsel %vm479_vm0, %v992_v7, %v994_v28 }
  0x76   : > { %692 = vrot.lane.b32.xlu1 %v657_v17, %s1725_s6  ;;  %598 = vrot.lane.b32.xlu0 %v328_v9, %s1722_s28  ;;  %v332_v9 = vld [vmem:[%s1780_s24 + $0x70] sm:$0x3]  ;;  %v993_v17 = vsel %vm479_vm0, %v991_v5, %v992_v7  ;;  %v333_v5 = vld [vmem:[%s1780_s24 + $0x78] sm:$0xff] }
  0x77   : > { %v663_v16 = vrot.slane %v332_v9, 1 }
  0x79   : > { %v664_v26 = vsel %vm390_vm1, %v661_v63, %v663_v16  ;;  %v665_v16 = vrot.slane %v333_v5, 1 }
  0x7a   : > { %1024 = vrot.lane.b32.xlu1 %v988_v24, %s1729_s25  ;;  %938 = vrot.lane.b32.xlu0 %v902_v25, %s1728_s12  ;;  %v748_v25 = vrot.slane %v330_v53, 2 }
  0x7e   : > { %694 = vrot.lane.b32.xlu1 %v659_v29, %s1725_s6  ;;  %447 = vrot.lane.b32.xlu0 %v413_v30, %s1724_s30  ;;  %v749_v29 = vrot.slane %v2014_v60, 2 }
  0x82   : > { %1026 = vrot.lane.b32.xlu1 %v990_v35, %s1729_s25  ;;  %780 = vrot.lane.b32.xlu0 %v745_v36, %s1726_s7  ;;  %v750_v35 = vsel %vm479_vm0, %v748_v25, %v749_v29  ;;  %v506_v36 = vrot.slane %v2035_v15, 2  ;;  %v356_v25 = vld [vmem:[%s1837_s10 + $0x70] sm:$0x3] }
  0x84   : > { %v1994_v44 = vpop.permute.xlu1 %586  ;;  %v1996_v45 = vpop.permute.xlu0 %584  ;;  %v507_v43 = vsel %vm479_vm0, %v505_v33, %v506_v36  ;;  %v335_v33 = vld [vmem:[%s1780_s24 + $0x88] sm:$0x3] }
  0x86   : > { %536 = vrot.lane.b32.xlu1 %v502_v39, %s1723_s29  ;;  %449 = vrot.lane.b32.xlu0 %v415_v42, %s1724_s30 }
  0x88   : > { %v2002_v49 = vpop.permute.xlu1 %520  ;;  %v432_v50 = vpop.permute.xlu0 %431 }
  0x89   : > { %v1065_v42 = vsel %vm1064_vm3, %v1791_v2, %v432_v50  ;;  %v354_v2 = vld [vmem:[%s1837_s10 + $0x60] sm:$0xff] }
  0x8a   : > { %844 = vrot.lane.b32.xlu1 %v351_v46, %s1727_s11  ;;  %782 = vrot.lane.b32.xlu0 %v747_v47, %s1726_s7  ;;  %v420_v46 = vsel %vm390_vm1, %v417_v20, %v419_v37  ;;  %v751_v47 = vrot.slane %v332_v9, 2  ;;  %v1082_v52 = vsel %vm1081_vm4, %v1065_v42, %v2002_v49  ;;  %v2085_v49 = vld [vmem:[%s1837_s10 + $0x68] sm:$0xff]  ;;  %v908_v4 = vrot.slane %v354_v2, 1 }
  0x8b   : > { %v996_v28 = vrot.slane %v354_v2, 2  ;;  %v668_v42 = vrot.slane %v335_v33, 1 }
  0x8c   : > { %v2009_v58 = vpop.permute.xlu1 %522  ;;  %v2011_v59 = vpop.permute.xlu0 %433  ;;  %v752_v50 = vsel %vm479_vm0, %v749_v29, %v751_v47 }
  0x8e   : > { %600 = vrot.lane.b32.xlu1 %v330_v53, %s1722_s28  ;;  %538 = vrot.lane.b32.xlu0 %v504_v56, %s1723_s29  ;;  %v508_v53 = vrot.slane %v311_v32, 2  ;;  %v1099_v56 = vsel %vm1098_vm5, %v1082_v52, %v1996_v45  ;;  %v911_v32 = vrot.slane %v356_v25, 1 }
  0x90   : > { %v2020_v0 = vpop.permute.xlu1 %435  ;;  %v2022_v1 = vpop.permute.xlu0 %680 }
  0x91   : > { %v1116_v61 = vsel %vm1115_vm6, %v1099_v56, %v2022_v1  ;;  %v909_v1 = vrot.slane %v2085_v49, 1 }
  0x92   : > { %940 = vrot.lane.b32.xlu1 %v905_v62, %s1728_s12  ;;  %846 = vrot.lane.b32.xlu0 %v352_v51, %s1727_s11  ;;  %v1066_v62 = vsel %vm1064_vm3, %v1796_v3, %v2011_v59  ;;  %v2101_v59 = vld [vmem:[%s1780_s24 + $0x80] sm:$0xff] }
  0x93   : > { %v1083_v9 = vsel %vm1081_vm4, %v1066_v62, %v2009_v58 }
  0x94   : > { %v769_v10 = vpop.permute.xlu1 %768  ;;  %v2029_v13 = vpop.permute.xlu0 %682  ;;  %v1100_v19 = vsel %vm1098_vm5, %v1083_v9, %v1994_v44  ;;  %v756_v9 = vrot.slane %v335_v33, 2 }
  0x95   : > { %v1133_v63 = vsel %vm1132_vm7, %v1116_v61, %v769_v10 }
  0x96   : > { %696 = vrot.lane.b32.xlu1 %v662_v6, %s1725_s6  ;;  %602 = vrot.lane.b32.xlu0 %v2014_v60, %s1722_s28  ;;  %v509_v6 = vsel %vm479_vm0, %v506_v36, %v508_v53  ;;  %v2131_v36 = vld [vmem:[%s1786_s27 + $0x90] sm:$0xff] }
  0x97   : > { %v421_v47 = vrot.slane %v2131_v36, 1 }
  0x98   : > { %v2044_v23 = vpop.permute.xlu1 %524  ;;  %v2046_v24 = vpop.permute.xlu0 %437 }
  0x9a   : > { %1028 = vrot.lane.b32.xlu1 %v993_v17, %s1729_s25  ;;  %942 = vrot.lane.b32.xlu0 %v907_v18, %s1728_s12  ;;  %v910_v17 = vsel %vm390_vm1, %v908_v4, %v909_v1  ;;  %v666_v18 = vrot.slane %v2101_v59, 1 }
  0x9c   : > { %v833_v30 = vpop.permute.xlu1 %832  ;;  %v2053_v31 = vpop.permute.xlu0 %770  ;;  %v667_v29 = vsel %vm390_vm1, %v665_v16, %v666_v18  ;;  %v669_v53 = vsel %vm390_vm1, %v666_v18, %v668_v42  ;;  %v1068_v42 = vsel %vm1064_vm3, %v1807_v12, %v2046_v24  ;;  %v359_v24 = vld [vmem:[%s1837_s10 + $0x88] sm:$0x3] }
  0x9d   : > { %v1150_v45 = vsel %vm1149_vm8, %v1133_v63, %v833_v30  ;;  %v997_v30 = vrot.slane %v2085_v49, 2  ;;  %v314_v63 = vld [vmem:[%s1786_s27 + $0xa0] sm:$0x3] }
  0x9e   : > { %698 = vrot.lane.b32.xlu1 %v664_v26, %s1725_s6  ;;  %451 = vrot.lane.b32.xlu0 %v418_v27, %s1724_s30  ;;  %v1117_v26 = vsel %vm1115_vm6, %v1100_v19, %v2029_v13  ;;  %v357_v19 = vld [vmem:[%s1837_s10 + $0x78] sm:$0xff] }
  0x9f   : > { %v1134_v27 = vsel %vm1132_vm7, %v1117_v26, %v2053_v31  ;;  %v2134_v31 = vld [vmem:[%s1786_s27 + $0x98] sm:$0xff]  ;;  %v513_v26 = vrot.slane %v314_v63, 2 }
  0xa0   : > { %v2062_v38 = vpop.permute.xlu1 %588  ;;  %v2064_v39 = vpop.permute.xlu0 %526 }
  0xa2   : > { %1030 = vrot.lane.b32.xlu1 %v995_v34, %s1729_s25  ;;  %784 = vrot.lane.b32.xlu0 %v750_v35, %s1726_s7 }
  0xa4   : > { %v929_v48 = vpop.permute.xlu1 %928  ;;  %v835_v51 = vpop.permute.xlu0 %834 }
  0xa5   : > { %v1167_v7 = vsel %vm1166_vm9, %v1150_v45, %v929_v48  ;;  %v1151_v44 = vsel %vm1149_vm8, %v1134_v27, %v835_v51  ;;  %v422_v48 = vrot.slane %v2134_v31, 1 }
  0xa6   : > { %540 = vrot.lane.b32.xlu1 %v507_v43, %s1723_s29  ;;  %453 = vrot.lane.b32.xlu0 %v420_v46, %s1724_s30  ;;  %v998_v43 = vsel %vm479_vm0, %v996_v28, %v997_v30  ;;  %v912_v46 = vsel %vm390_vm1, %v909_v1, %v911_v32  ;;  %v424_v1 = vrot.slane %v314_v63, 1  ;;  %v916_v63 = vrot.slane %v359_v24, 1 }
  0xa7   : > { %v423_v56 = vsel %vm390_vm1, %v421_v47, %v422_v48 }
  0xa8   : > { %v2080_v57 = vpop.permute.xlu1 %684  ;;  %v2082_v60 = vpop.permute.xlu0 %590 }
  0xaa   : > { %848 = vrot.lane.b32.xlu1 %v354_v2, %s1727_s11  ;;  %786 = vrot.lane.b32.xlu0 %v752_v50, %s1726_s7  ;;  %v999_v2 = vrot.slane %v356_v25, 2  ;;  %v753_v50 = vrot.slane %v333_v5, 2 }
  0xac   : > { %v1017_v8 = vpop.permute.xlu1 %1016  ;;  %v931_v3 = vpop.permute.xlu0 %930  ;;  %v1000_v45 = vsel %vm479_vm0, %v997_v30, %v999_v2  ;;  %v913_v30 = vrot.slane %v357_v19, 1 }
  0xad   : > { %v1184_v10 = vsel %vm1183_vm10, %v1167_v7, %v1017_v8  ;;  %v1168_v34 = vsel %vm1166_vm9, %v1151_v44, %v931_v3 }
  0xae   : > { %604 = vrot.lane.b32.xlu1 %v333_v5, %s1722_s28  ;;  %542 = vrot.lane.b32.xlu0 %v509_v6, %s1723_s29  ;;  %v510_v6 = vrot.slane %v2131_v36, 2  ;;  %v511_v5 = vrot.slane %v2134_v31, 2 }
  0xaf   : > { %1659 = vmatprep.mubr.msk.f32.mxu0 %vm1205_vm11, %v1184_v10 }
  0xb0   : > { %v2113_v20 = vpop.permute.xlu1 %686  ;;  %v2115_v58 = vpop.permute.xlu0 %439  ;;  %v512_v3 = vsel %vm479_vm0, %v510_v6, %v511_v5  ;;  %v514_v32 = vsel %vm479_vm0, %v511_v5, %v513_v26  ;;  %v2230_v5 = vld [vmem:[%s1786_s27 + $0xa8] sm:$0xff] }
  0xb2   : > { %944 = vrot.lane.b32.xlu1 %v910_v17, %s1728_s12  ;;  %850 = vrot.lane.b32.xlu0 %v2085_v49, %s1727_s11  ;;  %v754_v49 = vrot.slane %v2101_v59, 2  ;;  %v1067_v17 = vsel %vm1064_vm3, %v1804_v11, %v2020_v0  ;;  %v2185_v11 = vld [vmem:[%s1837_s10 + $0x80] sm:$0xff] }
  0xb3   : > { %v1084_v18 = vsel %vm1081_vm4, %v1067_v17, %v2044_v23  ;;  %v914_v33 = vrot.slane %v2185_v11, 1 }
  0xb4   : > { %v1019_v13 = vpop.permute.xlu1 %1018  ;;  %v773_v35 = vpop.permute.xlu0 %772  ;;  %v755_v4 = vsel %vm479_vm0, %v753_v50, %v754_v49  ;;  %v757_v25 = vsel %vm479_vm0, %v754_v49, %v756_v9  ;;  %v1101_v27 = vsel %vm1098_vm5, %v1084_v18, %v2062_v38  ;;  %v336_v38 = vld [vmem:[%s1780_s24 + $0x90] sm:$0xff] }
  0xb5   : > { %v1185_v37 = vsel %vm1183_vm10, %v1168_v34, %v1019_v13  ;;  %v1118_v0 = vsel %vm1115_vm6, %v1101_v27, %v2080_v57  ;;  %v2198_v57 = vld [vmem:[%s1780_s24 + $0x98] sm:$0xff]  ;;  %v915_v47 = vsel %vm390_vm1, %v913_v30, %v914_v33 }
  0xb6   : > { %700 = vrot.lane.b32.xlu1 %v667_v29, %s1725_s6  ;;  %606 = vrot.lane.b32.xlu0 %v2101_v59, %s1722_s28  ;;  %v425_v59 = vsel %vm390_vm1, %v422_v48, %v424_v1  ;;  %v1135_v29 = vsel %vm1132_vm7, %v1118_v0, %v773_v35  ;;  %v671_v48 = vrot.slane %v2198_v57, 1 }
  0xb7   : > { %1660 = vmatmul.mubr.msk.f32.vlgmr.msra.gmra.mrb[0].mxu0 %vm1205_vm11, %v1185_v37 }
  0xb8   : > { %v2145_v51 = vpop.permute.xlu1 %528  ;;  %v2147_v52 = vpop.permute.xlu0 %441 }
  0xba   : > { %1032 = vrot.lane.b32.xlu1 %v998_v43, %s1729_s25  ;;  %946 = vrot.lane.b32.xlu0 %v912_v46, %s1728_s12  ;;  %v1085_v43 = vsel %vm1081_vm4, %v1068_v42, %v2064_v39  ;;  %v670_v46 = vrot.slane %v336_v38, 1 }
  0xbb   : > { %v1102_v2 = vsel %vm1098_vm5, %v1085_v43, %v2082_v60  ;;  %v1002_v60 = vrot.slane %v2185_v11, 2 }
  0xbc   : > { %v837_v61 = vpop.permute.xlu1 %836  ;;  %v775_v62 = vpop.permute.xlu0 %774  ;;  %v1119_v39 = vsel %vm1115_vm6, %v1102_v2, %v2113_v20  ;;  %v338_v20 = vld [vmem:[%s1780_s24 + $0xa0] sm:$0x3]  ;;  %v360_v2 = vld [vmem:[%s1837_s10 + $0x90] sm:$0xff] }
  0xbd   : > { %v1152_v23 = vsel %vm1149_vm8, %v1135_v29, %v837_v61  ;;  %v672_v61 = vsel %vm390_vm1, %v670_v46, %v671_v48  ;;  %v673_v9 = vrot.slane %v338_v20, 1  ;;  %v761_v42 = vrot.slane %v338_v20, 2 }
  0xbe   : > { %702 = vrot.lane.b32.xlu1 %v669_v53, %s1725_s6  ;;  %455 = vrot.lane.b32.xlu0 %v423_v56, %s1724_s30  ;;  %v1136_v53 = vsel %vm1132_vm7, %v1119_v39, %v775_v62  ;;  %v1001_v56 = vrot.slane %v357_v19, 2  ;;  %v2233_v62 = vld [vmem:[%s1786_s27 + $0xb0] sm:$0xff] }
  0xbf   : > { %v674_v26 = vsel %vm390_vm1, %v671_v48, %v673_v9 }
  0xc0   : > { %v2161_v7 = vpop.permute.xlu1 %592  ;;  %v2163_v8 = vpop.permute.xlu0 %530 }
  0xc2   : > { %1034 = vrot.lane.b32.xlu1 %v1000_v45, %s1729_s25  ;;  %788 = vrot.lane.b32.xlu0 %v755_v4, %s1726_s7 }
  0xc4   : > { %v933_v10 = vpop.permute.xlu1 %932  ;;  %v839_v16 = vpop.permute.xlu0 %838 }
  0xc5   : > { %v1169_v34 = vsel %vm1166_vm9, %v1152_v23, %v933_v10  ;;  %v1153_v49 = vsel %vm1149_vm8, %v1136_v53, %v839_v16  ;;  %v426_v10 = vrot.slane %v2230_v5, 1  ;;  %v427_v16 = vrot.slane %v2233_v62, 1  ;;  %v317_v23 = vld [vmem:[%s1786_s27 + $0xb8] sm:$0x3] }
  0xc6   : > { %544 = vrot.lane.b32.xlu1 %v512_v3, %s1723_s29  ;;  %457 = vrot.lane.b32.xlu0 %v425_v59, %s1724_s30  ;;  %v1003_v3 = vsel %vm479_vm0, %v1001_v56, %v1002_v60  ;;  %v917_v59 = vsel %vm390_vm1, %v914_v33, %v916_v63  ;;  %v515_v33 = vrot.slane %v2230_v5, 2  ;;  %v518_v39 = vrot.slane %v317_v23, 2 }
  0xc7   : > { %v428_v27 = vsel %vm390_vm1, %v426_v10, %v427_v16 }
  0xc8   : > { %v2180_v28 = vpop.permute.xlu1 %688  ;;  %v2182_v44 = vpop.permute.xlu0 %594 }
  0xca   : > { %852 = vrot.lane.b32.xlu1 %v357_v19, %s1727_s11  ;;  %790 = vrot.lane.b32.xlu0 %v757_v25, %s1726_s7  ;;  %v1004_v19 = vrot.slane %v359_v24, 2  ;;  %v758_v25 = vrot.slane %v336_v38, 2 }
  0xcc   : > { %v1021_v13 = vpop.permute.xlu1 %1020  ;;  %v935_v37 = vpop.permute.xlu0 %934  ;;  %v1005_v30 = vsel %vm479_vm0, %v1002_v60, %v1004_v19 }
  0xcd   : > { %v1186_v35 = vsel %vm1183_vm10, %v1169_v34, %v1021_v13  ;;  %v1170_v45 = vsel %vm1166_vm9, %v1153_v49, %v935_v37  ;;  %v429_v34 = vrot.slane %v317_v23, 1 }
  0xce   : > { %608 = vrot.lane.b32.xlu1 %v336_v38, %s1722_s28  ;;  %546 = vrot.lane.b32.xlu0 %v514_v32, %s1723_s29  ;;  %v516_v38 = vrot.slane %v2233_v62, 2 }
  0xcf   : > { %1662 = vmatprep.mubr.msk.f32.mxu0 %vm1205_vm11, %v1186_v35  ;;  %v430_v35 = vsel %vm390_vm1, %v427_v16, %v429_v34 }
  0xd0   : > { %v2213_v50 = vpop.permute.xlu1 %690  ;;  %v2215_v12 = vpop.permute.xlu0 %443  ;;  %v519_v63 = vsel %vm479_vm0, %v516_v38, %v518_v39 }
  0xd2   : > { %948 = vrot.lane.b32.xlu1 %v915_v47, %s1728_s12  ;;  %854 = vrot.lane.b32.xlu0 %v2185_v11, %s1727_s11  ;;  %v759_v11 = vrot.slane %v2198_v57, 2  ;;  %v1069_v47 = vsel %vm1064_vm3, %v1861_v54, %v2115_v58  ;;  %v2284_v54 = vld [vmem:[%s1837_s10 + $0x98] sm:$0xff] }
  0xd3   : > { %v1086_v48 = vsel %vm1081_vm4, %v1069_v47, %v2145_v51 }
  0xd4   : > { %v1023_v4 = vpop.permute.xlu1 %1022  ;;  %v777_v6 = vpop.permute.xlu0 %776  ;;  %v760_v32 = vsel %vm479_vm0, %v758_v25, %v759_v11  ;;  %v762_v24 = vsel %vm479_vm0, %v759_v11, %v761_v42  ;;  %v1103_v53 = vsel %vm1098_vm5, %v1086_v48, %v2161_v7  ;;  %v339_v7 = vld [vmem:[%s1780_s24 + $0xa8] sm:$0xff] }
  0xd5   : > { %v1187_v1 = vsel %vm1183_vm10, %v1170_v45, %v1023_v4  ;;  %v1120_v58 = vsel %vm1115_vm6, %v1103_v53, %v2180_v28  ;;  %v919_v45 = vrot.slane %v2284_v54, 1  ;;  %v340_v28 = vld [vmem:[%s1780_s24 + $0xb0] sm:$0xff]  ;;  %v675_v9 = vrot.slane %v339_v7, 1 }
  0xd6   : > { %704 = vrot.lane.b32.xlu1 %v672_v61, %s1725_s6  ;;  %610 = vrot.lane.b32.xlu0 %v2198_v57, %s1722_s28  ;;  %v517_v57 = vsel %vm479_vm0, %v515_v33, %v516_v38  ;;  %v1137_v49 = vsel %vm1132_vm7, %v1120_v58, %v777_v6  ;;  %v918_v61 = vrot.slane %v360_v2, 1  ;;  %v676_v16 = vrot.slane %v340_v28, 1 }
  0xd7   : > { %1663 = vmatmul.mubr.msk.f32.gmra.mrb[2].mxu0 %vm1205_vm11, %v1187_v1  ;;  %v763_v38 = vrot.slane %v339_v7, 2 }
  0xd8   : > { %v2244_v17 = vpop.permute.xlu1 %532  ;;  %v2246_v18 = vpop.permute.xlu0 %445  ;;  %v920_v10 = vsel %vm390_vm1, %v918_v61, %v919_v45  ;;  %v364_v61 = vld [vmem:[%s1837_s10 + $0xb0] sm:$0xff] }
  0xda   : > { %1036 = vrot.lane.b32.xlu1 %v1003_v3, %s1729_s25  ;;  %950 = vrot.lane.b32.xlu0 %v917_v59, %s1728_s12  ;;  %v1070_v3 = vsel %vm1064_vm3, %v1864_v55, %v2147_v52  ;;  %v362_v52 = vld [vmem:[%s1837_s10 + $0xa0] sm:$0x3] }
  0xdb   : > { %v1087_v59 = vsel %vm1081_vm4, %v1070_v3, %v2163_v8  ;;  %v921_v23 = vrot.slane %v362_v52, 1  ;;  %v1012_v3 = vrot.slane %v364_v61, 2 }
  0xdc   : > { %v841_v0 = vpop.permute.xlu1 %840  ;;  %v779_v29 = vpop.permute.xlu0 %778  ;;  %v1104_v19 = vsel %vm1098_vm5, %v1087_v59, %v2182_v44  ;;  %v677_v44 = vsel %vm390_vm1, %v675_v9, %v676_v16 }
  0xdd   : > { %v1154_v51 = vsel %vm1149_vm8, %v1137_v49, %v841_v0  ;;  %v1007_v0 = vrot.slane %v2284_v54, 2 }
  0xde   : > { %706 = vrot.lane.b32.xlu1 %v674_v26, %s1725_s6  ;;  %459 = vrot.lane.b32.xlu0 %v428_v27, %s1724_s30  ;;  %v1121_v26 = vsel %vm1115_vm6, %v1104_v19, %v2213_v50  ;;  %v1006_v27 = vrot.slane %v360_v2, 2  ;;  %v341_v50 = vld [vmem:[%s1780_s24 + $0xb8] sm:$0x3]  ;;  %s1627_s24 = sshll.u32 %s2509_s20, 4  ;;  %s1607_s20 = sshll.u32 %s2511_s19, 1 }
  0xdf   : > { %v1138_v8 = vsel %vm1132_vm7, %v1121_v26, %v779_v29  ;;  %v678_v42 = vrot.slane %v341_v50, 1 }
  0xe0   : > { %v2260_v13 = vpop.permute.xlu1 %596  ;;  %v2262_v37 = vpop.permute.xlu0 %534  ;;  %v1008_v34 = vsel %vm479_vm0, %v1006_v27, %v1007_v0 }
  0xe1   : > { %v679_v48 = vsel %vm390_vm1, %v676_v16, %v678_v42 }
  0xe2   : > { %1038 = vrot.lane.b32.xlu1 %v1005_v30, %s1729_s25  ;;  %792 = vrot.lane.b32.xlu0 %v760_v32, %s1726_s7 }
  0xe4   : > { %v937_v43 = vpop.permute.xlu1 %936  ;;  %v843_v46 = vpop.permute.xlu0 %842 }
  0xe5   : > { %v1171_v4 = vsel %vm1166_vm9, %v1154_v51, %v937_v43  ;;  %v1155_v11 = vsel %vm1149_vm8, %v1138_v8, %v843_v46 }
  0xe6   : > { %548 = vrot.lane.b32.xlu1 %v517_v57, %s1723_s29  ;;  %461 = vrot.lane.b32.xlu0 %v430_v35, %s1724_s30  ;;  %v922_v57 = vsel %vm390_vm1, %v919_v45, %v921_v23  ;;  %v764_v35 = vrot.slane %v340_v28, 2  ;;  %v924_v45 = vrot.slane %v364_v61, 1 }
  0xe8   : > { %v2279_v56 = vpop.permute.xlu1 %692  ;;  %v2281_v60 = vpop.permute.xlu0 %598  ;;  %v765_v47 = vsel %vm479_vm0, %v763_v38, %v764_v35 }
  0xea   : > { %856 = vrot.lane.b32.xlu1 %v360_v2, %s1727_s11  ;;  %794 = vrot.lane.b32.xlu0 %v762_v24, %s1726_s7  ;;  %v766_v2 = vrot.slane %v341_v50, 2  ;;  %v1009_v24 = vrot.slane %v362_v52, 2 }
  0xec   : > { %v1025_v20 = vpop.permute.xlu1 %1024  ;;  %v939_v1 = vpop.permute.xlu0 %938  ;;  %v1010_v58 = vsel %vm479_vm0, %v1007_v0, %v1009_v24 }
  0xed   : > { %v1188_v6 = vsel %vm1183_vm10, %v1171_v4, %v1025_v20  ;;  %v1172_v30 = vsel %vm1166_vm9, %v1155_v11, %v939_v1 }
  0xee   : > { %612 = vrot.lane.b32.xlu1 %v339_v7, %s1722_s28  ;;  %550 = vrot.lane.b32.xlu0 %v519_v63, %s1723_s29  ;;  %v363_v7 = vld [vmem:[%s1837_s10 + $0xa8] sm:$0xff]  ;;  %v365_v63 = vld [vmem:[%s1837_s10 + $0xb8] sm:$0x3]  ;;  %s2476_s29 = scalar_lea.vmem %s2506_s4, %s1627_s24 }
  0xef   : > { %1665 = vmatprep.mubr.msk.f32.mxu0 %vm1205_vm11, %v1188_v6  ;;  %v923_v4 = vrot.slane %v363_v7, 1  ;;  %v926_v20 = vrot.slane %v365_v63, 1  ;;  %v1071_v6 = vsel %vm1064_vm3, %v1923_v40, %v2215_v12  ;;  %v1011_v59 = vrot.slane %v363_v7, 2 }
  0xf0   : > { %v2309_v25 = vpop.permute.xlu1 %694  ;;  %v2311_v55 = vpop.permute.xlu0 %447  ;;  %v1088_v9 = vsel %vm1081_vm4, %v1071_v6, %v2244_v17  ;;  %v1014_v19 = vrot.slane %v365_v63, 2 }
  0xf1   : > { %v925_v16 = vsel %vm390_vm1, %v923_v4, %v924_v45  ;;  %v1105_v52 = vsel %vm1098_vm5, %v1088_v9, %v2260_v13  ;;  %v1013_v11 = vsel %vm479_vm0, %v1011_v59, %v1012_v3 }
  0xf2   : > { %952 = vrot.lane.b32.xlu1 %v920_v10, %s1728_s12  ;;  %858 = vrot.lane.b32.xlu0 %v2284_v54, %s1727_s11  ;;  %v767_v54 = vsel %vm479_vm0, %v764_v35, %v766_v2  ;;  %v927_v10 = vsel %vm390_vm1, %v924_v45, %v926_v20  ;;  %v1122_v40 = vsel %vm1115_vm6, %v1105_v52, %v2279_v56 }
  0xf3   : > { %v1015_v27 = vsel %vm479_vm0, %v1012_v3, %v1014_v19  ;;  %v1072_v56 = vsel %vm1064_vm3, %v1926_v41, %v2246_v18 }
  0xf4   : > { %v1027_v32 = vpop.permute.xlu1 %1026  ;;  %v781_v33 = vpop.permute.xlu0 %780 }
  0xf5   : > { %v1189_v29 = vsel %vm1183_vm10, %v1172_v30, %v1027_v32  ;;  %v1139_v12 = vsel %vm1132_vm7, %v1122_v40, %v781_v33  ;;  %v1089_v30 = vsel %vm1081_vm4, %v1072_v56, %v2262_v37 }
  0xf6   : > { %708 = vrot.lane.b32.xlu1 %v677_v44, %s1725_s6  ;;  %614 = vrot.lane.b32.xlu0 %v340_v28, %s1722_s28  ;;  %v1106_v32 = vsel %vm1098_vm5, %v1089_v30, %v2281_v60 }
  0xf7   : > { %1666 = vmatmul.mubr.msk.f32.gmra.mrb[4].mxu0 %vm1205_vm11, %v1189_v29  ;;  %v1123_v29 = vsel %vm1115_vm6, %v1106_v32, %v2309_v25 }
  0xf8   : > { %v2331_v43 = vpop.permute.xlu1 %536  ;;  %v2333_v46 = vpop.permute.xlu0 %449 }
  0xfa   : > { %1040 = vrot.lane.b32.xlu1 %v1008_v34, %s1729_s25  ;;  %954 = vrot.lane.b32.xlu0 %v922_v57, %s1728_s12 }
  0xfc   : > { %v845_v39 = vpop.permute.xlu1 %844  ;;  %v783_v53 = vpop.permute.xlu0 %782 }
  0xfd   : > { %v1156_v17 = vsel %vm1149_vm8, %v1139_v12, %v845_v39  ;;  %v1140_v38 = vsel %vm1132_vm7, %v1123_v29, %v783_v53  ;;  %v1073_v39 = vsel %vm1064_vm3, %v1968_v21, %v2311_v55  ;;  %v1074_v21 = vsel %vm1064_vm3, %v1971_v22, %v2333_v46 }
  0xfe   : > { %796 = vrot.lane.b32.xlu1 %v765_v47, %s1726_s7  ;;  %710 = vrot.lane.b32.xlu0 %v679_v48, %s1725_s6  ;;  %v1090_v53 = vsel %vm1081_vm4, %v1073_v39, %v2331_v43 }
 0x100   : > { %v601_v49 = vpop.permute.xlu1 %600  ;;  %v2343_v51 = vpop.permute.xlu0 %538 }
 0x101   : > { %v1091_v55 = vsel %vm1081_vm4, %v1074_v21, %v2343_v51 }
 0x102   : > { %798 = vrot.lane.b32.xlu1 %v767_v54, %s1726_s7  ;;  %1042 = vrot.lane.b32.xlu0 %v1010_v58, %s1729_s25  ;;  %v1107_v54 = vsel %vm1098_vm5, %v1090_v53, %v601_v49  ;;  %s293_s7 = scalar_lea.vmem %s2507_s5, %s1607_s20 }
 0x104   : > { %v941_v1 = vpop.permute.xlu1 %940  ;;  %v847_v28 = vpop.permute.xlu0 %846 }
 0x105   : > { %v1173_v44 = vsel %vm1166_vm9, %v1156_v17, %v941_v1  ;;  %v1157_v41 = vsel %vm1149_vm8, %v1140_v38, %v847_v28 }
 0x106   : > { %862 = vrot.lane.b32.xlu1 %v364_v61, %s1727_s11  ;;  %860 = vrot.lane.b32.xlu0 %v363_v7, %s1727_s11 }
 0x108   : > { %v697_v26 = vpop.permute.xlu1 %696  ;;  %v603_v8 = vpop.permute.xlu0 %602 }
 0x109   : > { %v1124_v7 = vsel %vm1115_vm6, %v1107_v54, %v697_v26  ;;  %v1108_v43 = vsel %vm1098_vm5, %v1091_v55, %v603_v8 }
 0x10a   : > { %958 = vrot.lane.b32.xlu1 %v927_v10, %s1728_s12  ;;  %956 = vrot.lane.b32.xlu0 %v925_v16, %s1728_s12 }
 0x10c   : > { %v1029_v13 = vpop.permute.xlu1 %1028  ;;  %v943_v0 = vpop.permute.xlu0 %942 }
 0x10d   : > { %v1190_v23 = vsel %vm1183_vm10, %v1173_v44, %v1029_v13  ;;  %v1174_v18 = vsel %vm1166_vm9, %v1157_v41, %v943_v0 }
 0x10e   : > { %1046 = vrot.lane.b32.xlu1 %v1015_v27, %s1729_s25  ;;  %1044 = vrot.lane.b32.xlu0 %v1013_v11, %s1729_s25 }
 0x10f   : > { %1668 = vmatprep.mubr.msk.f32.mxu0 %vm1205_vm11, %v1190_v23 }
 0x110   : > { %v699_v33 = vpop.permute.xlu1 %698  ;;  %v452_v50 = vpop.permute.xlu0 %451 }
 0x111   : > { %v1125_v3 = vsel %vm1115_vm6, %v1108_v43, %v699_v33  ;;  %v1075_v27 = vsel %vm1064_vm3, %v2032_v14, %v452_v50 }
 0x114   : > { %v1031_v34 = vpop.permute.xlu1 %1030  ;;  %v785_v57 = vpop.permute.xlu0 %784 }
 0x115   : > { %v1191_v37 = vsel %vm1183_vm10, %v1174_v18, %v1031_v34  ;;  %v1141_v63 = vsel %vm1132_vm7, %v1124_v7, %v785_v57 }
 0x116   : > { %1669 = vmatmul.mubr.msk.f32.gmra.mrb[6].mxu0 %vm1205_vm11, %v1191_v37 }
 0x118   : > { %v541_v35 = vpop.permute.xlu1 %540  ;;  %v454_v42 = vpop.permute.xlu0 %453 }
 0x119   : > { %v1092_v11 = vsel %vm1081_vm4, %v1075_v27, %v541_v35  ;;  %v1076_v14 = vsel %vm1064_vm3, %v2035_v15, %v454_v42 }
 0x11c   : > { %v849_v60 = vpop.permute.xlu1 %848  ;;  %v787_v47 = vpop.permute.xlu0 %786 }
 0x11d   : > { %v1158_v45 = vsel %vm1149_vm8, %v1141_v63, %v849_v60  ;;  %v1142_v59 = vsel %vm1132_vm7, %v1125_v3, %v787_v47 }
 0x120   : > { %v605_v48 = vpop.permute.xlu1 %604  ;;  %v543_v2 = vpop.permute.xlu0 %542 }
 0x121   : > { %v1109_v44 = vsel %vm1098_vm5, %v1092_v11, %v605_v48  ;;  %v1093_v50 = vsel %vm1081_vm4, %v1076_v14, %v543_v2 }
 0x124   : > { %v945_v24 = vpop.permute.xlu1 %944  ;;  %v851_v25 = vpop.permute.xlu0 %850 }
 0x125   : > { %v1175_v4 = vsel %vm1166_vm9, %v1158_v45, %v945_v24  ;;  %v1159_v9 = vsel %vm1149_vm8, %v1142_v59, %v851_v25 }
 0x128   : > { %v701_v58 = vpop.permute.xlu1 %700  ;;  %v607_v61 = vpop.permute.xlu0 %606 }
 0x129   : > { %v1126_v23 = vsel %vm1115_vm6, %v1109_v44, %v701_v58  ;;  %v1110_v41 = vsel %vm1098_vm5, %v1093_v50, %v607_v61 }
 0x12c   : > { %v1033_v20 = vpop.permute.xlu1 %1032  ;;  %v947_v1 = vpop.permute.xlu0 %946 }
 0x12d   : > { %v1192_v28 = vsel %vm1183_vm10, %v1175_v4, %v1033_v20  ;;  %v1176_v10 = vsel %vm1166_vm9, %v1159_v9, %v947_v1 }
 0x12e   : > { %1671 = vmatprep.mubr.msk.f32.mxu1 %vm1205_vm11, %v1192_v28 }
 0x130   : > { %v703_v49 = vpop.permute.xlu1 %702  ;;  %v456_v6 = vpop.permute.xlu0 %455 }
 0x131   : > { %v1127_v57 = vsel %vm1115_vm6, %v1110_v41, %v703_v49  ;;  %v1077_v61 = vsel %vm1064_vm3, %v2131_v36, %v456_v6 }
 0x134   : > { %v1035_v16 = vpop.permute.xlu1 %1034  ;;  %v789_v19 = vpop.permute.xlu0 %788 }
 0x135   : > { %v1193_v22 = vsel %vm1183_vm10, %v1176_v10, %v1035_v16  ;;  %v1143_v56 = vsel %vm1132_vm7, %v1126_v23, %v789_v19 }
 0x136   : > { %1672 = vmatmul.mubr.msk.f32.vlgmr.msra.gmra.mrb[0].mxu1 %vm1205_vm11, %v1193_v22 }
 0x138   : > { %v545_v46 = vpop.permute.xlu1 %544  ;;  %v458_v51 = vpop.permute.xlu0 %457 }
 0x139   : > { %v1094_v7 = vsel %vm1081_vm4, %v1077_v61, %v545_v46  ;;  %v1078_v36 = vsel %vm1064_vm3, %v2134_v31, %v458_v51 }
 0x13c   : > { %v853_v52 = vpop.permute.xlu1 %852  ;;  %v791_v26 = vpop.permute.xlu0 %790 }
 0x13d   : > { %v1160_v30 = vsel %vm1149_vm8, %v1143_v56, %v853_v52  ;;  %v1144_v37 = vsel %vm1132_vm7, %v1127_v57, %v791_v26 }
 0x140   : > { %v609_v8 = vpop.permute.xlu1 %608  ;;  %v547_v40 = vpop.permute.xlu0 %546 }
 0x141   : > { %v1111_v63 = vsel %vm1098_vm5, %v1094_v7, %v609_v8  ;;  %v1095_v6 = vsel %vm1081_vm4, %v1078_v36, %v547_v40 }
 0x144   : > { %v949_v12 = vpop.permute.xlu1 %948  ;;  %v855_v17 = vpop.permute.xlu0 %854 }
 0x145   : > { %v1177_v32 = vsel %vm1166_vm9, %v1160_v30, %v949_v12  ;;  %v1161_v35 = vsel %vm1149_vm8, %v1144_v37, %v855_v17 }
 0x148   : > { %v705_v13 = vpop.permute.xlu1 %704  ;;  %v611_v0 = vpop.permute.xlu0 %610 }
 0x149   : > { %v1128_v20 = vsel %vm1115_vm6, %v1111_v63, %v705_v13  ;;  %v1112_v3 = vsel %vm1098_vm5, %v1095_v6, %v611_v0 }
 0x14c   : > { %v1037_v33 = vpop.permute.xlu1 %1036  ;;  %v951_v29 = vpop.permute.xlu0 %950 }
 0x14d   : > { %v1194_v38 = vsel %vm1183_vm10, %v1177_v32, %v1037_v33  ;;  %v1178_v60 = vsel %vm1166_vm9, %v1161_v35, %v951_v29 }
 0x14e   : > { %1674 = vmatprep.mubr.msk.f32.mxu1 %vm1205_vm11, %v1194_v38 }
 0x150   : > { %v707_v18 = vpop.permute.xlu1 %706  ;;  %v460_v34 = vpop.permute.xlu0 %459 }
 0x151   : > { %v1129_v10 = vsel %vm1115_vm6, %v1112_v3, %v707_v18  ;;  %v1079_v8 = vsel %vm1064_vm3, %v2230_v5, %v460_v34 }
 0x154   : > { %v1039_v47 = vpop.permute.xlu1 %1038  ;;  %v793_v48 = vpop.permute.xlu0 %792 }
 0x155   : > { %v1195_v15 = vsel %vm1183_vm10, %v1178_v60, %v1039_v47  ;;  %v1145_v1 = vsel %vm1132_vm7, %v1128_v20, %v793_v48 }
 0x156   : > { %1675 = vmatmul.mubr.msk.f32.gmra.mrb[2].mxu1 %vm1205_vm11, %v1195_v15 }
 0x158   : > { %v549_v42 = vpop.permute.xlu1 %548  ;;  %v462_v2 = vpop.permute.xlu0 %461 }
 0x159   : > { %v1080_v40 = vsel %vm1064_vm3, %v2233_v62, %v462_v2  ;;  %v1096_v12 = vsel %vm1081_vm4, %v1079_v8, %v549_v42 }
 0x15c   : > { %v857_v24 = vpop.permute.xlu1 %856  ;;  %v795_v25 = vpop.permute.xlu0 %794 }
 0x15d   : > { %v1162_v28 = vsel %vm1149_vm8, %v1145_v1, %v857_v24  ;;  %v1146_v16 = vsel %vm1132_vm7, %v1129_v10, %v795_v25 }
 0x160   : > { %v613_v39 = vpop.permute.xlu1 %612  ;;  %v551_v53 = vpop.permute.xlu0 %550 }
 0x161   : > { %v1097_v17 = vsel %vm1081_vm4, %v1080_v40, %v551_v53  ;;  %v1113_v27 = vsel %vm1098_vm5, %v1096_v12, %v613_v39 }
 0x164   : > { %v953_v54 = vpop.permute.xlu1 %952  ;;  %v859_v58 = vpop.permute.xlu0 %858 }
 0x165   : > { %v1179_v21 = vsel %vm1166_vm9, %v1162_v28, %v953_v54  ;;  %v1163_v19 = vsel %vm1149_vm8, %v1146_v16, %v859_v58 }
 0x168   : > { %v709_v45 = vpop.permute.xlu1 %708  ;;  %v615_v4 = vpop.permute.xlu0 %614 }
 0x169   : > { %v1114_v11 = vsel %vm1098_vm5, %v1097_v17, %v615_v4  ;;  %v1130_v0 = vsel %vm1115_vm6, %v1113_v27, %v709_v45 }
 0x16c   : > { %v1041_v55 = vpop.permute.xlu1 %1040  ;;  %v955_v43 = vpop.permute.xlu0 %954 }
 0x16d   : > { %v1196_v49 = vsel %vm1183_vm10, %v1179_v21, %v1041_v55  ;;  %v1180_v22 = vsel %vm1166_vm9, %v1163_v19, %v955_v43 }
 0x16e   : > { %1677 = vmatprep.mubr.msk.f32.mxu1 %vm1205_vm11, %v1196_v49 }
 0x170   : > { %v797_v59 = vpop.permute.xlu1 %796  ;;  %v711_v9 = vpop.permute.xlu0 %710 }
 0x171   : > { %v1131_v23 = vsel %vm1115_vm6, %v1114_v11, %v711_v9  ;;  %v1147_v5 = vsel %vm1132_vm7, %v1130_v0, %v797_v59 }
 0x174   : > { %v799_v46 = vpop.permute.xlu1 %798  ;;  %v1043_v52 = vpop.permute.xlu0 %1042 }
 0x175   : > { %v1197_v31 = vsel %vm1183_vm10, %v1180_v22, %v1043_v52  ;;  %v1148_v56 = vsel %vm1132_vm7, %v1131_v23, %v799_v46 }
 0x176   : > { %1678 = vmatmul.mubr.msk.f32.gmra.mrb[4].mxu1 %vm1205_vm11, %v1197_v31 }
 0x178   : > { %v863_v51 = vpop.permute.xlu1 %862  ;;  %v861_v26 = vpop.permute.xlu0 %860 }
 0x179   : > { %v1165_v62 = vsel %vm1149_vm8, %v1148_v56, %v863_v51  ;;  %v1164_v30 = vsel %vm1149_vm8, %v1147_v5, %v861_v26 }
 0x17c   : > { %v959_v44 = vpop.permute.xlu1 %958  ;;  %v957_v13 = vpop.permute.xlu0 %956 }
 0x17d   : > { %v1182_v32 = vsel %vm1166_vm9, %v1165_v62, %v959_v44  ;;  %v1181_v33 = vsel %vm1166_vm9, %v1164_v30, %v957_v13 }
 0x180   : > { %v1047_v29 = vpop.permute.xlu1 %1046  ;;  %v1045_v38 = vpop.permute.xlu0 %1044 }
 0x181   : > { %v1199_v14 = vsel %vm1183_vm10, %v1182_v32, %v1047_v29  ;;  %v1198_v50 = vsel %vm1183_vm10, %v1181_v33, %v1045_v38 }
 0x182   : > { %1680 = vmatprep.mubr.msk.f32.mxu1 %vm1205_vm11, %v1198_v50 }
 0x183   : > { %1681 = vmatmul.mubr.msk.f32.gmra.mrb[6].mxu1 %vm1205_vm11, %v1199_v14 }
 0x18a   : > { %v1661_v41 = vpop.f32.mrb[0].mxu0 }
 0x18b   : > { %1404 = vst [vmem:[%s2476_s29 + $0x8] sm:$0xff] %v1661_v41  ;;  %v1441_v18 = vmul.f32 %v1661_v41, %v1661_v41  ;;  %v1324_v34 = vpop.f32.mrb[1].mxu0 }
 0x18c   : > { %1403 = vst [vmem:[%s2476_s29] sm:$0xff] %v1324_v34  ;;  %v1419_v57 = vadd.f32 %v1661_v41, %v1324_v34  ;;  %v1440_v37 = vmul.f32 %v1324_v34, %v1324_v34 }
 0x18e   : > { %v1456_v35 = vadd.f32 %v1441_v18, %v1440_v37 }
 0x1aa   : > { %v1664_v60 = vpop.f32.mrb[2].mxu0 }
 0x1ab   : > { %1406 = vst [vmem:[%s2476_s29 + $0x18] sm:$0xff] %v1664_v60  ;;  %v1334_v47 = vpop.f32.mrb[3].mxu0  ;;  %v1443_v42 = vmul.f32 %v1664_v60, %v1664_v60 }
 0x1ac   : > { %1405 = vst [vmem:[%s2476_s29 + $0x10] sm:$0xff] %v1334_v47  ;;  %v1420_v48 = vadd.f32 %v1419_v57, %v1334_v47  ;;  %v1442_v15 = vmul.f32 %v1334_v47, %v1334_v47 }
 0x1ae   : > { %v1457_v2 = vadd.f32 %v1456_v35, %v1442_v15  ;;  %v1421_v24 = vadd.f32 %v1664_v60, %v1420_v48 }
 0x1b0   : > { %v1458_v25 = vadd.f32 %v1457_v2, %v1443_v42 }
 0x1ca   : > { %v1667_v39 = vpop.f32.mrb[4].mxu0 }
 0x1cb   : > { %1408 = vst [vmem:[%s2476_s29 + $0x28] sm:$0xff] %v1667_v39  ;;  %v1344_v53 = vpop.f32.mrb[5].mxu0  ;;  %v1445_v61 = vmul.f32 %v1667_v39, %v1667_v39 }
 0x1cc   : > { %1407 = vst [vmem:[%s2476_s29 + $0x20] sm:$0xff] %v1344_v53  ;;  %v1422_v54 = vadd.f32 %v1421_v24, %v1344_v53  ;;  %v1444_v58 = vmul.f32 %v1344_v53, %v1344_v53 }
 0x1ce   : > { %v1459_v7 = vadd.f32 %v1458_v25, %v1444_v58  ;;  %v1423_v63 = vadd.f32 %v1667_v39, %v1422_v54 }
 0x1d0   : > { %v1460_v45 = vadd.f32 %v1459_v7, %v1445_v61 }
 0x1e9   : > { %v1670_v4 = vpop.f32.mrb[6].mxu0 }
 0x1ea   : > { %1410 = vst [vmem:[%s2476_s29 + $0x38] sm:$0xff] %v1670_v4  ;;  %v1354_v20 = vpop.f32.mrb[7].mxu0  ;;  %v1447_v21 = vmul.f32 %v1670_v4, %v1670_v4 }
 0x1eb   : > { %1409 = vst [vmem:[%s2476_s29 + $0x30] sm:$0xff] %v1354_v20  ;;  %v1424_v1 = vadd.f32 %v1423_v63, %v1354_v20  ;;  %v1446_v28 = vmul.f32 %v1354_v20, %v1354_v20 }
 0x1ed   : > { %v1425_v55 = vadd.f32 %v1670_v4, %v1424_v1  ;;  %v1461_v43 = vadd.f32 %v1460_v45, %v1446_v28 }
 0x1ef   : > { %v1462_v49 = vadd.f32 %v1461_v43, %v1447_v21 }
 0x209   : > { %v1673_v36 = vpop.f32.mrb[0].mxu1 }
 0x20a   : > { %1412 = vst [vmem:[%s2476_s29 + $0x48] sm:$0xff] %v1673_v36  ;;  %v1364_v6 = vpop.f32.mrb[1].mxu1  ;;  %v1449_v9 = vmul.f32 %v1673_v36, %v1673_v36 }
 0x20b   : > { %1411 = vst [vmem:[%s2476_s29 + $0x40] sm:$0xff] %v1364_v6  ;;  %v1426_v3 = vadd.f32 %v1425_v55, %v1364_v6  ;;  %v1448_v59 = vmul.f32 %v1364_v6, %v1364_v6 }
 0x20d   : > { %v1463_v10 = vadd.f32 %v1462_v49, %v1448_v59  ;;  %v1427_v16 = vadd.f32 %v1673_v36, %v1426_v3 }
 0x20f   : > { %v1464_v19 = vadd.f32 %v1463_v10, %v1449_v9 }
 0x229   : > { %v1676_v22 = vpop.f32.mrb[2].mxu1 }
 0x22a   : > { %1414 = vst [vmem:[%s2476_s29 + $0x58] sm:$0xff] %v1676_v22  ;;  %v1374_v46 = vpop.f32.mrb[3].mxu1  ;;  %v1451_v51 = vmul.f32 %v1676_v22, %v1676_v22 }
 0x22b   : > { %1413 = vst [vmem:[%s2476_s29 + $0x50] sm:$0xff] %v1374_v46  ;;  %v1428_v52 = vadd.f32 %v1427_v16, %v1374_v46  ;;  %v1450_v31 = vmul.f32 %v1374_v46, %v1374_v46 }
 0x22d   : > { %v1465_v26 = vadd.f32 %v1464_v19, %v1450_v31  ;;  %v1429_v8 = vadd.f32 %v1676_v22, %v1428_v52 }
 0x22f   : > { %v1466_v40 = vadd.f32 %v1465_v26, %v1451_v51 }
 0x249   : > { %v1679_v12 = vpop.f32.mrb[4].mxu1 }
 0x24a   : > { %1416 = vst [vmem:[%s2476_s29 + $0x68] sm:$0xff] %v1679_v12  ;;  %v1384_v17 = vpop.f32.mrb[5].mxu1  ;;  %v1453_v44 = vmul.f32 %v1679_v12, %v1679_v12 }
 0x24b   : > { %1415 = vst [vmem:[%s2476_s29 + $0x60] sm:$0xff] %v1384_v17  ;;  %v1430_v27 = vadd.f32 %v1429_v8, %v1384_v17  ;;  %v1452_v11 = vmul.f32 %v1384_v17, %v1384_v17 }
 0x24d   : > { %v1467_v13 = vadd.f32 %v1466_v40, %v1452_v11  ;;  %v1431_v0 = vadd.f32 %v1679_v12, %v1430_v27 }
 0x24f   : > { %v1468_v23 = vadd.f32 %v1467_v13, %v1453_v44 }
 0x256   : > { %v1682_v5 = vpop.f32.mrb[6].mxu1 }
 0x257   : > { %1418 = vst [vmem:[%s2476_s29 + $0x78] sm:$0xff] %v1682_v5  ;;  %v1394_v56 = vpop.f32.mrb[7].mxu1  ;;  %v1455_v32 = vmul.f32 %v1682_v5, %v1682_v5 }
 0x258   : > { %1417 = vst [vmem:[%s2476_s29 + $0x70] sm:$0xff] %v1394_v56  ;;  %v1432_v62 = vadd.f32 %v1431_v0, %v1394_v56  ;;  %v1454_v30 = vmul.f32 %v1394_v56, %v1394_v56 }
 0x25a   : > { %v1433_v33 = vadd.f32 %v1682_v5, %v1432_v62  ;;  %v1469_v29 = vadd.f32 %v1468_v23, %v1454_v30 }
 0x25c   : > { %v1434_v38 = vrot.slane %v1433_v33, 4  ;;  %v1470_v14 = vadd.f32 %v1469_v29, %v1455_v32 }
 0x25e   : > { %v1435_v50 = vadd.f32 %v1434_v38, %v1433_v33  ;;  %v1471_v41 = vrot.slane %v1470_v14, 4 }
 0x260   : > { %v1436_v18 = vrot.slane %v1435_v50, 2  ;;  %v1472_v34 = vadd.f32 %v1471_v41, %v1470_v14 }
 0x262   : > { %v1437_v57 = vadd.f32 %v1436_v18, %v1435_v50  ;;  %v1473_v37 = vrot.slane %v1472_v34, 2 }
 0x264   : > { %v1438_v35 = vrot.slane %v1437_v57, 1  ;;  %v1474_v60 = vadd.f32 %v1473_v37, %v1472_v34 }
 0x266   : > { %v1475_v47 = vrot.slane %v1474_v60, 1  ;;  %v1439_v48 = vadd.f32 %v1438_v35, %v1437_v57 }
 0x268   : > { %v1476_v15 = vadd.f32 %v1475_v47, %v1474_v60 }
 0x26a   : > { %v1478_v42 = vsel %vm1477_vm12, %v1439_v48, %v1476_v15 }
 0x26b   : > { %1479 = vst [vmem:[%s293_s7] sm:$0x3] %v1478_v42 }
 0x26c PF: > { %s16_s18 = sadd.s32 1, %s1720_s18  }
 0x26d   : > { %p13_p5 = scmp.ge.s32.totalorder %s16_s18, 6  }
 0x26f   :  { %15 = sbr.rel (!%p13_p5) target bundleno = 1 (0x1), region = 84 }

// kernel: unet_down.6
= control target key start
LH: loop header
LB: loop body
LE: loop exit
PB: predicated region body
PF: predicated region fallthrough
CT: control target
= control target key end

     0   :  { %s1783_s18 = smov 0   ;;  %s2551_s0 = inlined_call_operand.vmem [shape: f32[32,18,8], index: 0, kind: input, shape index: {}]   ;;  %s2552_s1 = inlined_call_operand.vmem [shape: f32[32,18,8], index: 1, kind: input, shape index: {}]   ;;  %s2553_s2 = inlined_call_operand.vmem [shape: f32[32,18,8], index: 2, kind: input, shape index: {}]   ;;  %s2554_s3 = inlined_call_operand.vmem [shape: f32[72,128], index: 3, kind: input, shape index: {}]   ;;  %s2555_s4 = inlined_call_operand.vmem [shape: f32[32,16,128], index: 4, kind: output, shape index: {0}]   ;;  %s2556_s5 = inlined_call_operand.vmem [shape: f32[4,2,128], index: 5, kind: output, shape index: {1}]  }
   0x1 LB: > { %s1789_s19 = sadd.s32 4294967295, %s1743_s18   ;;  %p1597_p0 = scmp.ge.s32.totalorder %s1743_s18, 1  ;;  %s1743_s18 = sphi %s1783_s18, %s16_s18  }
   0x2   : > { %p216_p1 = scmp.lt.s32.totalorder %s1743_s18, 5 }
   0x4   : > { %p217_p2 = pnand %p1597_p0, %p216_p1 }
   0x5   : > { %s1598_s20 = sshll.u32 (!%p217_p2), %s1789_s19, 3  ;;  %s1745_s28 = smov (!%p217_p2), 24   ;;  %vm479_vm0 = vcmask (!%p217_p2), 1045504   ;;  %vm390_vm1 = vcmask (!%p217_p2), 1046528   ;;  %v1200_v49 = vld [vmem:[%s2554_s3] sm:$0xff] (!%p217_p2)  ;;  %v1201_v50 = vld [vmem:[%s2554_s3 + $0x8] sm:$0xff] (!%p217_p2) }
   0x6   : > { %220 = sbr.rel (%p217_p2) target bundleno = 620 (0x26c), region = 36  ;;  %p263_p3 = scmp.lt.s32.totalorder (!%p217_p2), %s1598_s20, 31  ;;  %v1202_v58 = vld [vmem:[%s2554_s3 + $0x10] sm:$0xff] (!%p217_p2)  ;;  %v1203_v59 = vld [vmem:[%s2554_s3 + $0x18] sm:$0xff] (!%p217_p2)  ;;  %v1694_v60 = vpack.c.bf16 (!%p217_p2), %v1201_v50, %v1200_v49  ;;  %v1204_v63 = vld [vmem:[%s2554_s3 + $0x20] sm:$0xff] (!%p217_p2)  ;;  %vm1064_vm2 = vcmask (!%p217_p2), 64512  }
   0x7   : > { %s1746_s29 = smov (!%p217_p2), 16   ;;  %s1747_s30 = smov (!%p217_p2), 8   ;;  %vm1081_vm3 = vcmask (!%p217_p2), 130048   ;;  %vm1098_vm4 = vcmask (!%p217_p2), 195584   ;;  %vm1115_vm5 = vcmask (!%p217_p2), 261120   ;;  %vm1132_vm6 = vcmask (!%p217_p2), 326656  }
   0x8   : > { %s1748_s6 = smov (!%p217_p2), 32   ;;  %s1749_s7 = smov (!%p217_p2), 40   ;;  %1695 = vmatprep.subr.bf16.mxu0 (!%p217_p2), %v1694_v60  ;;  %1710 = vmatprep.subr.bf16.mxu1 (!%p217_p2), %v1694_v60  ;;  %vm1149_vm7 = vcmask (!%p217_p2), 392192   ;;  %vm1166_vm8 = vcmask (!%p217_p2), 457728   ;;  %vm1183_vm9 = vcmask (!%p217_p2), 523264   ;;  %vm1209_vm10 = vcmask (!%p217_p2), 588800  }
   0x9   : > { %s1750_s11 = smov (!%p217_p2), 48   ;;  %s1751_s12 = smov (!%p217_p2), 56   ;;  %1697 = vmatpush3.bf16.msra.mxu0 (!%p217_p2), %v1694_v60  ;;  %1715 = vmatpush3.bf16.msra.mxu1 (!%p217_p2), %v1694_v60  ;;  %vm1477_vm11 = vcmask (!%p217_p2), 1040384  }
   0xa   : > { %s1752_s13 = smov (!%p217_p2), 64   ;;  %p290_p4 = scmp.lt.s32.totalorder (!%p217_p2), %s1789_s19, 3 }
   0xd   : > { %s2558_s20 = smov (!%p263_p3, %s1598_s20), 31  ;;  %s2560_s19 = smov (!%p290_p4, %s1789_s19), 3 }
   0xe   : > { %s1797_s21 = smul.u32 24, %s2558_s20 }
  0x10   : > { %s1803_s24 = scalar_lea.vmem %s2552_s1, %s1797_s21  ;;  %s1809_s27 = scalar_lea.vmem %s2551_s0, %s1797_s21 }
  0x11   : > { %v319_v0 = vld [vmem:[%s1803_s24 + $0x8] sm:$0xff]  ;;  %v318_v1 = vld [vmem:[%s1803_s24] sm:$0xff]  ;;  %v296_v8 = vld [vmem:[%s1809_s27 + $0x10] sm:$0x3]  ;;  %s1860_s10 = scalar_lea.vmem %s2553_s2, %s1797_s21 }
  0x12   : > { %v1814_v2 = vld [vmem:[%s1809_s27] sm:$0xff]  ;;  %586 = vrot.lane.b32.xlu1 %v319_v0, %s1745_s28  ;;  %584 = vrot.lane.b32.xlu0 %v318_v1, %s1745_s28  ;;  %v1819_v3 = vld [vmem:[%s1809_s27 + $0x8] sm:$0xff]  ;;  %v483_v9 = vrot.slane %v296_v8, 2  ;;  %v394_v10 = vrot.slane %v296_v8, 1  ;;  %v641_v15 = vrot.slane %v319_v0, 1  ;;  %v640_v16 = vrot.slane %v318_v1, 1 }
  0x13   : > { %v480_v4 = vrot.slane %v1814_v2, 2  ;;  %v481_v5 = vrot.slane %v1819_v3, 2  ;;  %v391_v6 = vrot.slane %v1814_v2, 1  ;;  %v392_v7 = vrot.slane %v1819_v3, 1  ;;  %v1827_v11 = vld [vmem:[%s1809_s27 + $0x18] sm:$0xff]  ;;  %v1830_v12 = vld [vmem:[%s1809_s27 + $0x20] sm:$0xff] }
  0x14   : > { %v396_v19 = vrot.slane %v1827_v11, 1  ;;  %v397_v20 = vrot.slane %v1830_v12, 1  ;;  %v320_v21 = vld [vmem:[%s1803_s24 + $0x10] sm:$0x3]  ;;  %v729_v22 = vrot.slane %v319_v0, 2  ;;  %v728_v23 = vrot.slane %v318_v1, 2 }
  0x15   : > { %v482_v13 = vsel %vm479_vm0, %v480_v4, %v481_v5  ;;  %v393_v14 = vsel %vm390_vm1, %v391_v6, %v392_v7  ;;  %v484_v17 = vsel %vm479_vm0, %v481_v5, %v483_v9  ;;  %v395_v18 = vsel %vm390_vm1, %v392_v7, %v394_v10  ;;  %v299_v27 = vld [vmem:[%s1809_s27 + $0x28] sm:$0x3]  ;;  %v342_v36 = vld [vmem:[%s1860_s10] sm:$0xff]  ;;  %v1872_v41 = vld [vmem:[%s1803_s24 + $0x18] sm:$0xff] }
  0x16   : > { %520 = vrot.lane.b32.xlu1 %v482_v13, %s1746_s29  ;;  %431 = vrot.lane.b32.xlu0 %v393_v14, %s1747_s30  ;;  %v398_v24 = vsel %vm390_vm1, %v396_v19, %v397_v20  ;;  %v642_v25 = vsel %vm390_vm1, %v640_v16, %v641_v15  ;;  %v643_v26 = vrot.slane %v320_v21, 1  ;;  %v730_v28 = vsel %vm479_vm0, %v728_v23, %v729_v22  ;;  %v1867_v39 = vld [vmem:[%s1860_s10 + $0x8] sm:$0xff]  ;;  %v1877_v44 = vld [vmem:[%s1803_s24 + $0x20] sm:$0xff] }
  0x17   : > { %v485_v30 = vrot.slane %v1827_v11, 2  ;;  %v486_v31 = vrot.slane %v1830_v12, 2  ;;  %v399_v32 = vrot.slane %v299_v27, 1  ;;  %v731_v35 = vrot.slane %v320_v21, 2  ;;  %v344_v48 = vld [vmem:[%s1860_s10 + $0x10] sm:$0x3] }
  0x18   : > { %v644_v29 = vsel %vm390_vm1, %v641_v15, %v643_v26  ;;  %v488_v38 = vrot.slane %v299_v27, 2  ;;  %v888_v40 = vrot.slane %v342_v36, 1  ;;  %v889_v43 = vrot.slane %v1867_v39, 1  ;;  %v1898_v55 = vld [vmem:[%s1803_s24 + $0x28] sm:$0x3]  ;;  %v1901_v56 = vld [vmem:[%s1809_s27 + $0x30] sm:$0xff] }
  0x19   : > { %v487_v33 = vsel %vm479_vm0, %v485_v30, %v486_v31  ;;  %v400_v34 = vsel %vm390_vm1, %v397_v20, %v399_v32  ;;  %v732_v37 = vsel %vm479_vm0, %v729_v22, %v731_v35  ;;  %v645_v45 = vrot.slane %v1872_v41, 1  ;;  %v1904_v57 = vld [vmem:[%s1809_s27 + $0x38] sm:$0xff]  ;;  %v1205_v0 = vld [vmem:[%s2554_s3 + $0x28] sm:$0xff]  ;;  %v1206_v9 = vld [vmem:[%s2554_s3 + $0x30] sm:$0xff] }
  0x1a   : > { %522 = vrot.lane.b32.xlu1 %v484_v17, %s1746_s29  ;;  %433 = vrot.lane.b32.xlu0 %v395_v18, %s1747_s30  ;;  %v489_v42 = vsel %vm479_vm0, %v486_v31, %v488_v38  ;;  %v890_v46 = vsel %vm390_vm1, %v888_v40, %v889_v43  ;;  %v646_v47 = vrot.slane %v1877_v44, 1  ;;  %v976_v51 = vrot.slane %v342_v36, 2  ;;  %v1207_v10 = vld [vmem:[%s2554_s3 + $0x38] sm:$0xff]  ;;  %v302_v17 = vld [vmem:[%s1809_s27 + $0x40] sm:$0x3] }
  0x1b   : > { %v977_v53 = vrot.slane %v1867_v39, 2  ;;  %v891_v54 = vrot.slane %v344_v48, 1  ;;  %v648_v61 = vrot.slane %v1898_v55, 1  ;;  %v401_v62 = vrot.slane %v1901_v56, 1  ;;  %v346_v31 = vld [vmem:[%s1860_s10 + $0x20] sm:$0xff] }
  0x1c   : > { %v647_v52 = vsel %vm390_vm1, %v645_v45, %v646_v47  ;;  %v402_v5 = vrot.slane %v1904_v57, 1  ;;  %v1698_v6 = vpack.c.bf16 %v1203_v59, %v1202_v58  ;;  %v1702_v7 = vpack.c.bf16 %v1205_v0, %v1204_v63  ;;  %v347_v40 = vld [vmem:[%s1860_s10 + $0x28] sm:$0x3]  ;;  %v326_v45 = vld [vmem:[%s1803_s24 + $0x40] sm:$0x3] }
  0x1d   : > { %v978_v1 = vsel %vm479_vm0, %v976_v51, %v977_v53  ;;  %v892_v4 = vsel %vm390_vm1, %v889_v43, %v891_v54  ;;  %v733_v8 = vrot.slane %v1872_v41, 2  ;;  %v649_v13 = vsel %vm390_vm1, %v646_v47, %v648_v61  ;;  %v1975_v47 = vld [vmem:[%s1809_s27 + $0x50] sm:$0xff]  ;;  %v305_v60 = vld [vmem:[%s1809_s27 + $0x58] sm:$0x3] }
  0x1e   : > { %435 = vrot.lane.b32.xlu1 %v398_v24, %s1747_s30  ;;  %680 = vrot.lane.b32.xlu0 %v642_v25, %s1748_s6  ;;  %v403_v14 = vsel %vm390_vm1, %v401_v62, %v402_v5  ;;  %v979_v15 = vrot.slane %v344_v48, 2  ;;  %v734_v16 = vrot.slane %v1877_v44, 2  ;;  %v1706_v18 = vpack.c.bf16 %v1207_v10, %v1206_v9  ;;  %v1208_v24 = vld [vmem:[%s2554_s3 + $0x40] sm:$0xff]  ;;  %v349_v10 = vld [vmem:[%s1860_s10 + $0x38] sm:$0xff] }
  0x1f   : > { %1699 = vmatprep.subr.bf16.mxu0 %v1698_v6  ;;  %1711 = vmatprep.subr.bf16.mxu1 %v1698_v6  ;;  %v490_v19 = vrot.slane %v1901_v56, 2  ;;  %v491_v22 = vrot.slane %v1904_v57, 2  ;;  %v404_v23 = vrot.slane %v302_v17, 1  ;;  %v736_v27 = vrot.slane %v1898_v55, 2 }
  0x20   : > { %1701 = vmatpush3.bf16.msra.mxu0 %v1698_v6  ;;  %1716 = vmatpush3.bf16.msra.mxu1 %v1698_v6  ;;  %v980_v20 = vsel %vm479_vm0, %v977_v53, %v979_v15  ;;  %v735_v21 = vsel %vm479_vm0, %v733_v8, %v734_v16  ;;  %v493_v30 = vrot.slane %v302_v17, 2  ;;  %v894_v35 = vrot.slane %v346_v31, 1  ;;  %v328_v17 = vld [vmem:[%s1803_s24 + $0x50] sm:$0xff] }
  0x21   : > { %1703 = vmatprep.subr.bf16.mxu0 %v1702_v7  ;;  %1712 = vmatprep.subr.bf16.mxu1 %v1702_v7  ;;  %v492_v25 = vsel %vm479_vm0, %v490_v19, %v491_v22  ;;  %v405_v26 = vsel %vm390_vm1, %v402_v5, %v404_v23  ;;  %v982_v43 = vrot.slane %v346_v31, 2  ;;  %v653_v48 = vrot.slane %v326_v45, 1 }
  0x22   : > { %768 = vrot.lane.b32.xlu1 %v730_v28, %s1749_s7  ;;  %682 = vrot.lane.b32.xlu0 %v644_v29, %s1748_s6  ;;  %v345_v28 = vld [vmem:[%s1860_s10 + $0x18] sm:$0xff]  ;;  %v737_v29 = vsel %vm479_vm0, %v734_v16, %v736_v27  ;;  %v984_v58 = vrot.slane %v347_v40, 2  ;;  %v496_v0 = vrot.slane %v1975_v47, 2  ;;  %v741_v6 = vrot.slane %v326_v45, 2  ;;  %v2017_v27 = vld [vmem:[%s1809_s27 + $0x60] sm:$0xff] }
  0x23   : > { %v893_v32 = vrot.slane %v345_v28, 1  ;;  %v498_v9 = vrot.slane %v305_v60, 2  ;;  %v899_v16 = vrot.slane %v349_v10, 1 }
  0x24   : > { %1705 = vmatpush3.bf16.msra.mxu0 %v1702_v7  ;;  %1717 = vmatpush3.bf16.msra.mxu1 %v1702_v7  ;;  %v985_v62 = vsel %vm479_vm0, %v982_v43, %v984_v58  ;;  %v348_v7 = vld [vmem:[%s1860_s10 + $0x30] sm:$0xff] }
  0x25   : > { %1707 = vmatprep.subr.bf16.mxu0 %v1706_v18  ;;  %1713 = vmatprep.subr.bf16.mxu1 %v1706_v18  ;;  %v895_v38 = vsel %vm390_vm1, %v893_v32, %v894_v35  ;;  %v499_v15 = vsel %vm479_vm0, %v496_v0, %v498_v9  ;;  %v411_v32 = vrot.slane %v2017_v27, 1 }
  0x26   : > { %524 = vrot.lane.b32.xlu1 %v487_v33, %s1746_s29  ;;  %437 = vrot.lane.b32.xlu0 %v400_v34, %s1747_s30  ;;  %v324_v33 = vld [vmem:[%s1803_s24 + $0x30] sm:$0xff]  ;;  %v494_v34 = vsel %vm479_vm0, %v491_v22, %v493_v30  ;;  %v986_v22 = vrot.slane %v348_v7, 2 }
  0x27   : > { %v738_v53 = vrot.slane %v324_v33, 2 }
  0x28   : > { %1709 = vmatpush3.bf16.msra.mxu0 %v1706_v18  ;;  %1718 = vmatpush3.bf16.msra.mxu1 %v1706_v18 }
  0x29   : > { %1668 = vmatprep.subr.mxu0 %v1208_v24  ;;  %1714 = vmatprep.subr.mxu1 %v1208_v24 }
  0x2a   : > { %832 = vrot.lane.b32.xlu1 %v342_v36, %s1750_s11  ;;  %770 = vrot.lane.b32.xlu0 %v732_v37, %s1749_s7  ;;  %v325_v36 = vld [vmem:[%s1803_s24 + $0x38] sm:$0xff]  ;;  %v650_v37 = vrot.slane %v324_v33, 1 }
  0x2b   : > { %v739_v59 = vrot.slane %v325_v36, 2 }
  0x2c   : > { %1669 = vmatpush3.msra.mxu0 %v1208_v24  ;;  %1719 = vmatpush3.msra.mxu1 %v1208_v24  ;;  %v987_v24 = vrot.slane %v349_v10, 2 }
  0x2d   : > { %v740_v63 = vsel %vm479_vm0, %v738_v53, %v739_v59  ;;  %v742_v8 = vsel %vm479_vm0, %v739_v59, %v741_v6  ;;  %v352_v59 = vld [vmem:[%s1860_s10 + $0x50] sm:$0xff] }
  0x2e   : > { %588 = vrot.lane.b32.xlu1 %v1872_v41, %s1745_s28  ;;  %526 = vrot.lane.b32.xlu0 %v489_v42, %s1746_s29  ;;  %v981_v41 = vrot.slane %v345_v28, 2  ;;  %v988_v30 = vsel %vm479_vm0, %v986_v22, %v987_v24 }
  0x30   : > { %v983_v49 = vsel %vm479_vm0, %v981_v41, %v982_v43 }
  0x32   : > { %928 = vrot.lane.b32.xlu1 %v890_v46, %s1751_s12  ;;  %834 = vrot.lane.b32.xlu0 %v1867_v39, %s1750_s11  ;;  %v651_v39 = vrot.slane %v325_v36, 1  ;;  %v1972_v46 = vld [vmem:[%s1809_s27 + $0x48] sm:$0xff] }
  0x33   : > { %v406_v51 = vrot.slane %v1972_v46, 1  ;;  %v495_v61 = vrot.slane %v1972_v46, 2 }
  0x34   : > { %v652_v42 = vsel %vm390_vm1, %v650_v37, %v651_v39  ;;  %v654_v54 = vsel %vm390_vm1, %v651_v39, %v653_v48  ;;  %v308_v39 = vld [vmem:[%s1809_s27 + $0x70] sm:$0x3] }
  0x36   : > { %684 = vrot.lane.b32.xlu1 %v647_v52, %s1748_s6  ;;  %590 = vrot.lane.b32.xlu0 %v1877_v44, %s1745_s28  ;;  %v896_v44 = vrot.slane %v347_v40, 1  ;;  %v407_v52 = vrot.slane %v1975_v47, 1  ;;  %v500_v40 = vrot.slane %v2017_v27, 2 }
  0x38   : > { %v897_v50 = vsel %vm390_vm1, %v894_v35, %v896_v44  ;;  %v408_v55 = vsel %vm390_vm1, %v406_v51, %v407_v52  ;;  %v414_v44 = vrot.slane %v308_v39, 1 }
  0x3a   : > { %1016 = vrot.lane.b32.xlu1 %v978_v1, %s1752_s13  ;;  %930 = vrot.lane.b32.xlu0 %v892_v4, %s1751_s12  ;;  %v409_v1 = vrot.slane %v305_v60, 1  ;;  %v497_v4 = vsel %vm479_vm0, %v495_v61, %v496_v0  ;;  %v330_v61 = vld [vmem:[%s1803_s24 + $0x60] sm:$0xff] }
  0x3c   : > { %v410_v5 = vsel %vm390_vm1, %v407_v52, %v409_v1  ;;  %v351_v52 = vld [vmem:[%s1860_s10 + $0x48] sm:$0xff] }
  0x3d   : > { %v903_v60 = vrot.slane %v351_v52, 1 }
  0x3e   : > { %686 = vrot.lane.b32.xlu1 %v649_v13, %s1748_s6  ;;  %439 = vrot.lane.b32.xlu0 %v403_v14, %s1747_s30  ;;  %v898_v13 = vrot.slane %v348_v7, 1  ;;  %v327_v14 = vld [vmem:[%s1803_s24 + $0x48] sm:$0xff] }
  0x3f   : > { %v655_v18 = vrot.slane %v327_v14, 1 }
  0x40   : > { %v900_v19 = vsel %vm390_vm1, %v898_v13, %v899_v16  ;;  %v991_v13 = vrot.slane %v351_v52, 2 }
  0x42   : > { %1018 = vrot.lane.b32.xlu1 %v980_v20, %s1752_s13  ;;  %772 = vrot.lane.b32.xlu0 %v735_v21, %s1749_s7  ;;  %v656_v20 = vrot.slane %v328_v17, 1  ;;  %v350_v21 = vld [vmem:[%s1860_s10 + $0x40] sm:$0x3] }
  0x43   : > { %v989_v37 = vrot.slane %v350_v21, 2 }
  0x44   : > { %v657_v23 = vsel %vm390_vm1, %v655_v18, %v656_v20 }
  0x45   : > { %v990_v41 = vsel %vm479_vm0, %v987_v24, %v989_v37 }
  0x46   : > { %528 = vrot.lane.b32.xlu1 %v492_v25, %s1746_s29  ;;  %441 = vrot.lane.b32.xlu0 %v405_v26, %s1747_s30  ;;  %v901_v25 = vrot.slane %v350_v21, 1  ;;  %v329_v26 = vld [vmem:[%s1803_s24 + $0x58] sm:$0x3]  ;;  %v2084_v21 = vld [vmem:[%s1809_s27 + $0x80] sm:$0xff] }
  0x4a   : > { %836 = vrot.lane.b32.xlu1 %v345_v28, %s1750_s11  ;;  %774 = vrot.lane.b32.xlu0 %v737_v29, %s1749_s7  ;;  %v2020_v28 = vld [vmem:[%s1809_s27 + $0x68] sm:$0xff]  ;;  %v658_v29 = vrot.slane %v329_v26, 1 }
  0x4b   : > { %v501_v43 = vrot.slane %v2020_v28, 2 }
  0x4c   : > { %v659_v35 = vsel %vm390_vm1, %v656_v20, %v658_v29  ;;  %v2081_v20 = vld [vmem:[%s1809_s27 + $0x78] sm:$0xff] }
  0x4d   : > { %v502_v45 = vsel %vm479_vm0, %v500_v40, %v501_v43 }
  0x4e   : > { %592 = vrot.lane.b32.xlu1 %v324_v33, %s1745_s28  ;;  %530 = vrot.lane.b32.xlu0 %v494_v34, %s1746_s29  ;;  %v412_v33 = vrot.slane %v2020_v28, 1  ;;  %v743_v34 = vrot.slane %v327_v14, 2 }
  0x50   : > { %v415_v48 = vsel %vm390_vm1, %v412_v33, %v414_v44 }
  0x52   : > { %932 = vrot.lane.b32.xlu1 %v895_v38, %s1751_s12  ;;  %838 = vrot.lane.b32.xlu0 %v346_v31, %s1750_s11  ;;  %v902_v31 = vsel %vm390_vm1, %v899_v16, %v901_v25  ;;  %v744_v38 = vrot.slane %v328_v17, 2  ;;  %v416_v25 = vrot.slane %v2081_v20, 1 }
  0x56   : > { %688 = vrot.lane.b32.xlu1 %v652_v42, %s1748_s6  ;;  %594 = vrot.lane.b32.xlu0 %v325_v36, %s1745_s28  ;;  %v413_v36 = vsel %vm390_vm1, %v411_v32, %v412_v33  ;;  %v745_v42 = vsel %vm479_vm0, %v743_v34, %v744_v38 }
  0x5a   : > { %1020 = vrot.lane.b32.xlu1 %v983_v49, %s1752_s13  ;;  %934 = vrot.lane.b32.xlu0 %v897_v50, %s1751_s12  ;;  %v746_v49 = vrot.slane %v329_v26, 2  ;;  %v417_v26 = vrot.slane %v2084_v21, 1 }
  0x5c   : > { %v747_v53 = vsel %vm479_vm0, %v744_v38, %v746_v49  ;;  %v418_v33 = vsel %vm390_vm1, %v416_v25, %v417_v26  ;;  %v311_v38 = vld [vmem:[%s1809_s27 + $0x88] sm:$0x3] }
  0x5e   : > { %690 = vrot.lane.b32.xlu1 %v654_v54, %s1748_s6  ;;  %443 = vrot.lane.b32.xlu0 %v408_v55, %s1747_s30  ;;  %v503_v54 = vrot.slane %v308_v39, 2  ;;  %v505_v39 = vrot.slane %v2081_v20, 2 }
  0x62   : > { %1022 = vrot.lane.b32.xlu1 %v985_v62, %s1752_s13  ;;  %776 = vrot.lane.b32.xlu0 %v740_v63, %s1749_s7  ;;  %v504_v62 = vsel %vm479_vm0, %v501_v43, %v503_v54  ;;  %v904_v63 = vrot.slane %v352_v59, 1  ;;  %v419_v43 = vrot.slane %v311_v38, 1 }
  0x64   : > { %v905_v6 = vsel %vm390_vm1, %v903_v60, %v904_v63 }
  0x66   : > { %532 = vrot.lane.b32.xlu1 %v497_v4, %s1746_s29  ;;  %445 = vrot.lane.b32.xlu0 %v410_v5, %s1747_s30  ;;  %v2063_v4 = vld [vmem:[%s1803_s24 + $0x68] sm:$0xff]  ;;  %v660_v5 = vrot.slane %v330_v61, 1 }
  0x6a   : > { %840 = vrot.lane.b32.xlu1 %v348_v7, %s1750_s11  ;;  %778 = vrot.lane.b32.xlu0 %v742_v8, %s1749_s7  ;;  %v661_v7 = vrot.slane %v2063_v4, 1 }
  0x6e   : > { %596 = vrot.lane.b32.xlu1 %v327_v14, %s1745_s28  ;;  %534 = vrot.lane.b32.xlu0 %v499_v15, %s1746_s29  ;;  %v662_v14 = vsel %vm390_vm1, %v660_v5, %v661_v7  ;;  %v992_v15 = vrot.slane %v352_v59, 2 }
  0x72   : > { %936 = vrot.lane.b32.xlu1 %v900_v19, %s1751_s12  ;;  %842 = vrot.lane.b32.xlu0 %v349_v10, %s1750_s11  ;;  %v353_v10 = vld [vmem:[%s1860_s10 + $0x58] sm:$0x3] }
  0x73   : > { %v906_v16 = vrot.slane %v353_v10, 1  ;;  %v994_v34 = vrot.slane %v353_v10, 2 }
  0x75   : > { %v907_v24 = vsel %vm390_vm1, %v904_v63, %v906_v16  ;;  %v995_v40 = vsel %vm479_vm0, %v992_v15, %v994_v34 }
  0x76   : > { %692 = vrot.lane.b32.xlu1 %v657_v23, %s1748_s6  ;;  %598 = vrot.lane.b32.xlu0 %v328_v17, %s1745_s28  ;;  %v332_v17 = vld [vmem:[%s1803_s24 + $0x70] sm:$0x3]  ;;  %v993_v23 = vsel %vm479_vm0, %v991_v13, %v992_v15  ;;  %v333_v13 = vld [vmem:[%s1803_s24 + $0x78] sm:$0xff] }
  0x77   : > { %v663_v22 = vrot.slane %v332_v17, 1 }
  0x79   : > { %v664_v32 = vsel %vm390_vm1, %v661_v7, %v663_v22  ;;  %v665_v22 = vrot.slane %v333_v13, 1 }
  0x7a   : > { %1024 = vrot.lane.b32.xlu1 %v988_v30, %s1752_s13  ;;  %938 = vrot.lane.b32.xlu0 %v902_v31, %s1751_s12  ;;  %v748_v31 = vrot.slane %v330_v61, 2 }
  0x7e   : > { %694 = vrot.lane.b32.xlu1 %v659_v35, %s1748_s6  ;;  %447 = vrot.lane.b32.xlu0 %v413_v36, %s1747_s30  ;;  %v749_v35 = vrot.slane %v2063_v4, 2 }
  0x82   : > { %1026 = vrot.lane.b32.xlu1 %v990_v41, %s1752_s13  ;;  %780 = vrot.lane.b32.xlu0 %v745_v42, %s1749_s7  ;;  %v750_v41 = vsel %vm479_vm0, %v748_v31, %v749_v35  ;;  %v506_v42 = vrot.slane %v2084_v21, 2  ;;  %v356_v31 = vld [vmem:[%s1860_s10 + $0x70] sm:$0x3] }
  0x84   : > { %v2043_v50 = vpop.permute.xlu1 %586  ;;  %v2045_v51 = vpop.permute.xlu0 %584  ;;  %v507_v49 = vsel %vm479_vm0, %v505_v39, %v506_v42  ;;  %v335_v39 = vld [vmem:[%s1803_s24 + $0x88] sm:$0x3] }
  0x86   : > { %536 = vrot.lane.b32.xlu1 %v502_v45, %s1746_s29  ;;  %449 = vrot.lane.b32.xlu0 %v415_v48, %s1747_s30 }
  0x88   : > { %v2051_v55 = vpop.permute.xlu1 %520  ;;  %v432_v58 = vpop.permute.xlu0 %431 }
  0x89   : > { %v1065_v48 = vsel %vm1064_vm2, %v1814_v2, %v432_v58  ;;  %v354_v2 = vld [vmem:[%s1860_s10 + $0x60] sm:$0xff] }
  0x8a   : > { %844 = vrot.lane.b32.xlu1 %v351_v52, %s1750_s11  ;;  %782 = vrot.lane.b32.xlu0 %v747_v53, %s1749_s7  ;;  %v420_v52 = vsel %vm390_vm1, %v417_v26, %v419_v43  ;;  %v751_v53 = vrot.slane %v332_v17, 2  ;;  %v1082_v60 = vsel %vm1081_vm3, %v1065_v48, %v2051_v55  ;;  %v2134_v55 = vld [vmem:[%s1860_s10 + $0x68] sm:$0xff]  ;;  %v908_v10 = vrot.slane %v354_v2, 1 }
  0x8b   : > { %v996_v34 = vrot.slane %v354_v2, 2  ;;  %v668_v48 = vrot.slane %v335_v39, 1 }
  0x8c   : > { %v2058_v0 = vpop.permute.xlu1 %522  ;;  %v2060_v1 = vpop.permute.xlu0 %433  ;;  %v752_v58 = vsel %vm479_vm0, %v749_v35, %v751_v53 }
  0x8e   : > { %600 = vrot.lane.b32.xlu1 %v330_v61, %s1745_s28  ;;  %538 = vrot.lane.b32.xlu0 %v504_v62, %s1746_s29  ;;  %v508_v61 = vrot.slane %v311_v38, 2  ;;  %v1099_v62 = vsel %vm1098_vm4, %v1082_v60, %v2045_v51  ;;  %v911_v38 = vrot.slane %v356_v31, 1 }
  0x90   : > { %v2069_v8 = vpop.permute.xlu1 %435  ;;  %v2071_v9 = vpop.permute.xlu0 %680 }
  0x91   : > { %v1116_v5 = vsel %vm1115_vm5, %v1099_v62, %v2071_v9  ;;  %v909_v9 = vrot.slane %v2134_v55, 1 }
  0x92   : > { %940 = vrot.lane.b32.xlu1 %v905_v6, %s1751_s12  ;;  %846 = vrot.lane.b32.xlu0 %v352_v59, %s1750_s11  ;;  %v1066_v6 = vsel %vm1064_vm2, %v1819_v3, %v2060_v1  ;;  %v2150_v1 = vld [vmem:[%s1803_s24 + $0x80] sm:$0xff] }
  0x93   : > { %v1083_v17 = vsel %vm1081_vm3, %v1066_v6, %v2058_v0 }
  0x94   : > { %v769_v18 = vpop.permute.xlu1 %768  ;;  %v2078_v19 = vpop.permute.xlu0 %682  ;;  %v1100_v25 = vsel %vm1098_vm4, %v1083_v17, %v2043_v50  ;;  %v756_v17 = vrot.slane %v335_v39, 2 }
  0x95   : > { %v1133_v7 = vsel %vm1132_vm6, %v1116_v5, %v769_v18 }
  0x96   : > { %696 = vrot.lane.b32.xlu1 %v662_v14, %s1748_s6  ;;  %602 = vrot.lane.b32.xlu0 %v2063_v4, %s1745_s28  ;;  %v509_v14 = vsel %vm479_vm0, %v506_v42, %v508_v61  ;;  %v2180_v42 = vld [vmem:[%s1809_s27 + $0x90] sm:$0xff] }
  0x97   : > { %v421_v53 = vrot.slane %v2180_v42, 1 }
  0x98   : > { %v2093_v29 = vpop.permute.xlu1 %524  ;;  %v2095_v30 = vpop.permute.xlu0 %437 }
  0x9a   : > { %1028 = vrot.lane.b32.xlu1 %v993_v23, %s1752_s13  ;;  %942 = vrot.lane.b32.xlu0 %v907_v24, %s1751_s12  ;;  %v910_v23 = vsel %vm390_vm1, %v908_v10, %v909_v9  ;;  %v666_v24 = vrot.slane %v2150_v1, 1 }
  0x9c   : > { %v833_v36 = vpop.permute.xlu1 %832  ;;  %v2102_v37 = vpop.permute.xlu0 %770  ;;  %v667_v35 = vsel %vm390_vm1, %v665_v22, %v666_v24  ;;  %v669_v61 = vsel %vm390_vm1, %v666_v24, %v668_v48  ;;  %v1068_v48 = vsel %vm1064_vm2, %v1830_v12, %v2095_v30  ;;  %v359_v30 = vld [vmem:[%s1860_s10 + $0x88] sm:$0x3] }
  0x9d   : > { %v1150_v51 = vsel %vm1149_vm7, %v1133_v7, %v833_v36  ;;  %v997_v36 = vrot.slane %v2134_v55, 2  ;;  %v314_v7 = vld [vmem:[%s1809_s27 + $0xa0] sm:$0x3] }
  0x9e   : > { %698 = vrot.lane.b32.xlu1 %v664_v32, %s1748_s6  ;;  %451 = vrot.lane.b32.xlu0 %v418_v33, %s1747_s30  ;;  %v1117_v32 = vsel %vm1115_vm5, %v1100_v25, %v2078_v19  ;;  %v357_v25 = vld [vmem:[%s1860_s10 + $0x78] sm:$0xff] }
  0x9f   : > { %v1134_v33 = vsel %vm1132_vm6, %v1117_v32, %v2102_v37  ;;  %v2183_v37 = vld [vmem:[%s1809_s27 + $0x98] sm:$0xff]  ;;  %v513_v32 = vrot.slane %v314_v7, 2 }
  0xa0   : > { %v2111_v44 = vpop.permute.xlu1 %588  ;;  %v2113_v45 = vpop.permute.xlu0 %526 }
  0xa2   : > { %1030 = vrot.lane.b32.xlu1 %v995_v40, %s1752_s13  ;;  %784 = vrot.lane.b32.xlu0 %v750_v41, %s1749_s7 }
  0xa4   : > { %v929_v54 = vpop.permute.xlu1 %928  ;;  %v835_v59 = vpop.permute.xlu0 %834 }
  0xa5   : > { %v1167_v15 = vsel %vm1166_vm8, %v1150_v51, %v929_v54  ;;  %v1151_v50 = vsel %vm1149_vm7, %v1134_v33, %v835_v59  ;;  %v422_v54 = vrot.slane %v2183_v37, 1 }
  0xa6   : > { %540 = vrot.lane.b32.xlu1 %v507_v49, %s1746_s29  ;;  %453 = vrot.lane.b32.xlu0 %v420_v52, %s1747_s30  ;;  %v998_v49 = vsel %vm479_vm0, %v996_v34, %v997_v36  ;;  %v912_v52 = vsel %vm390_vm1, %v909_v9, %v911_v38  ;;  %v424_v9 = vrot.slane %v314_v7, 1  ;;  %v916_v7 = vrot.slane %v359_v30, 1 }
  0xa7   : > { %v423_v62 = vsel %vm390_vm1, %v421_v53, %v422_v54 }
  0xa8   : > { %v2129_v63 = vpop.permute.xlu1 %684  ;;  %v2131_v4 = vpop.permute.xlu0 %590 }
  0xaa   : > { %848 = vrot.lane.b32.xlu1 %v354_v2, %s1750_s11  ;;  %786 = vrot.lane.b32.xlu0 %v752_v58, %s1749_s7  ;;  %v999_v2 = vrot.slane %v356_v31, 2  ;;  %v753_v58 = vrot.slane %v333_v13, 2 }
  0xac   : > { %v1017_v16 = vpop.permute.xlu1 %1016  ;;  %v931_v3 = vpop.permute.xlu0 %930  ;;  %v1000_v51 = vsel %vm479_vm0, %v997_v36, %v999_v2  ;;  %v913_v36 = vrot.slane %v357_v25, 1 }
  0xad   : > { %v1184_v18 = vsel %vm1183_vm9, %v1167_v15, %v1017_v16  ;;  %v1168_v40 = vsel %vm1166_vm8, %v1151_v50, %v931_v3 }
  0xae   : > { %604 = vrot.lane.b32.xlu1 %v333_v13, %s1745_s28  ;;  %542 = vrot.lane.b32.xlu0 %v509_v14, %s1746_s29  ;;  %v510_v14 = vrot.slane %v2180_v42, 2  ;;  %v511_v13 = vrot.slane %v2183_v37, 2 }
  0xaf   : > { %1670 = vmatprep.mubr.msk.f32.mxu0 %vm1209_vm10, %v1184_v18 }
  0xb0   : > { %v2162_v26 = vpop.permute.xlu1 %686  ;;  %v2164_v0 = vpop.permute.xlu0 %439  ;;  %v512_v3 = vsel %vm479_vm0, %v510_v14, %v511_v13  ;;  %v514_v38 = vsel %vm479_vm0, %v511_v13, %v513_v32  ;;  %v2279_v13 = vld [vmem:[%s1809_s27 + $0xa8] sm:$0xff] }
  0xb2   : > { %944 = vrot.lane.b32.xlu1 %v910_v23, %s1751_s12  ;;  %850 = vrot.lane.b32.xlu0 %v2134_v55, %s1750_s11  ;;  %v754_v55 = vrot.slane %v2150_v1, 2  ;;  %v1067_v23 = vsel %vm1064_vm2, %v1827_v11, %v2069_v8  ;;  %v2234_v11 = vld [vmem:[%s1860_s10 + $0x80] sm:$0xff] }
  0xb3   : > { %v1084_v24 = vsel %vm1081_vm3, %v1067_v23, %v2093_v29  ;;  %v914_v39 = vrot.slane %v2234_v11, 1 }
  0xb4   : > { %v1019_v19 = vpop.permute.xlu1 %1018  ;;  %v773_v41 = vpop.permute.xlu0 %772  ;;  %v755_v10 = vsel %vm479_vm0, %v753_v58, %v754_v55  ;;  %v757_v31 = vsel %vm479_vm0, %v754_v55, %v756_v17  ;;  %v1101_v33 = vsel %vm1098_vm4, %v1084_v24, %v2111_v44  ;;  %v336_v44 = vld [vmem:[%s1803_s24 + $0x90] sm:$0xff] }
  0xb5   : > { %v1185_v43 = vsel %vm1183_vm9, %v1168_v40, %v1019_v19  ;;  %v1118_v8 = vsel %vm1115_vm5, %v1101_v33, %v2129_v63  ;;  %v2247_v63 = vld [vmem:[%s1803_s24 + $0x98] sm:$0xff]  ;;  %v915_v53 = vsel %vm390_vm1, %v913_v36, %v914_v39 }
  0xb6   : > { %700 = vrot.lane.b32.xlu1 %v667_v35, %s1748_s6  ;;  %606 = vrot.lane.b32.xlu0 %v2150_v1, %s1745_s28  ;;  %v425_v1 = vsel %vm390_vm1, %v422_v54, %v424_v9  ;;  %v1135_v35 = vsel %vm1132_vm6, %v1118_v8, %v773_v41  ;;  %v671_v54 = vrot.slane %v2247_v63, 1 }
  0xb7   : > { %1671 = vmatmul.mubr.msk.f32.vlgmr.msra.gmra.mrb[0].mxu0 %vm1209_vm10, %v1185_v43 }
  0xb8   : > { %v2194_v59 = vpop.permute.xlu1 %528  ;;  %v2196_v60 = vpop.permute.xlu0 %441 }
  0xba   : > { %1032 = vrot.lane.b32.xlu1 %v998_v49, %s1752_s13  ;;  %946 = vrot.lane.b32.xlu0 %v912_v52, %s1751_s12  ;;  %v1085_v49 = vsel %vm1081_vm3, %v1068_v48, %v2113_v45  ;;  %v670_v52 = vrot.slane %v336_v44, 1 }
  0xbb   : > { %v1102_v2 = vsel %vm1098_vm4, %v1085_v49, %v2131_v4  ;;  %v1002_v4 = vrot.slane %v2234_v11, 2 }
  0xbc   : > { %v837_v5 = vpop.permute.xlu1 %836  ;;  %v775_v6 = vpop.permute.xlu0 %774  ;;  %v1119_v45 = vsel %vm1115_vm5, %v1102_v2, %v2162_v26  ;;  %v338_v26 = vld [vmem:[%s1803_s24 + $0xa0] sm:$0x3]  ;;  %v360_v2 = vld [vmem:[%s1860_s10 + $0x90] sm:$0xff] }
  0xbd   : > { %v1152_v29 = vsel %vm1149_vm7, %v1135_v35, %v837_v5  ;;  %v672_v5 = vsel %vm390_vm1, %v670_v52, %v671_v54  ;;  %v673_v17 = vrot.slane %v338_v26, 1  ;;  %v761_v48 = vrot.slane %v338_v26, 2 }
  0xbe   : > { %702 = vrot.lane.b32.xlu1 %v669_v61, %s1748_s6  ;;  %455 = vrot.lane.b32.xlu0 %v423_v62, %s1747_s30  ;;  %v1136_v61 = vsel %vm1132_vm6, %v1119_v45, %v775_v6  ;;  %v1001_v62 = vrot.slane %v357_v25, 2  ;;  %v2282_v6 = vld [vmem:[%s1809_s27 + $0xb0] sm:$0xff] }
  0xbf   : > { %v674_v32 = vsel %vm390_vm1, %v671_v54, %v673_v17 }
  0xc0   : > { %v2210_v15 = vpop.permute.xlu1 %592  ;;  %v2212_v16 = vpop.permute.xlu0 %530 }
  0xc2   : > { %1034 = vrot.lane.b32.xlu1 %v1000_v51, %s1752_s13  ;;  %788 = vrot.lane.b32.xlu0 %v755_v10, %s1749_s7 }
  0xc4   : > { %v933_v18 = vpop.permute.xlu1 %932  ;;  %v839_v22 = vpop.permute.xlu0 %838 }
  0xc5   : > { %v1169_v40 = vsel %vm1166_vm8, %v1152_v29, %v933_v18  ;;  %v1153_v55 = vsel %vm1149_vm7, %v1136_v61, %v839_v22  ;;  %v426_v18 = vrot.slane %v2279_v13, 1  ;;  %v427_v22 = vrot.slane %v2282_v6, 1  ;;  %v317_v29 = vld [vmem:[%s1809_s27 + $0xb8] sm:$0x3] }
  0xc6   : > { %544 = vrot.lane.b32.xlu1 %v512_v3, %s1746_s29  ;;  %457 = vrot.lane.b32.xlu0 %v425_v1, %s1747_s30  ;;  %v1003_v3 = vsel %vm479_vm0, %v1001_v62, %v1002_v4  ;;  %v917_v1 = vsel %vm390_vm1, %v914_v39, %v916_v7  ;;  %v515_v39 = vrot.slane %v2279_v13, 2  ;;  %v518_v45 = vrot.slane %v317_v29, 2 }
  0xc7   : > { %v428_v33 = vsel %vm390_vm1, %v426_v18, %v427_v22 }
  0xc8   : > { %v2229_v34 = vpop.permute.xlu1 %688  ;;  %v2231_v50 = vpop.permute.xlu0 %594 }
  0xca   : > { %852 = vrot.lane.b32.xlu1 %v357_v25, %s1750_s11  ;;  %790 = vrot.lane.b32.xlu0 %v757_v31, %s1749_s7  ;;  %v1004_v25 = vrot.slane %v359_v30, 2  ;;  %v758_v31 = vrot.slane %v336_v44, 2 }
  0xcc   : > { %v1021_v19 = vpop.permute.xlu1 %1020  ;;  %v935_v43 = vpop.permute.xlu0 %934  ;;  %v1005_v36 = vsel %vm479_vm0, %v1002_v4, %v1004_v25 }
  0xcd   : > { %v1186_v41 = vsel %vm1183_vm9, %v1169_v40, %v1021_v19  ;;  %v1170_v51 = vsel %vm1166_vm8, %v1153_v55, %v935_v43  ;;  %v429_v40 = vrot.slane %v317_v29, 1 }
  0xce   : > { %608 = vrot.lane.b32.xlu1 %v336_v44, %s1745_s28  ;;  %546 = vrot.lane.b32.xlu0 %v514_v38, %s1746_s29  ;;  %v516_v44 = vrot.slane %v2282_v6, 2 }
  0xcf   : > { %1673 = vmatprep.mubr.msk.f32.mxu0 %vm1209_vm10, %v1186_v41  ;;  %v430_v41 = vsel %vm390_vm1, %v427_v22, %v429_v40 }
  0xd0   : > { %v2262_v58 = vpop.permute.xlu1 %690  ;;  %v2264_v12 = vpop.permute.xlu0 %443  ;;  %v519_v7 = vsel %vm479_vm0, %v516_v44, %v518_v45 }
  0xd2   : > { %948 = vrot.lane.b32.xlu1 %v915_v53, %s1751_s12  ;;  %854 = vrot.lane.b32.xlu0 %v2234_v11, %s1750_s11  ;;  %v759_v11 = vrot.slane %v2247_v63, 2  ;;  %v1069_v53 = vsel %vm1064_vm2, %v1901_v56, %v2164_v0  ;;  %v2333_v56 = vld [vmem:[%s1860_s10 + $0x98] sm:$0xff] }
  0xd3   : > { %v1086_v54 = vsel %vm1081_vm3, %v1069_v53, %v2194_v59 }
  0xd4   : > { %v1023_v10 = vpop.permute.xlu1 %1022  ;;  %v777_v14 = vpop.permute.xlu0 %776  ;;  %v760_v38 = vsel %vm479_vm0, %v758_v31, %v759_v11  ;;  %v762_v30 = vsel %vm479_vm0, %v759_v11, %v761_v48  ;;  %v1103_v61 = vsel %vm1098_vm4, %v1086_v54, %v2210_v15  ;;  %v339_v15 = vld [vmem:[%s1803_s24 + $0xa8] sm:$0xff] }
  0xd5   : > { %v1187_v9 = vsel %vm1183_vm9, %v1170_v51, %v1023_v10  ;;  %v1120_v0 = vsel %vm1115_vm5, %v1103_v61, %v2229_v34  ;;  %v919_v51 = vrot.slane %v2333_v56, 1  ;;  %v340_v34 = vld [vmem:[%s1803_s24 + $0xb0] sm:$0xff]  ;;  %v675_v17 = vrot.slane %v339_v15, 1 }
  0xd6   : > { %704 = vrot.lane.b32.xlu1 %v672_v5, %s1748_s6  ;;  %610 = vrot.lane.b32.xlu0 %v2247_v63, %s1745_s28  ;;  %v517_v63 = vsel %vm479_vm0, %v515_v39, %v516_v44  ;;  %v1137_v55 = vsel %vm1132_vm6, %v1120_v0, %v777_v14  ;;  %v918_v5 = vrot.slane %v360_v2, 1  ;;  %v676_v22 = vrot.slane %v340_v34, 1 }
  0xd7   : > { %1674 = vmatmul.mubr.msk.f32.gmra.mrb[2].mxu0 %vm1209_vm10, %v1187_v9  ;;  %v763_v44 = vrot.slane %v339_v15, 2 }
  0xd8   : > { %v2293_v23 = vpop.permute.xlu1 %532  ;;  %v2295_v24 = vpop.permute.xlu0 %445  ;;  %v920_v18 = vsel %vm390_vm1, %v918_v5, %v919_v51  ;;  %v364_v5 = vld [vmem:[%s1860_s10 + $0xb0] sm:$0xff] }
  0xda   : > { %1036 = vrot.lane.b32.xlu1 %v1003_v3, %s1752_s13  ;;  %950 = vrot.lane.b32.xlu0 %v917_v1, %s1751_s12  ;;  %v1070_v3 = vsel %vm1064_vm2, %v1904_v57, %v2196_v60  ;;  %v362_v60 = vld [vmem:[%s1860_s10 + $0xa0] sm:$0x3] }
  0xdb   : > { %v1087_v1 = vsel %vm1081_vm3, %v1070_v3, %v2212_v16  ;;  %v921_v29 = vrot.slane %v362_v60, 1  ;;  %v1012_v3 = vrot.slane %v364_v5, 2 }
  0xdc   : > { %v841_v8 = vpop.permute.xlu1 %840  ;;  %v779_v35 = vpop.permute.xlu0 %778  ;;  %v1104_v25 = vsel %vm1098_vm4, %v1087_v1, %v2231_v50  ;;  %v677_v50 = vsel %vm390_vm1, %v675_v17, %v676_v22 }
  0xdd   : > { %v1154_v59 = vsel %vm1149_vm7, %v1137_v55, %v841_v8  ;;  %v1007_v8 = vrot.slane %v2333_v56, 2 }
  0xde   : > { %706 = vrot.lane.b32.xlu1 %v674_v32, %s1748_s6  ;;  %459 = vrot.lane.b32.xlu0 %v428_v33, %s1747_s30  ;;  %v1121_v32 = vsel %vm1115_vm5, %v1104_v25, %v2262_v58  ;;  %v1006_v33 = vrot.slane %v360_v2, 2  ;;  %v341_v58 = vld [vmem:[%s1803_s24 + $0xb8] sm:$0x3]  ;;  %s1626_s24 = sshll.u32 %s2558_s20, 4  ;;  %s1607_s20 = sshll.u32 %s2560_s19, 1 }
  0xdf   : > { %v1138_v16 = vsel %vm1132_vm6, %v1121_v32, %v779_v35  ;;  %v678_v48 = vrot.slane %v341_v58, 1 }
  0xe0   : > { %v2309_v19 = vpop.permute.xlu1 %596  ;;  %v2311_v43 = vpop.permute.xlu0 %534  ;;  %v1008_v40 = vsel %vm479_vm0, %v1006_v33, %v1007_v8 }
  0xe1   : > { %v679_v54 = vsel %vm390_vm1, %v676_v22, %v678_v48 }
  0xe2   : > { %1038 = vrot.lane.b32.xlu1 %v1005_v36, %s1752_s13  ;;  %792 = vrot.lane.b32.xlu0 %v760_v38, %s1749_s7 }
  0xe4   : > { %v937_v49 = vpop.permute.xlu1 %936  ;;  %v843_v52 = vpop.permute.xlu0 %842 }
  0xe5   : > { %v1171_v10 = vsel %vm1166_vm8, %v1154_v59, %v937_v49  ;;  %v1155_v11 = vsel %vm1149_vm7, %v1138_v16, %v843_v52 }
  0xe6   : > { %548 = vrot.lane.b32.xlu1 %v517_v63, %s1746_s29  ;;  %461 = vrot.lane.b32.xlu0 %v430_v41, %s1747_s30  ;;  %v922_v63 = vsel %vm390_vm1, %v919_v51, %v921_v29  ;;  %v764_v41 = vrot.slane %v340_v34, 2  ;;  %v924_v51 = vrot.slane %v364_v5, 1 }
  0xe8   : > { %v2328_v62 = vpop.permute.xlu1 %692  ;;  %v2330_v4 = vpop.permute.xlu0 %598  ;;  %v765_v53 = vsel %vm479_vm0, %v763_v44, %v764_v41 }
  0xea   : > { %856 = vrot.lane.b32.xlu1 %v360_v2, %s1750_s11  ;;  %794 = vrot.lane.b32.xlu0 %v762_v30, %s1749_s7  ;;  %v766_v2 = vrot.slane %v341_v58, 2  ;;  %v1009_v30 = vrot.slane %v362_v60, 2 }
  0xec   : > { %v1025_v26 = vpop.permute.xlu1 %1024  ;;  %v939_v9 = vpop.permute.xlu0 %938  ;;  %v1010_v0 = vsel %vm479_vm0, %v1007_v8, %v1009_v30 }
  0xed   : > { %v1188_v14 = vsel %vm1183_vm9, %v1171_v10, %v1025_v26  ;;  %v1172_v36 = vsel %vm1166_vm8, %v1155_v11, %v939_v9 }
  0xee   : > { %612 = vrot.lane.b32.xlu1 %v339_v15, %s1745_s28  ;;  %550 = vrot.lane.b32.xlu0 %v519_v7, %s1746_s29  ;;  %v363_v15 = vld [vmem:[%s1860_s10 + $0xa8] sm:$0xff]  ;;  %v365_v7 = vld [vmem:[%s1860_s10 + $0xb8] sm:$0x3]  ;;  %s2525_s29 = scalar_lea.vmem %s2555_s4, %s1626_s24 }
  0xef   : > { %1676 = vmatprep.mubr.msk.f32.mxu0 %vm1209_vm10, %v1188_v14  ;;  %v923_v10 = vrot.slane %v363_v15, 1  ;;  %v926_v26 = vrot.slane %v365_v7, 1  ;;  %v1071_v14 = vsel %vm1064_vm2, %v1972_v46, %v2264_v12  ;;  %v1011_v1 = vrot.slane %v363_v15, 2 }
  0xf0   : > { %v2358_v31 = vpop.permute.xlu1 %694  ;;  %v2360_v57 = vpop.permute.xlu0 %447  ;;  %v1088_v17 = vsel %vm1081_vm3, %v1071_v14, %v2293_v23  ;;  %v1014_v25 = vrot.slane %v365_v7, 2 }
  0xf1   : > { %v925_v22 = vsel %vm390_vm1, %v923_v10, %v924_v51  ;;  %v1105_v60 = vsel %vm1098_vm4, %v1088_v17, %v2309_v19  ;;  %v1013_v11 = vsel %vm479_vm0, %v1011_v1, %v1012_v3 }
  0xf2   : > { %952 = vrot.lane.b32.xlu1 %v920_v18, %s1751_s12  ;;  %858 = vrot.lane.b32.xlu0 %v2333_v56, %s1750_s11  ;;  %v767_v56 = vsel %vm479_vm0, %v764_v41, %v766_v2  ;;  %v927_v18 = vsel %vm390_vm1, %v924_v51, %v926_v26  ;;  %v1122_v46 = vsel %vm1115_vm5, %v1105_v60, %v2328_v62 }
  0xf3   : > { %v1015_v33 = vsel %vm479_vm0, %v1012_v3, %v1014_v25  ;;  %v1072_v62 = vsel %vm1064_vm2, %v1975_v47, %v2295_v24 }
  0xf4   : > { %v1027_v38 = vpop.permute.xlu1 %1026  ;;  %v781_v39 = vpop.permute.xlu0 %780 }
  0xf5   : > { %v1189_v35 = vsel %vm1183_vm9, %v1172_v36, %v1027_v38  ;;  %v1139_v12 = vsel %vm1132_vm6, %v1122_v46, %v781_v39  ;;  %v1089_v36 = vsel %vm1081_vm3, %v1072_v62, %v2311_v43 }
  0xf6   : > { %708 = vrot.lane.b32.xlu1 %v677_v50, %s1748_s6  ;;  %614 = vrot.lane.b32.xlu0 %v340_v34, %s1745_s28  ;;  %v1106_v38 = vsel %vm1098_vm4, %v1089_v36, %v2330_v4 }
  0xf7   : > { %1677 = vmatmul.mubr.msk.f32.gmra.mrb[4].mxu0 %vm1209_vm10, %v1189_v35  ;;  %v1123_v35 = vsel %vm1115_vm5, %v1106_v38, %v2358_v31 }
  0xf8   : > { %v2380_v49 = vpop.permute.xlu1 %536  ;;  %v2382_v52 = vpop.permute.xlu0 %449 }
  0xfa   : > { %1040 = vrot.lane.b32.xlu1 %v1008_v40, %s1752_s13  ;;  %954 = vrot.lane.b32.xlu0 %v922_v63, %s1751_s12 }
  0xfc   : > { %v845_v45 = vpop.permute.xlu1 %844  ;;  %v783_v61 = vpop.permute.xlu0 %782 }
  0xfd   : > { %v1156_v23 = vsel %vm1149_vm7, %v1139_v12, %v845_v45  ;;  %v1140_v44 = vsel %vm1132_vm6, %v1123_v35, %v783_v61  ;;  %v1073_v45 = vsel %vm1064_vm2, %v2017_v27, %v2360_v57  ;;  %v1074_v27 = vsel %vm1064_vm2, %v2020_v28, %v2382_v52 }
  0xfe   : > { %796 = vrot.lane.b32.xlu1 %v765_v53, %s1749_s7  ;;  %710 = vrot.lane.b32.xlu0 %v679_v54, %s1748_s6  ;;  %v1090_v61 = vsel %vm1081_vm3, %v1073_v45, %v2380_v49 }
 0x100   : > { %v601_v55 = vpop.permute.xlu1 %600  ;;  %v2392_v59 = vpop.permute.xlu0 %538 }
 0x101   : > { %v1091_v57 = vsel %vm1081_vm3, %v1074_v27, %v2392_v59 }
 0x102   : > { %798 = vrot.lane.b32.xlu1 %v767_v56, %s1749_s7  ;;  %1042 = vrot.lane.b32.xlu0 %v1010_v0, %s1752_s13  ;;  %v1107_v56 = vsel %vm1098_vm4, %v1090_v61, %v601_v55  ;;  %s293_s7 = scalar_lea.vmem %s2556_s5, %s1607_s20 }
 0x104   : > { %v941_v9 = vpop.permute.xlu1 %940  ;;  %v847_v34 = vpop.permute.xlu0 %846 }
 0x105   : > { %v1173_v50 = vsel %vm1166_vm8, %v1156_v23, %v941_v9  ;;  %v1157_v47 = vsel %vm1149_vm7, %v1140_v44, %v847_v34 }
 0x106   : > { %862 = vrot.lane.b32.xlu1 %v364_v5, %s1750_s11  ;;  %860 = vrot.lane.b32.xlu0 %v363_v15, %s1750_s11 }
 0x108   : > { %v697_v32 = vpop.permute.xlu1 %696  ;;  %v603_v16 = vpop.permute.xlu0 %602 }
 0x109   : > { %v1124_v15 = vsel %vm1115_vm5, %v1107_v56, %v697_v32  ;;  %v1108_v49 = vsel %vm1098_vm4, %v1091_v57, %v603_v16 }
 0x10a   : > { %958 = vrot.lane.b32.xlu1 %v927_v18, %s1751_s12  ;;  %956 = vrot.lane.b32.xlu0 %v925_v22, %s1751_s12 }
 0x10c   : > { %v1029_v19 = vpop.permute.xlu1 %1028  ;;  %v943_v8 = vpop.permute.xlu0 %942 }
 0x10d   : > { %v1190_v29 = vsel %vm1183_vm9, %v1173_v50, %v1029_v19  ;;  %v1174_v24 = vsel %vm1166_vm8, %v1157_v47, %v943_v8 }
 0x10e   : > { %1046 = vrot.lane.b32.xlu1 %v1015_v33, %s1752_s13  ;;  %1044 = vrot.lane.b32.xlu0 %v1013_v11, %s1752_s13 }
 0x10f   : > { %1679 = vmatprep.mubr.msk.f32.mxu0 %vm1209_vm10, %v1190_v29 }
 0x110   : > { %v699_v39 = vpop.permute.xlu1 %698  ;;  %v452_v58 = vpop.permute.xlu0 %451 }
 0x111   : > { %v1125_v3 = vsel %vm1115_vm5, %v1108_v49, %v699_v39  ;;  %v1075_v33 = vsel %vm1064_vm2, %v2081_v20, %v452_v58 }
 0x114   : > { %v1031_v40 = vpop.permute.xlu1 %1030  ;;  %v785_v63 = vpop.permute.xlu0 %784 }
 0x115   : > { %v1191_v43 = vsel %vm1183_vm9, %v1174_v24, %v1031_v40  ;;  %v1141_v7 = vsel %vm1132_vm6, %v1124_v15, %v785_v63 }
 0x116   : > { %1680 = vmatmul.mubr.msk.f32.gmra.mrb[6].mxu0 %vm1209_vm10, %v1191_v43 }
 0x118   : > { %v541_v41 = vpop.permute.xlu1 %540  ;;  %v454_v48 = vpop.permute.xlu0 %453 }
 0x119   : > { %v1092_v11 = vsel %vm1081_vm3, %v1075_v33, %v541_v41  ;;  %v1076_v20 = vsel %vm1064_vm2, %v2084_v21, %v454_v48 }
 0x11c   : > { %v849_v4 = vpop.permute.xlu1 %848  ;;  %v787_v53 = vpop.permute.xlu0 %786 }
 0x11d   : > { %v1158_v51 = vsel %vm1149_vm7, %v1141_v7, %v849_v4  ;;  %v1142_v1 = vsel %vm1132_vm6, %v1125_v3, %v787_v53 }
 0x120   : > { %v605_v54 = vpop.permute.xlu1 %604  ;;  %v543_v2 = vpop.permute.xlu0 %542 }
 0x121   : > { %v1109_v50 = vsel %vm1098_vm4, %v1092_v11, %v605_v54  ;;  %v1093_v58 = vsel %vm1081_vm3, %v1076_v20, %v543_v2 }
 0x124   : > { %v945_v30 = vpop.permute.xlu1 %944  ;;  %v851_v31 = vpop.permute.xlu0 %850 }
 0x125   : > { %v1175_v10 = vsel %vm1166_vm8, %v1158_v51, %v945_v30  ;;  %v1159_v17 = vsel %vm1149_vm7, %v1142_v1, %v851_v31 }
 0x128   : > { %v701_v0 = vpop.permute.xlu1 %700  ;;  %v607_v5 = vpop.permute.xlu0 %606 }
 0x129   : > { %v1126_v29 = vsel %vm1115_vm5, %v1109_v50, %v701_v0  ;;  %v1110_v47 = vsel %vm1098_vm4, %v1093_v58, %v607_v5 }
 0x12c   : > { %v1033_v26 = vpop.permute.xlu1 %1032  ;;  %v947_v9 = vpop.permute.xlu0 %946 }
 0x12d   : > { %v1192_v34 = vsel %vm1183_vm9, %v1175_v10, %v1033_v26  ;;  %v1176_v18 = vsel %vm1166_vm8, %v1159_v17, %v947_v9 }
 0x12e   : > { %1682 = vmatprep.mubr.msk.f32.mxu1 %vm1209_vm10, %v1192_v34 }
 0x130   : > { %v703_v55 = vpop.permute.xlu1 %702  ;;  %v456_v14 = vpop.permute.xlu0 %455 }
 0x131   : > { %v1127_v63 = vsel %vm1115_vm5, %v1110_v47, %v703_v55  ;;  %v1077_v5 = vsel %vm1064_vm2, %v2180_v42, %v456_v14 }
 0x134   : > { %v1035_v22 = vpop.permute.xlu1 %1034  ;;  %v789_v25 = vpop.permute.xlu0 %788 }
 0x135   : > { %v1193_v28 = vsel %vm1183_vm9, %v1176_v18, %v1035_v22  ;;  %v1143_v62 = vsel %vm1132_vm6, %v1126_v29, %v789_v25 }
 0x136   : > { %1683 = vmatmul.mubr.msk.f32.vlgmr.msra.gmra.mrb[0].mxu1 %vm1209_vm10, %v1193_v28 }
 0x138   : > { %v545_v52 = vpop.permute.xlu1 %544  ;;  %v458_v59 = vpop.permute.xlu0 %457 }
 0x139   : > { %v1094_v15 = vsel %vm1081_vm3, %v1077_v5, %v545_v52  ;;  %v1078_v42 = vsel %vm1064_vm2, %v2183_v37, %v458_v59 }
 0x13c   : > { %v853_v60 = vpop.permute.xlu1 %852  ;;  %v791_v32 = vpop.permute.xlu0 %790 }
 0x13d   : > { %v1160_v36 = vsel %vm1149_vm7, %v1143_v62, %v853_v60  ;;  %v1144_v43 = vsel %vm1132_vm6, %v1127_v63, %v791_v32 }
 0x140   : > { %v609_v16 = vpop.permute.xlu1 %608  ;;  %v547_v46 = vpop.permute.xlu0 %546 }
 0x141   : > { %v1111_v7 = vsel %vm1098_vm4, %v1094_v15, %v609_v16  ;;  %v1095_v14 = vsel %vm1081_vm3, %v1078_v42, %v547_v46 }
 0x144   : > { %v949_v12 = vpop.permute.xlu1 %948  ;;  %v855_v23 = vpop.permute.xlu0 %854 }
 0x145   : > { %v1177_v38 = vsel %vm1166_vm8, %v1160_v36, %v949_v12  ;;  %v1161_v41 = vsel %vm1149_vm7, %v1144_v43, %v855_v23 }
 0x148   : > { %v705_v19 = vpop.permute.xlu1 %704  ;;  %v611_v8 = vpop.permute.xlu0 %610 }
 0x149   : > { %v1128_v26 = vsel %vm1115_vm5, %v1111_v7, %v705_v19  ;;  %v1112_v3 = vsel %vm1098_vm4, %v1095_v14, %v611_v8 }
 0x14c   : > { %v1037_v39 = vpop.permute.xlu1 %1036  ;;  %v951_v35 = vpop.permute.xlu0 %950 }
 0x14d   : > { %v1194_v44 = vsel %vm1183_vm9, %v1177_v38, %v1037_v39  ;;  %v1178_v4 = vsel %vm1166_vm8, %v1161_v41, %v951_v35 }
 0x14e   : > { %1685 = vmatprep.mubr.msk.f32.mxu1 %vm1209_vm10, %v1194_v44 }
 0x150   : > { %v707_v24 = vpop.permute.xlu1 %706  ;;  %v460_v40 = vpop.permute.xlu0 %459 }
 0x151   : > { %v1129_v18 = vsel %vm1115_vm5, %v1112_v3, %v707_v24  ;;  %v1079_v16 = vsel %vm1064_vm2, %v2279_v13, %v460_v40 }
 0x154   : > { %v1039_v53 = vpop.permute.xlu1 %1038  ;;  %v793_v54 = vpop.permute.xlu0 %792 }
 0x155   : > { %v1195_v21 = vsel %vm1183_vm9, %v1178_v4, %v1039_v53  ;;  %v1145_v9 = vsel %vm1132_vm6, %v1128_v26, %v793_v54 }
 0x156   : > { %1686 = vmatmul.mubr.msk.f32.gmra.mrb[2].mxu1 %vm1209_vm10, %v1195_v21 }
 0x158   : > { %v549_v48 = vpop.permute.xlu1 %548  ;;  %v462_v2 = vpop.permute.xlu0 %461 }
 0x159   : > { %v1080_v46 = vsel %vm1064_vm2, %v2282_v6, %v462_v2  ;;  %v1096_v12 = vsel %vm1081_vm3, %v1079_v16, %v549_v48 }
 0x15c   : > { %v857_v30 = vpop.permute.xlu1 %856  ;;  %v795_v31 = vpop.permute.xlu0 %794 }
 0x15d   : > { %v1162_v34 = vsel %vm1149_vm7, %v1145_v9, %v857_v30  ;;  %v1146_v22 = vsel %vm1132_vm6, %v1129_v18, %v795_v31 }
 0x160   : > { %v613_v45 = vpop.permute.xlu1 %612  ;;  %v551_v61 = vpop.permute.xlu0 %550 }
 0x161   : > { %v1097_v23 = vsel %vm1081_vm3, %v1080_v46, %v551_v61  ;;  %v1113_v33 = vsel %vm1098_vm4, %v1096_v12, %v613_v45 }
 0x164   : > { %v953_v56 = vpop.permute.xlu1 %952  ;;  %v859_v0 = vpop.permute.xlu0 %858 }
 0x165   : > { %v1179_v27 = vsel %vm1166_vm8, %v1162_v34, %v953_v56  ;;  %v1163_v25 = vsel %vm1149_vm7, %v1146_v22, %v859_v0 }
 0x168   : > { %v709_v51 = vpop.permute.xlu1 %708  ;;  %v615_v10 = vpop.permute.xlu0 %614 }
 0x169   : > { %v1114_v11 = vsel %vm1098_vm4, %v1097_v23, %v615_v10  ;;  %v1130_v8 = vsel %vm1115_vm5, %v1113_v33, %v709_v51 }
 0x16c   : > { %v1041_v57 = vpop.permute.xlu1 %1040  ;;  %v955_v49 = vpop.permute.xlu0 %954 }
 0x16d   : > { %v1196_v55 = vsel %vm1183_vm9, %v1179_v27, %v1041_v57  ;;  %v1180_v28 = vsel %vm1166_vm8, %v1163_v25, %v955_v49 }
 0x16e   : > { %1688 = vmatprep.mubr.msk.f32.mxu1 %vm1209_vm10, %v1196_v55 }
 0x170   : > { %v797_v1 = vpop.permute.xlu1 %796  ;;  %v711_v17 = vpop.permute.xlu0 %710 }
 0x171   : > { %v1131_v29 = vsel %vm1115_vm5, %v1114_v11, %v711_v17  ;;  %v1147_v13 = vsel %vm1132_vm6, %v1130_v8, %v797_v1 }
 0x174   : > { %v799_v52 = vpop.permute.xlu1 %798  ;;  %v1043_v60 = vpop.permute.xlu0 %1042 }
 0x175   : > { %v1197_v37 = vsel %vm1183_vm9, %v1180_v28, %v1043_v60  ;;  %v1148_v62 = vsel %vm1132_vm6, %v1131_v29, %v799_v52 }
 0x176   : > { %1689 = vmatmul.mubr.msk.f32.gmra.mrb[4].mxu1 %vm1209_vm10, %v1197_v37 }
 0x178   : > { %v863_v59 = vpop.permute.xlu1 %862  ;;  %v861_v32 = vpop.permute.xlu0 %860 }
 0x179   : > { %v1165_v6 = vsel %vm1149_vm7, %v1148_v62, %v863_v59  ;;  %v1164_v36 = vsel %vm1149_vm7, %v1147_v13, %v861_v32 }
 0x17c   : > { %v959_v50 = vpop.permute.xlu1 %958  ;;  %v957_v19 = vpop.permute.xlu0 %956 }
 0x17d   : > { %v1182_v38 = vsel %vm1166_vm8, %v1165_v6, %v959_v50  ;;  %v1181_v39 = vsel %vm1166_vm8, %v1164_v36, %v957_v19 }
 0x180   : > { %v1047_v35 = vpop.permute.xlu1 %1046  ;;  %v1045_v44 = vpop.permute.xlu0 %1044 }
 0x181   : > { %v1199_v20 = vsel %vm1183_vm9, %v1182_v38, %v1047_v35  ;;  %v1198_v58 = vsel %vm1183_vm9, %v1181_v39, %v1045_v44 }
 0x182   : > { %1691 = vmatprep.mubr.msk.f32.mxu1 %vm1209_vm10, %v1198_v58 }
 0x183   : > { %1692 = vmatmul.mubr.msk.f32.gmra.mrb[6].mxu1 %vm1209_vm10, %v1199_v20 }
 0x18a   : > { %v1672_v47 = vpop.f32.mrb[0].mxu0 }
 0x18b   : > { %1404 = vst [vmem:[%s2525_s29 + $0x8] sm:$0xff] %v1672_v47  ;;  %v1441_v24 = vmul.f32 %v1672_v47, %v1672_v47  ;;  %v1324_v40 = vpop.f32.mrb[1].mxu0 }
 0x18c   : > { %1403 = vst [vmem:[%s2525_s29] sm:$0xff] %v1324_v40  ;;  %v1419_v63 = vadd.f32 %v1672_v47, %v1324_v40  ;;  %v1440_v43 = vmul.f32 %v1324_v40, %v1324_v40 }
 0x18e   : > { %v1456_v41 = vadd.f32 %v1441_v24, %v1440_v43 }
 0x1aa   : > { %v1675_v4 = vpop.f32.mrb[2].mxu0 }
 0x1ab   : > { %1406 = vst [vmem:[%s2525_s29 + $0x18] sm:$0xff] %v1675_v4  ;;  %v1334_v53 = vpop.f32.mrb[3].mxu0  ;;  %v1443_v48 = vmul.f32 %v1675_v4, %v1675_v4 }
 0x1ac   : > { %1405 = vst [vmem:[%s2525_s29 + $0x10] sm:$0xff] %v1334_v53  ;;  %v1420_v54 = vadd.f32 %v1419_v63, %v1334_v53  ;;  %v1442_v21 = vmul.f32 %v1334_v53, %v1334_v53 }
 0x1ae   : > { %v1457_v2 = vadd.f32 %v1456_v41, %v1442_v21  ;;  %v1421_v30 = vadd.f32 %v1675_v4, %v1420_v54 }
 0x1b0   : > { %v1458_v31 = vadd.f32 %v1457_v2, %v1443_v48 }
 0x1ca   : > { %v1678_v45 = vpop.f32.mrb[4].mxu0 }
 0x1cb   : > { %1408 = vst [vmem:[%s2525_s29 + $0x28] sm:$0xff] %v1678_v45  ;;  %v1344_v61 = vpop.f32.mrb[5].mxu0  ;;  %v1445_v5 = vmul.f32 %v1678_v45, %v1678_v45 }
 0x1cc   : > { %1407 = vst [vmem:[%s2525_s29 + $0x20] sm:$0xff] %v1344_v61  ;;  %v1422_v56 = vadd.f32 %v1421_v30, %v1344_v61  ;;  %v1444_v0 = vmul.f32 %v1344_v61, %v1344_v61 }
 0x1ce   : > { %v1459_v15 = vadd.f32 %v1458_v31, %v1444_v0  ;;  %v1423_v7 = vadd.f32 %v1678_v45, %v1422_v56 }
 0x1d0   : > { %v1460_v51 = vadd.f32 %v1459_v15, %v1445_v5 }
 0x1e9   : > { %v1681_v10 = vpop.f32.mrb[6].mxu0 }
 0x1ea   : > { %1410 = vst [vmem:[%s2525_s29 + $0x38] sm:$0xff] %v1681_v10  ;;  %v1354_v26 = vpop.f32.mrb[7].mxu0  ;;  %v1447_v27 = vmul.f32 %v1681_v10, %v1681_v10 }
 0x1eb   : > { %1409 = vst [vmem:[%s2525_s29 + $0x30] sm:$0xff] %v1354_v26  ;;  %v1424_v9 = vadd.f32 %v1423_v7, %v1354_v26  ;;  %v1446_v34 = vmul.f32 %v1354_v26, %v1354_v26 }
 0x1ed   : > { %v1425_v57 = vadd.f32 %v1681_v10, %v1424_v9  ;;  %v1461_v49 = vadd.f32 %v1460_v51, %v1446_v34 }
 0x1ef   : > { %v1462_v55 = vadd.f32 %v1461_v49, %v1447_v27 }
 0x209   : > { %v1684_v42 = vpop.f32.mrb[0].mxu1 }
 0x20a   : > { %1412 = vst [vmem:[%s2525_s29 + $0x48] sm:$0xff] %v1684_v42  ;;  %v1364_v14 = vpop.f32.mrb[1].mxu1  ;;  %v1449_v17 = vmul.f32 %v1684_v42, %v1684_v42 }
 0x20b   : > { %1411 = vst [vmem:[%s2525_s29 + $0x40] sm:$0xff] %v1364_v14  ;;  %v1426_v3 = vadd.f32 %v1425_v57, %v1364_v14  ;;  %v1448_v1 = vmul.f32 %v1364_v14, %v1364_v14 }
 0x20d   : > { %v1463_v18 = vadd.f32 %v1462_v55, %v1448_v1  ;;  %v1427_v22 = vadd.f32 %v1684_v42, %v1426_v3 }
 0x20f   : > { %v1464_v25 = vadd.f32 %v1463_v18, %v1449_v17 }
 0x229   : > { %v1687_v28 = vpop.f32.mrb[2].mxu1 }
 0x22a   : > { %1414 = vst [vmem:[%s2525_s29 + $0x58] sm:$0xff] %v1687_v28  ;;  %v1374_v52 = vpop.f32.mrb[3].mxu1  ;;  %v1451_v59 = vmul.f32 %v1687_v28, %v1687_v28 }
 0x22b   : > { %1413 = vst [vmem:[%s2525_s29 + $0x50] sm:$0xff] %v1374_v52  ;;  %v1428_v60 = vadd.f32 %v1427_v22, %v1374_v52  ;;  %v1450_v37 = vmul.f32 %v1374_v52, %v1374_v52 }
 0x22d   : > { %v1465_v32 = vadd.f32 %v1464_v25, %v1450_v37  ;;  %v1429_v16 = vadd.f32 %v1687_v28, %v1428_v60 }
 0x22f   : > { %v1466_v46 = vadd.f32 %v1465_v32, %v1451_v59 }
 0x249   : > { %v1690_v12 = vpop.f32.mrb[4].mxu1 }
 0x24a   : > { %1416 = vst [vmem:[%s2525_s29 + $0x68] sm:$0xff] %v1690_v12  ;;  %v1384_v23 = vpop.f32.mrb[5].mxu1  ;;  %v1453_v50 = vmul.f32 %v1690_v12, %v1690_v12 }
 0x24b   : > { %1415 = vst [vmem:[%s2525_s29 + $0x60] sm:$0xff] %v1384_v23  ;;  %v1430_v33 = vadd.f32 %v1429_v16, %v1384_v23  ;;  %v1452_v11 = vmul.f32 %v1384_v23, %v1384_v23 }
 0x24d   : > { %v1467_v19 = vadd.f32 %v1466_v46, %v1452_v11  ;;  %v1431_v8 = vadd.f32 %v1690_v12, %v1430_v33 }
 0x24f   : > { %v1468_v29 = vadd.f32 %v1467_v19, %v1453_v50 }
 0x256   : > { %v1693_v13 = vpop.f32.mrb[6].mxu1 }
 0x257   : > { %1418 = vst [vmem:[%s2525_s29 + $0x78] sm:$0xff] %v1693_v13  ;;  %v1394_v62 = vpop.f32.mrb[7].mxu1  ;;  %v1455_v38 = vmul.f32 %v1693_v13, %v1693_v13 }
 0x258   : > { %1417 = vst [vmem:[%s2525_s29 + $0x70] sm:$0xff] %v1394_v62  ;;  %v1432_v6 = vadd.f32 %v1431_v8, %v1394_v62  ;;  %v1454_v36 = vmul.f32 %v1394_v62, %v1394_v62 }
 0x25a   : > { %v1433_v39 = vadd.f32 %v1693_v13, %v1432_v6  ;;  %v1469_v35 = vadd.f32 %v1468_v29, %v1454_v36 }
 0x25c   : > { %v1434_v44 = vrot.slane %v1433_v39, 4  ;;  %v1470_v20 = vadd.f32 %v1469_v35, %v1455_v38 }
 0x25e   : > { %v1435_v58 = vadd.f32 %v1434_v44, %v1433_v39  ;;  %v1471_v47 = vrot.slane %v1470_v20, 4 }
 0x260   : > { %v1436_v24 = vrot.slane %v1435_v58, 2  ;;  %v1472_v40 = vadd.f32 %v1471_v47, %v1470_v20 }
 0x262   : > { %v1437_v63 = vadd.f32 %v1436_v24, %v1435_v58  ;;  %v1473_v43 = vrot.slane %v1472_v40, 2 }
 0x264   : > { %v1438_v41 = vrot.slane %v1437_v63, 1  ;;  %v1474_v4 = vadd.f32 %v1473_v43, %v1472_v40 }
 0x266   : > { %v1475_v53 = vrot.slane %v1474_v4, 1  ;;  %v1439_v54 = vadd.f32 %v1438_v41, %v1437_v63 }
 0x268   : > { %v1476_v21 = vadd.f32 %v1475_v53, %v1474_v4 }
 0x26a   : > { %v1478_v48 = vsel %vm1477_vm11, %v1439_v54, %v1476_v21 }
 0x26b   : > { %1479 = vst [vmem:[%s293_s7] sm:$0x3] %v1478_v48 }
 0x26c PF: > { %s16_s18 = sadd.s32 1, %s1743_s18  }
 0x26d   : > { %p13_p5 = scmp.ge.s32.totalorder %s16_s18, 6  }
 0x26f   :  { %15 = sbr.rel (!%p13_p5) target bundleno = 1 (0x1), region = 84 }

// kernel: unet_down.7
= control target key start
LH: loop header
LB: loop body
LE: loop exit
PB: predicated region body
PF: predicated region fallthrough
CT: control target
= control target key end

     0   :  { %s1368_s12 = smov 0   ;;  %s1997_s0 = inlined_call_operand.vmem [shape: f32[32,16,128], index: 0, kind: input, shape index: {}]   ;;  %s1998_s1 = inlined_call_operand.vmem [shape: f32[1,128], index: 1, kind: input, shape index: {}]   ;;  %s1999_s2 = inlined_call_operand.vmem [shape: f32[1,128], index: 2, kind: input, shape index: {}]   ;;  %s2000_s3 = inlined_call_operand.vmem [shape: f32[16,8,128], index: 3, kind: output, shape index: {}]  }
   0x1 LB: > { %s1283_s13 = sadd.s32 4294967295, %s1345_s12   ;;  %p1287_p0 = scmp.ge.s32.totalorder %s1345_s12, 1  ;;  %s1345_s12 = sphi %s1368_s12, %s13_s12  }
   0x2   : > { %p139_p1 = scmp.lt.s32.totalorder %s1345_s12, 5 }
   0x4   : > { %p140_p2 = pnand %p1287_p0, %p139_p1 }
   0x6   : > { %143 = sbr.rel (%p140_p2) target bundleno = 198 (0xc6), region = 32 }
   0xd   : > { %s1288_s14 = sshll.u32 %s1283_s13, 3  ;;  %v1293_v2 = vld [vmem:[%s1998_s1] ss:$0 sm:$0xff]  ;;  %v1347_v15 = vmov 1983009808   ;;  %v339_v17 = vlaneseq  ;;  %vm671_vm0 = vcmask 1041408  }
   0xe   : > { %p165_p3 = scmp.lt.s32.totalorder %s1288_s14, 31  ;;  %v1294_v12 = vld [vmem:[%s1999_s2] ss:$0 sm:$0xff]  ;;  %v337_v16 = vunpack.c.l.s4 %v1347_v15  ;;  %s1901_s23 = sshll.u32 %s1283_s13, 2  ;;  %vm1184_vm1 = vcmask 1041409   ;;  %vm1186_vm2 = vcmask 1042434  }
   0xf   : > { %v340_v34 = vshrl.u32 %v339_v17, 7  ;;  %p172_p4 = scmp.lt.s32.totalorder %s1901_s23, 15  ;;  %vm1188_vm3 = vcmask 1043459   ;;  %vm1190_vm4 = vcmask 1044484   ;;  %vm1192_vm5 = vcmask 1045509  }
  0x10   : > { %s2074_s14 = smov (!%p165_p3, %s1288_s14), 31  ;;  %v338_v33 = vunpack.c.0.s8 %v337_v16  ;;  %vm1194_vm6 = vcmask 1046534   ;;  %vm1196_vm7 = vcmask 1047559  }
  0x11   : > { %s1297_s15 = sshll.u32 %s2074_s14, 4  ;;  %s2076_s23 = smov (!%p172_p4, %s1901_s23), 15 }
  0x12   : > { %s1381_s18 = scalar_lea.vmem %s1997_s0, %s1297_s15  ;;  %v1405_v57 = vsub.s32 %v338_v33, %v340_v34  ;;  %s1292_s24 = sshll.u32 %s2076_s23, 3 }
  0x13   : > { %v177_v0 = vld [vmem:[%s1381_s18] sm:$0xff]  ;;  %v178_v1 = vld [vmem:[%s1381_s18 + $0x8] sm:$0xff]  ;;  %v179_v3 = vld [vmem:[%s1381_s18 + $0x10] sm:$0xff]  ;;  %s175_s27 = scalar_lea.vmem %s2000_s3, %s1292_s24 }
  0x14   : > { %v180_v4 = vld [vmem:[%s1381_s18 + $0x18] sm:$0xff]  ;;  %v181_v5 = vld [vmem:[%s1381_s18 + $0x20] sm:$0xff]  ;;  %v182_v6 = vld [vmem:[%s1381_s18 + $0x28] sm:$0xff]  ;;  %v200_v7 = vmul.f32 %v1293_v2, %v177_v0  ;;  %v201_v8 = vmul.f32 %v1293_v2, %v178_v1  ;;  %v202_v10 = vmul.f32 %v1293_v2, %v179_v3 }
  0x15   : > { %v183_v9 = vld [vmem:[%s1381_s18 + $0x30] sm:$0xff]  ;;  %v203_v11 = vmul.f32 %v1293_v2, %v180_v4  ;;  %v184_v13 = vld [vmem:[%s1381_s18 + $0x38] sm:$0xff]  ;;  %v204_v14 = vmul.f32 %v1293_v2, %v181_v5  ;;  %v185_v18 = vld [vmem:[%s1381_s18 + $0x40] sm:$0xff]  ;;  %v205_v19 = vmul.f32 %v1293_v2, %v182_v6 }
  0x16   : > { %v186_v20 = vld [vmem:[%s1381_s18 + $0x48] sm:$0xff]  ;;  %v187_v21 = vld [vmem:[%s1381_s18 + $0x50] sm:$0xff]  ;;  %v188_v22 = vld [vmem:[%s1381_s18 + $0x58] sm:$0xff]  ;;  %v206_v23 = vmul.f32 %v1293_v2, %v183_v9  ;;  %v223_v24 = vadd.f32 %v1294_v12, %v200_v7  ;;  %v224_v25 = vadd.f32 %v1294_v12, %v201_v8  ;;  %v207_v27 = vmul.f32 %v1293_v2, %v184_v13 }
  0x17   : > { %v189_v26 = vld [vmem:[%s1381_s18 + $0x60] sm:$0xff]  ;;  %v225_v28 = vadd.f32 %v1294_v12, %v202_v10  ;;  %v226_v29 = vadd.f32 %v1294_v12, %v203_v11  ;;  %v190_v30 = vld [vmem:[%s1381_s18 + $0x68] sm:$0xff]  ;;  %v208_v31 = vmul.f32 %v1293_v2, %v185_v18  ;;  %v227_v32 = vadd.f32 %v1294_v12, %v204_v14  ;;  %v191_v35 = vld [vmem:[%s1381_s18 + $0x70] sm:$0xff] }
  0x18   : > { %v209_v36 = vmul.f32 %v1293_v2, %v186_v20  ;;  %v210_v37 = vmul.f32 %v1293_v2, %v187_v21  ;;  %v211_v38 = vmul.f32 %v1293_v2, %v188_v22  ;;  %v228_v39 = vadd.f32 %v1294_v12, %v205_v19  ;;  %v192_v40 = vld [vmem:[%s1381_s18 + $0x78] sm:$0xff] }
  0x19   : > { %v212_v41 = vmul.f32 %v1293_v2, %v189_v26  ;;  %v229_v42 = vadd.f32 %v1294_v12, %v206_v23  ;;  %v255_v43 = vmul.f32 0.70710677, %v223_v24  ;;  %v256_v44 = vmul.f32 0.70710677, %v224_v25 }
  0x1a   : > { %v213_v45 = vmul.f32 %v1293_v2, %v190_v30  ;;  %v230_v46 = vadd.f32 %v1294_v12, %v207_v27  ;;  %v257_v47 = vmul.f32 0.70710677, %v225_v28  ;;  %v258_v48 = vmul.f32 0.70710677, %v226_v29 }
  0x1b   : > { %v214_v49 = vmul.f32 %v1293_v2, %v191_v35  ;;  %v231_v50 = vadd.f32 %v1294_v12, %v208_v31  ;;  %v259_v51 = vmul.f32 0.70710677, %v227_v32  ;;  %1307 = verf.f32 %v255_v43 }
  0x1c   : > { %v215_v52 = vmul.f32 %v1293_v2, %v192_v40  ;;  %v232_v53 = vadd.f32 %v1294_v12, %v209_v36  ;;  %v260_v54 = vmul.f32 0.70710677, %v228_v39  ;;  %1309 = verf.f32 %v256_v44 }
  0x1d   : > { %v233_v55 = vadd.f32 %v1294_v12, %v210_v37  ;;  %v261_v56 = vmul.f32 0.70710677, %v229_v42  ;;  %1311 = verf.f32 %v257_v47  ;;  %v234_v58 = vadd.f32 %v1294_v12, %v211_v38 }
  0x1e   : > { %v235_v59 = vadd.f32 %v1294_v12, %v212_v41  ;;  %v262_v60 = vmul.f32 0.70710677, %v230_v46  ;;  %1313 = verf.f32 %v258_v48  ;;  %v236_v61 = vadd.f32 %v1294_v12, %v213_v45 }
  0x1f   : > { %v237_v62 = vadd.f32 %v1294_v12, %v214_v49  ;;  %v263_v63 = vmul.f32 0.70710677, %v231_v50  ;;  %1315 = verf.f32 %v259_v51  ;;  %v238_v0 = vadd.f32 %v1294_v12, %v215_v52 }
  0x20   : > { %v239_v1 = vmul.f32 0.5, %v223_v24  ;;  %v264_v3 = vmul.f32 0.70710677, %v232_v53  ;;  %1317 = verf.f32 %v260_v54  ;;  %v240_v2 = vmul.f32 0.5, %v224_v25 }
  0x21   : > { %v241_v4 = vmul.f32 0.5, %v225_v28  ;;  %v265_v5 = vmul.f32 0.70710677, %v233_v55  ;;  %1319 = verf.f32 %v261_v56  ;;  %v242_v6 = vmul.f32 0.5, %v226_v29 }
  0x22   : > { %v243_v7 = vmul.f32 0.5, %v227_v32  ;;  %v266_v8 = vmul.f32 0.70710677, %v234_v58  ;;  %1321 = verf.f32 %v262_v60  ;;  %v244_v9 = vmul.f32 0.5, %v228_v39 }
  0x23   : > { %v245_v10 = vmul.f32 0.5, %v229_v42  ;;  %v267_v11 = vmul.f32 0.70710677, %v235_v59  ;;  %1323 = verf.f32 %v263_v63  ;;  %v246_v13 = vmul.f32 0.5, %v230_v46 }
  0x24   : > { %v247_v14 = vmul.f32 0.5, %v231_v50  ;;  %v268_v15 = vmul.f32 0.70710677, %v236_v61  ;;  %1325 = verf.f32 %v264_v3  ;;  %v248_v16 = vmul.f32 0.5, %v232_v53 }
  0x25   : > { %v1308_v12 = vpop.eup %1307  ;;  %v1407_v17 = vmul.f32 0.5, %v233_v55  ;;  %v269_v18 = vmul.f32 0.70710677, %v237_v62  ;;  %1327 = verf.f32 %v265_v5  ;;  %v1409_v20 = vmul.f32 0.5, %v234_v58 }
  0x26   : > { %v1310_v19 = vpop.eup %1309  ;;  %v270_v21 = vmul.f32 0.70710677, %v238_v0  ;;  %1329 = verf.f32 %v266_v8  ;;  %v287_v22 = vadd.f32 1.0, %v1308_v12  ;;  %v1411_v24 = vmul.f32 0.5, %v235_v59 }
  0x27   : > { %v1312_v23 = vpop.eup %1311  ;;  %v1413_v25 = vmul.f32 0.5, %v236_v61  ;;  %1331 = verf.f32 %v267_v11  ;;  %v288_v26 = vadd.f32 1.0, %v1310_v19  ;;  %v1415_v28 = vmul.f32 0.5, %v237_v62 }
  0x28   : > { %v1314_v27 = vpop.eup %1313  ;;  %1333 = verf.f32 %v268_v15  ;;  %v289_v29 = vadd.f32 1.0, %v1312_v23  ;;  %v303_v30 = vmul.f32 %v287_v22, %v239_v1  ;;  %v1417_v32 = vmul.f32 0.5, %v238_v0 }
  0x29   : > { %v1316_v31 = vpop.eup %1315  ;;  %1335 = verf.f32 %v269_v18  ;;  %v290_v33 = vadd.f32 1.0, %v1314_v27  ;;  %v304_v34 = vmul.f32 %v288_v26, %v240_v2 }
  0x2a   : > { %v1318_v35 = vpop.eup %1317  ;;  %1337 = verf.f32 %v270_v21  ;;  %v291_v36 = vadd.f32 1.0, %v1316_v31  ;;  %v305_v37 = vmul.f32 %v289_v29, %v241_v4  ;;  %v335_v38 = vcombine.high %v303_v30, %v303_v30 }
  0x2b   : > { %v1320_v39 = vpop.eup %1319  ;;  %v292_v40 = vadd.f32 1.0, %v1318_v35  ;;  %v306_v41 = vmul.f32 %v290_v33, %v242_v6  ;;  %v1420_v42 = vrot.slane %v303_v30, %v1405_v57  ;;  %v352_v43 = vcombine.high %v304_v34, %v304_v34 }
  0x2c   : > { %v1322_v44 = vpop.eup %1321  ;;  %v293_v45 = vadd.f32 1.0, %v1320_v39  ;;  %v307_v46 = vmul.f32 %v291_v36, %v243_v7  ;;  %v1423_v47 = vrot.slane %v335_v38, %v1405_v57  ;;  %v1426_v48 = vrot.slane %v304_v34, %v1405_v57 }
  0x2d   : > { %v1324_v49 = vpop.eup %1323  ;;  %v294_v50 = vadd.f32 1.0, %v1322_v44  ;;  %v308_v51 = vmul.f32 %v292_v40, %v244_v9  ;;  %v350_v52 = vcombine.high %v1420_v42, %v1420_v42  ;;  %v1431_v53 = vrot.slane %v352_v43, %v1405_v57 }
  0x2e   : > { %v1326_v54 = vpop.eup %1325  ;;  %v295_v55 = vadd.f32 1.0, %v1324_v49  ;;  %v309_v56 = vmul.f32 %v293_v45, %v245_v10  ;;  %v351_v58 = vcombine.high %v1423_v47, %v1423_v47  ;;  %v367_v59 = vcombine.high %v1426_v48, %v1426_v48 }
  0x2f   : > { %v1328_v60 = vpop.eup %1327  ;;  %v296_v61 = vadd.f32 1.0, %v1326_v54  ;;  %v310_v62 = vmul.f32 %v294_v50, %v246_v13  ;;  %v368_v63 = vcombine.high %v1431_v53, %v1431_v53  ;;  %v369_v0 = vcombine.high %v305_v37, %v305_v37 }
  0x30   : > { %v1330_v1 = vpop.eup %1329  ;;  %v297_v3 = vadd.f32 1.0, %v1328_v60  ;;  %v311_v2 = vmul.f32 %v295_v55, %v247_v14  ;;  %v1440_v4 = vrot.slane %v305_v37, %v1405_v57  ;;  %v386_v5 = vcombine.high %v306_v41, %v306_v41 }
  0x31   : > { %v1332_v6 = vpop.eup %1331  ;;  %v298_v7 = vadd.f32 1.0, %v1330_v1  ;;  %v312_v8 = vmul.f32 %v296_v61, %v248_v16  ;;  %v1443_v9 = vrot.slane %v369_v0, %v1405_v57  ;;  %v1446_v10 = vrot.slane %v306_v41, %v1405_v57 }
  0x32   : > { %v1334_v11 = vpop.eup %1333  ;;  %v299_v13 = vadd.f32 1.0, %v1332_v6  ;;  %v313_v15 = vmul.f32 %v297_v3, %v1407_v17  ;;  %v384_v14 = vcombine.high %v1440_v4, %v1440_v4  ;;  %v1452_v12 = vrot.slane %v386_v5, %v1405_v57 }
  0x33   : > { %v1336_v18 = vpop.eup %1335  ;;  %v300_v19 = vadd.f32 1.0, %v1334_v11  ;;  %v314_v16 = vmul.f32 %v298_v7, %v1409_v20  ;;  %v385_v21 = vcombine.high %v1443_v9, %v1443_v9  ;;  %v401_v22 = vcombine.high %v1446_v10, %v1446_v10 }
  0x34   : > { %v1338_v23 = vpop.eup %1337  ;;  %v301_v26 = vadd.f32 1.0, %v1336_v18  ;;  %v315_v17 = vmul.f32 %v299_v13, %v1411_v24  ;;  %v402_v27 = vcombine.high %v1452_v12, %v1452_v12  ;;  %v403_v29 = vcombine.high %v307_v46, %v307_v46 }
  0x35   : > { %v302_v30 = vadd.f32 1.0, %v1338_v23  ;;  %v316_v31 = vmul.f32 %v300_v19, %v1413_v25  ;;  %v1464_v33 = vrot.slane %v307_v46, %v1405_v57  ;;  %v420_v20 = vcombine.high %v308_v51, %v308_v51 }
  0x36   : > { %v317_v34 = vmul.f32 %v301_v26, %v1415_v28  ;;  %v1468_v35 = vrot.slane %v403_v29, %v1405_v57  ;;  %v1471_v36 = vrot.slane %v308_v51, %v1405_v57  ;;  %v437_v24 = vcombine.high %v309_v56, %v309_v56 }
  0x37   : > { %v318_v37 = vmul.f32 %v302_v30, %v1417_v32  ;;  %v1477_v25 = vrot.slane %v420_v20, %v1405_v57  ;;  %v1480_v39 = vrot.slane %v309_v56, %v1405_v57  ;;  %v454_v43 = vcombine.high %v310_v62, %v310_v62 }
  0x38   : > { %v1487_v41 = vrot.slane %v437_v24, %v1405_v57  ;;  %v1494_v45 = vrot.slane %v310_v62, %v1405_v57  ;;  %v471_v46 = vcombine.high %v311_v2, %v311_v2  ;;  %v1502_v51 = vrot.slane %v311_v2, %v1405_v57 }
  0x39   : > { %v1499_v50 = vrot.slane %v454_v43, %v1405_v57  ;;  %v488_v54 = vcombine.high %v312_v8, %v312_v8  ;;  %v1510_v60 = vrot.slane %v312_v8, %v1405_v57  ;;  %v505_v61 = vcombine.high %v313_v15, %v313_v15 }
  0x3a   : > { %v1507_v56 = vrot.slane %v471_v46, %v1405_v57  ;;  %v1520_v3 = vrot.slane %v313_v15, %v1405_v57  ;;  %v522_v7 = vcombine.high %v314_v16, %v314_v16  ;;  %v1534_v13 = vrot.slane %v314_v16, %v1405_v57 }
  0x3b   : > { %v1517_v1 = vrot.slane %v488_v54, %v1405_v57  ;;  %v1527_v6 = vrot.slane %v505_v61, %v1405_v57  ;;  %v539_v15 = vcombine.high %v315_v17, %v315_v17  ;;  %v1542_v23 = vrot.slane %v315_v17, %v1405_v57 }
  0x3c   : > { %v1539_v19 = vrot.slane %v522_v7, %v1405_v57  ;;  %v556_v26 = vcombine.high %v316_v31, %v316_v31  ;;  %v1550_v16 = vrot.slane %v316_v31, %v1405_v57  ;;  %v573_v20 = vcombine.high %v317_v34, %v317_v34 }
  0x3d   : > { %v1547_v30 = vrot.slane %v539_v15, %v1405_v57  ;;  %v1560_v46 = vrot.slane %v317_v34, %v1405_v57  ;;  %v590_v7 = vcombine.high %v318_v37, %v318_v37  ;;  %v1574_v43 = vrot.slane %v318_v37, %v1405_v57 }
  0x3e   : > { %v1557_v17 = vrot.slane %v556_v26, %v1405_v57  ;;  %v1567_v61 = vrot.slane %v573_v20, %v1405_v57  ;;  %v672_v34 = vsel %vm671_vm0, %v1420_v42, -inf  ;;  %v679_v15 = vsel %vm671_vm0, %v350_v52, -inf }
  0x3f   : > { %v1581_v31 = vrot.slane %v590_v7, %v1405_v57  ;;  %v673_v20 = vrot.slane %v672_v34, 4  ;;  %v680_v37 = vrot.slane %v679_v15, 4  ;;  %v686_v24 = vsel %vm671_vm0, %v1423_v47, -inf }
  0x40   : > { %v693_v54 = vsel %vm671_vm0, %v351_v58, -inf  ;;  %v687_v29 = vrot.slane %v686_v24, 4  ;;  %v700_v52 = vsel %vm671_vm0, %v1426_v48, -inf  ;;  %v707_v26 = vsel %vm671_vm0, %v367_v59, -inf }
  0x41   : > { %v674_v7 = vmax.f32 %v672_v34, %v673_v20  ;;  %v694_v42 = vrot.slane %v693_v54, 4  ;;  %v681_v18 = vmax.f32 %v679_v15, %v680_v37  ;;  %v714_v47 = vsel %vm671_vm0, %v1431_v53, -inf }
  0x42   : > { %v688_v58 = vmax.f32 %v686_v24, %v687_v29  ;;  %v701_v5 = vrot.slane %v700_v52, 4  ;;  %v708_v34 = vrot.slane %v707_v26, 4  ;;  %v715_v20 = vrot.slane %v714_v47, 4 }
  0x43   : > { %v675_v11 = vrot.slane %v674_v7, 2  ;;  %v695_v8 = vmax.f32 %v693_v54, %v694_v42  ;;  %v682_v57 = vrot.slane %v681_v18, 2  ;;  %v721_v15 = vsel %vm671_vm0, %v368_v63, -inf }
  0x44   : > { %v689_v2 = vrot.slane %v688_v58, 2  ;;  %v702_v0 = vmax.f32 %v700_v52, %v701_v5  ;;  %v709_v62 = vmax.f32 %v707_v26, %v708_v34  ;;  %v716_v55 = vmax.f32 %v714_v47, %v715_v20 }
  0x45   : > { %v676_v37 = vmax.f32 %v674_v7, %v675_v11  ;;  %v696_v48 = vrot.slane %v695_v8, 2  ;;  %v683_v59 = vmax.f32 %v681_v18, %v682_v57  ;;  %v722_v49 = vrot.slane %v721_v15, 4 }
  0x46   : > { %v690_v29 = vmax.f32 %v688_v58, %v689_v2  ;;  %v703_v54 = vrot.slane %v702_v0, 2  ;;  %v710_v32 = vrot.slane %v709_v62, 2  ;;  %v717_v40 = vrot.slane %v716_v55, 2 }
  0x47   : > { %v677_v44 = vrot.slane %v676_v37, 1  ;;  %v697_v24 = vmax.f32 %v695_v8, %v696_v48  ;;  %v684_v42 = vrot.slane %v683_v59, 1  ;;  %v723_v28 = vmax.f32 %v721_v15, %v722_v49 }
  0x48   : > { %v691_v53 = vrot.slane %v690_v29, 1  ;;  %v704_v11 = vmax.f32 %v702_v0, %v703_v54  ;;  %v711_v5 = vmax.f32 %v709_v62, %v710_v32  ;;  %v718_v18 = vmax.f32 %v716_v55, %v717_v40 }
  0x49   : > { %v1609_v38 = vmax.f32 %v676_v37, %v677_v44  ;;  %v698_v63 = vrot.slane %v697_v24, 1  ;;  %v1611_v7 = vmax.f32 %v683_v59, %v684_v42  ;;  %v724_v26 = vrot.slane %v723_v28, 2 }
  0x4a   : > { %v1613_v57 = vmax.f32 %v690_v29, %v691_v53  ;;  %v705_v2 = vrot.slane %v704_v11, 1  ;;  %v728_v8 = vsel %vm671_vm0, %v1440_v4, -inf  ;;  %v712_v47 = vrot.slane %v711_v5, 1 }
  0x4b   : > { %v1615_v52 = vmax.f32 %v697_v24, %v698_v63  ;;  %v719_v49 = vrot.slane %v718_v18, 1  ;;  %v725_v44 = vmax.f32 %v723_v28, %v724_v26  ;;  %v729_v58 = vrot.slane %v728_v8, 4 }
  0x4c   : > { %v1619_v34 = vmax.f32 %v704_v11, %v705_v2  ;;  %v735_v40 = vsel %vm671_vm0, %v384_v14, -inf  ;;  %v742_v32 = vsel %vm671_vm0, %v1443_v9, -inf  ;;  %v749_v55 = vsel %vm671_vm0, %v385_v21, -inf }
  0x4d   : > { %v1631_v62 = vmax.f32 %v711_v5, %v712_v47  ;;  %v1633_v0 = vmax.f32 %v718_v18, %v719_v49  ;;  %v726_v28 = vrot.slane %v725_v44, 1  ;;  %v730_v20 = vmax.f32 %v728_v8, %v729_v58 }
  0x4e   : > { %v736_v15 = vrot.slane %v735_v40, 4  ;;  %v743_v37 = vrot.slane %v742_v32, 4  ;;  %v750_v48 = vrot.slane %v749_v55, 4  ;;  %v756_v4 = vsel %vm671_vm0, %v1446_v10, -inf }
  0x4f   : > { %2001 = vst [vmem:[#allocation2_spill] sm:$0xff] %v1633_v0  ;;  %v1637_v14 = vmax.f32 %v725_v44, %v726_v28  ;;  %v731_v59 = vrot.slane %v730_v20, 2  ;;  %v757_v29 = vrot.slane %v756_v4, 4  ;;  %v763_v9 = vsel %vm671_vm0, %v401_v22, -inf }
  0x50   : > { %v737_v21 = vmax.f32 %v735_v40, %v736_v15  ;;  %v744_v24 = vmax.f32 %v742_v32, %v743_v37  ;;  %v751_v54 = vmax.f32 %v749_v55, %v750_v48  ;;  %v764_v42 = vrot.slane %v763_v9, 4 }
  0x51   : > { %2002 = vst [vmem:[#allocation3_spill] sm:$0xff] %v1637_v14  ;;  %v732_v53 = vmax.f32 %v730_v20, %v731_v59  ;;  %v758_v63 = vmax.f32 %v756_v4, %v757_v29  ;;  %v770_v11 = vsel %vm671_vm0, %v1452_v12, -inf  ;;  %v777_v5 = vsel %vm671_vm0, %v402_v27, -inf }
  0x52   : > { %v738_v18 = vrot.slane %v737_v21, 2  ;;  %v745_v26 = vrot.slane %v744_v24, 2  ;;  %v752_v2 = vrot.slane %v751_v54, 2  ;;  %v765_v10 = vmax.f32 %v763_v9, %v764_v42 }
  0x53   : > { %v733_v8 = vrot.slane %v732_v53, 1  ;;  %v759_v22 = vrot.slane %v758_v63, 2  ;;  %v771_v47 = vrot.slane %v770_v11, 4  ;;  %v778_v49 = vrot.slane %v777_v5, 4 }
  0x54   : > { %v739_v44 = vmax.f32 %v737_v21, %v738_v18  ;;  %v746_v58 = vmax.f32 %v744_v24, %v745_v26  ;;  %v753_v40 = vmax.f32 %v751_v54, %v752_v2  ;;  %v766_v32 = vrot.slane %v765_v10, 2 }
  0x55   : > { %v1649_v55 = vmax.f32 %v732_v53, %v733_v8  ;;  %v760_v28 = vmax.f32 %v758_v63, %v759_v22  ;;  %v772_v20 = vmax.f32 %v770_v11, %v771_v47  ;;  %v779_v15 = vmax.f32 %v777_v5, %v778_v49 }
  0x56   : > { %v740_v12 = vrot.slane %v739_v44, 1  ;;  %v747_v37 = vrot.slane %v746_v58, 1  ;;  %v754_v27 = vrot.slane %v753_v40, 1  ;;  %v767_v48 = vmax.f32 %v765_v10, %v766_v32 }
  0x57   : > { %v761_v4 = vrot.slane %v760_v28, 1  ;;  %v773_v59 = vrot.slane %v772_v20, 2  ;;  %v780_v29 = vrot.slane %v779_v15, 2  ;;  %v784_v9 = vsel %vm671_vm0, %v1464_v33, -inf }
  0x58   : > { %v1653_v42 = vmax.f32 %v739_v44, %v740_v12  ;;  %v1655_v21 = vmax.f32 %v746_v58, %v747_v37  ;;  %v1657_v24 = vmax.f32 %v753_v40, %v754_v27  ;;  %v768_v54 = vrot.slane %v767_v48, 1 }
  0x59   : > { %v1659_v53 = vmax.f32 %v760_v28, %v761_v4  ;;  %v774_v63 = vmax.f32 %v772_v20, %v773_v59  ;;  %v781_v11 = vmax.f32 %v779_v15, %v780_v29  ;;  %v785_v5 = vrot.slane %v784_v9, 4 }
  0x5a   : > { %v1661_v18 = vmax.f32 %v767_v48, %v768_v54  ;;  %v2003_v26 = vcombine.high %v1464_v33, %v1464_v33  ;;  %v798_v10 = vsel %vm671_vm0, %v1468_v35, -inf  ;;  %v2004_v8 = vcombine.high %v1468_v35, %v1468_v35 }
  0x5b   : > { %v775_v47 = vrot.slane %v774_v63, 1  ;;  %v782_v49 = vrot.slane %v781_v11, 1  ;;  %v786_v44 = vmax.f32 %v784_v9, %v785_v5  ;;  %v799_v40 = vrot.slane %v798_v10, 4 }
  0x5c   : > { %v791_v2 = vsel %vm671_vm0, %v2003_v26, -inf  ;;  %v805_v22 = vsel %vm671_vm0, %v2004_v8, -inf  ;;  %v812_v28 = vsel %vm671_vm0, %v1471_v36, -inf  ;;  %v2005_v33 = vcombine.high %v1471_v36, %v1471_v36 }
  0x5d   : > { %v792_v58 = vrot.slane %v791_v2, 4  ;;  %v806_v32 = vrot.slane %v805_v22, 4  ;;  %v1679_v15 = vmax.f32 %v774_v63, %v775_v47  ;;  %v1681_v12 = vmax.f32 %v781_v11, %v782_v49 }
  0x5e   : > { %v819_v20 = vsel %vm671_vm0, %v2005_v33, -inf  ;;  %v787_v35 = vrot.slane %v786_v44, 2  ;;  %v800_v27 = vmax.f32 %v798_v10, %v799_v40  ;;  %v813_v4 = vrot.slane %v812_v28, 4 }
  0x5f   : > { %2006 = vst [vmem:[#allocation4_spill] sm:$0xff] %v1679_v15  ;;  %2007 = vst [vmem:[#allocation5_spill] sm:$0xff] %v1681_v12  ;;  %v793_v37 = vmax.f32 %v791_v2, %v792_v58  ;;  %v807_v48 = vmax.f32 %v805_v22, %v806_v32  ;;  %v820_v59 = vrot.slane %v819_v20, 4  ;;  %v826_v54 = vsel %vm671_vm0, %v1477_v25, -inf }
  0x60   : > { %v788_v29 = vmax.f32 %v786_v44, %v787_v35  ;;  %v2008_v36 = vcombine.high %v1477_v25, %v1477_v25  ;;  %v801_v63 = vrot.slane %v800_v27, 2  ;;  %v814_v11 = vmax.f32 %v812_v28, %v813_v4 }
  0x61   : > { %v794_v9 = vrot.slane %v793_v37, 2  ;;  %v808_v26 = vrot.slane %v807_v48, 2  ;;  %v821_v8 = vmax.f32 %v819_v20, %v820_v59  ;;  %v827_v10 = vrot.slane %v826_v54, 4 }
  0x62   : > { %v833_v5 = vsel %vm671_vm0, %v2008_v36, -inf  ;;  %v789_v47 = vrot.slane %v788_v29, 1  ;;  %v802_v49 = vmax.f32 %v800_v27, %v801_v63  ;;  %v815_v44 = vrot.slane %v814_v11, 2 }
  0x63   : > { %v795_v2 = vmax.f32 %v793_v37, %v794_v9  ;;  %v834_v22 = vrot.slane %v833_v5, 4  ;;  %v809_v58 = vmax.f32 %v807_v48, %v808_v26  ;;  %v822_v40 = vrot.slane %v821_v8, 2 }
  0x64   : > { %v1689_v32 = vmax.f32 %v788_v29, %v789_v47  ;;  %v828_v35 = vmax.f32 %v826_v54, %v827_v10  ;;  %v803_v25 = vrot.slane %v802_v49, 1  ;;  %v816_v36 = vmax.f32 %v814_v11, %v815_v44 }
  0x65   : > { %v796_v33 = vrot.slane %v795_v2, 1  ;;  %v835_v14 = vmax.f32 %v833_v5, %v834_v22  ;;  %v810_v12 = vrot.slane %v809_v58, 1  ;;  %v823_v0 = vmax.f32 %v821_v8, %v822_v40 }
  0x66   : > { %v829_v28 = vrot.slane %v828_v35, 2  ;;  %v840_v37 = vsel %vm671_vm0, %v1480_v39, -inf  ;;  %v1695_v27 = vmax.f32 %v802_v49, %v803_v25  ;;  %v817_v4 = vrot.slane %v816_v36, 1 }
  0x67   : > { %v1691_v15 = vmax.f32 %v795_v2, %v796_v33  ;;  %v836_v20 = vrot.slane %v835_v14, 2  ;;  %v1697_v48 = vmax.f32 %v809_v58, %v810_v12  ;;  %v824_v59 = vrot.slane %v823_v0, 1 }
  0x68   : > { %v830_v29 = vmax.f32 %v828_v35, %v829_v28  ;;  %v841_v54 = vrot.slane %v840_v37, 4  ;;  %v2009_v5 = vcombine.high %v1480_v39, %v1480_v39  ;;  %v1703_v26 = vmax.f32 %v816_v36, %v817_v4 }
  0x69   : > { %v837_v9 = vmax.f32 %v835_v14, %v836_v20  ;;  %v1705_v11 = vmax.f32 %v823_v0, %v824_v59  ;;  %v854_v47 = vsel %vm671_vm0, %v1487_v41, -inf  ;;  %v2012_v14 = vcombine.high %v1487_v41, %v1487_v41 }
  0x6a   : > { %v847_v63 = vsel %vm671_vm0, %v2009_v5, -inf  ;;  %2010 = vst [vmem:[#allocation6_spill] sm:$0xff] %v1703_v26  ;;  %v831_v12 = vrot.slane %v830_v29, 1  ;;  %v842_v10 = vmax.f32 %v840_v37, %v841_v54  ;;  %v855_v22 = vrot.slane %v854_v47, 4 }
  0x6b   : > { %2011 = vst [vmem:[#allocation7_spill] sm:$0xff] %v1705_v11  ;;  %v848_v8 = vrot.slane %v847_v63, 4  ;;  %v838_v2 = vrot.slane %v837_v9, 1  ;;  %v861_v39 = vsel %vm671_vm0, %v2012_v14, -inf  ;;  %v868_v58 = vsel %vm671_vm0, %v1494_v45, -inf }
  0x6c   : > { %v2013_v0 = vcombine.high %v1494_v45, %v1494_v45  ;;  %v1719_v40 = vmax.f32 %v830_v29, %v831_v12  ;;  %v843_v35 = vrot.slane %v842_v10, 2  ;;  %v856_v25 = vmax.f32 %v854_v47, %v855_v22 }
  0x6d   : > { %v849_v49 = vmax.f32 %v847_v63, %v848_v8  ;;  %v1721_v33 = vmax.f32 %v837_v9, %v838_v2  ;;  %v862_v28 = vrot.slane %v861_v39, 4  ;;  %v869_v20 = vrot.slane %v868_v58, 4 }
  0x6e   : > { %v875_v44 = vsel %vm671_vm0, %v2013_v0, -inf  ;;  %2014 = vst [vmem:[#allocation8_spill] sm:$0xff] %v1719_v40  ;;  %v844_v37 = vmax.f32 %v842_v10, %v843_v35  ;;  %v857_v4 = vrot.slane %v856_v25, 2  ;;  %v882_v59 = vsel %vm671_vm0, %v1499_v50, -inf }
  0x6f   : > { %2015 = vst [vmem:[#allocation9_spill] sm:$0xff] %v1721_v33  ;;  %v850_v36 = vrot.slane %v849_v49, 2  ;;  %v876_v41 = vrot.slane %v875_v44, 4  ;;  %v2016_v45 = vcombine.high %v1499_v50, %v1499_v50  ;;  %v863_v5 = vmax.f32 %v861_v39, %v862_v28 }
  0x70   : > { %v870_v9 = vmax.f32 %v868_v58, %v869_v20  ;;  %v845_v8 = vrot.slane %v844_v37, 1  ;;  %v858_v47 = vmax.f32 %v856_v25, %v857_v4  ;;  %v883_v12 = vrot.slane %v882_v59, 4 }
  0x71   : > { %v889_v54 = vsel %vm671_vm0, %v2016_v45, -inf  ;;  %v851_v29 = vmax.f32 %v849_v49, %v850_v36  ;;  %v877_v63 = vmax.f32 %v875_v44, %v876_v41  ;;  %v864_v14 = vrot.slane %v863_v5, 2 }
  0x72   : > { %v890_v2 = vrot.slane %v889_v54, 4  ;;  %v871_v10 = vrot.slane %v870_v9, 2  ;;  %v1729_v35 = vmax.f32 %v844_v37, %v845_v8  ;;  %v859_v33 = vrot.slane %v858_v47, 1 }
  0x73   : > { %v852_v22 = vrot.slane %v851_v29, 1  ;;  %v878_v0 = vrot.slane %v877_v63, 2  ;;  %v884_v40 = vmax.f32 %v882_v59, %v883_v12  ;;  %v865_v45 = vmax.f32 %v863_v5, %v864_v14 }
  0x74   : > { %v891_v11 = vmax.f32 %v889_v54, %v890_v2  ;;  %v872_v49 = vmax.f32 %v870_v9, %v871_v10  ;;  %v1733_v58 = vmax.f32 %v858_v47, %v859_v33  ;;  %v896_v36 = vsel %vm671_vm0, %v1502_v51, -inf }
  0x75   : > { %v1731_v50 = vmax.f32 %v851_v29, %v852_v22  ;;  %v879_v39 = vmax.f32 %v877_v63, %v878_v0  ;;  %v885_v44 = vrot.slane %v884_v40, 2  ;;  %v866_v28 = vrot.slane %v865_v45, 1 }
  0x76   : > { %v892_v25 = vrot.slane %v891_v11, 2  ;;  %v873_v20 = vrot.slane %v872_v49, 1  ;;  %v897_v37 = vrot.slane %v896_v36, 4  ;;  %v2017_v59 = vcombine.high %v1502_v51, %v1502_v51 }
  0x77   : > { %v880_v41 = vrot.slane %v879_v39, 1  ;;  %v886_v4 = vmax.f32 %v884_v40, %v885_v44  ;;  %v910_v33 = vsel %vm671_vm0, %v1507_v56, -inf  ;;  %v1743_v29 = vmax.f32 %v865_v45, %v866_v28 }
  0x78   : > { %v893_v8 = vmax.f32 %v891_v11, %v892_v25  ;;  %v903_v54 = vsel %vm671_vm0, %v2017_v59, -inf  ;;  %v1745_v5 = vmax.f32 %v872_v49, %v873_v20  ;;  %v898_v63 = vmax.f32 %v896_v36, %v897_v37 }
  0x79   : > { %v1747_v9 = vmax.f32 %v879_v39, %v880_v41  ;;  %v887_v47 = vrot.slane %v886_v4, 1  ;;  %v904_v2 = vrot.slane %v903_v54, 4  ;;  %v911_v40 = vrot.slane %v910_v33, 4 }
  0x7a   : > { %2018 = vst [vmem:[#allocation10_spill] sm:$0xff] %v1745_v5  ;;  %v894_v12 = vrot.slane %v893_v8, 1  ;;  %v899_v11 = vrot.slane %v898_v63, 2  ;;  %v2020_v51 = vcombine.high %v1507_v56, %v1507_v56  ;;  %v924_v14 = vsel %vm671_vm0, %v1510_v60, -inf }
  0x7b   : > { %2019 = vst [vmem:[#allocation11_spill] sm:$0xff] %v1747_v9  ;;  %v2021_v10 = vcombine.high %v1510_v60, %v1510_v60  ;;  %v1759_v45 = vmax.f32 %v886_v4, %v887_v47  ;;  %v905_v39 = vmax.f32 %v903_v54, %v904_v2  ;;  %v912_v44 = vmax.f32 %v910_v33, %v911_v40 }
  0x7c   : > { %v917_v22 = vsel %vm671_vm0, %v2020_v51, -inf  ;;  %v1761_v49 = vmax.f32 %v893_v8, %v894_v12  ;;  %v900_v25 = vmax.f32 %v898_v63, %v899_v11  ;;  %v925_v28 = vrot.slane %v924_v14, 4 }
  0x7d   : > { %v931_v0 = vsel %vm671_vm0, %v2021_v10, -inf  ;;  %2022 = vst [vmem:[#allocation12_spill] sm:$0xff] %v1759_v45  ;;  %v918_v36 = vrot.slane %v917_v22, 4  ;;  %v906_v20 = vrot.slane %v905_v39, 2  ;;  %v913_v41 = vrot.slane %v912_v44, 2 }
  0x7e   : > { %2023 = vst [vmem:[#allocation13_spill] sm:$0xff] %v1761_v49  ;;  %v932_v56 = vrot.slane %v931_v0, 4  ;;  %v938_v37 = vsel %vm671_vm0, %v1517_v1, -inf  ;;  %v2024_v60 = vcombine.high %v1517_v1, %v1517_v1  ;;  %v901_v4 = vrot.slane %v900_v25, 1 }
  0x7f   : > { %v919_v47 = vmax.f32 %v917_v22, %v918_v36  ;;  %v926_v8 = vmax.f32 %v924_v14, %v925_v28  ;;  %v907_v54 = vmax.f32 %v905_v39, %v906_v20  ;;  %v914_v33 = vmax.f32 %v912_v44, %v913_v41 }
  0x80   : > { %v945_v59 = vsel %vm671_vm0, %v2024_v60, -inf  ;;  %v933_v12 = vmax.f32 %v931_v0, %v932_v56  ;;  %v939_v63 = vrot.slane %v938_v37, 4  ;;  %v1769_v40 = vmax.f32 %v900_v25, %v901_v4 }
  0x81   : > { %v946_v2 = vrot.slane %v945_v59, 4  ;;  %v920_v11 = vrot.slane %v919_v47, 2  ;;  %v927_v51 = vrot.slane %v926_v8, 2  ;;  %v908_v49 = vrot.slane %v907_v54, 1 }
  0x82   : > { %v934_v10 = vrot.slane %v933_v12, 2  ;;  %v915_v45 = vrot.slane %v914_v33, 1  ;;  %v940_v9 = vmax.f32 %v938_v37, %v939_v63  ;;  %v952_v22 = vsel %vm671_vm0, %v1520_v3, -inf }
  0x83   : > { %v947_v26 = vmax.f32 %v945_v59, %v946_v2  ;;  %v921_v1 = vmax.f32 %v919_v47, %v920_v11  ;;  %v928_v5 = vmax.f32 %v926_v8, %v927_v51  ;;  %v1773_v14 = vmax.f32 %v907_v54, %v908_v49 }
  0x84   : > { %v935_v60 = vmax.f32 %v933_v12, %v934_v10  ;;  %v1775_v0 = vmax.f32 %v914_v33, %v915_v45  ;;  %v941_v39 = vrot.slane %v940_v9, 2  ;;  %v953_v56 = vrot.slane %v952_v22, 4 }
  0x85   : > { %v948_v44 = vrot.slane %v947_v26, 2  ;;  %v922_v25 = vrot.slane %v921_v1, 1  ;;  %v929_v36 = vrot.slane %v928_v5, 1  ;;  %v2025_v37 = vcombine.high %v1520_v3, %v1520_v3 }
  0x86   : > { %v936_v28 = vrot.slane %v935_v60, 1  ;;  %v942_v20 = vmax.f32 %v940_v9, %v941_v39  ;;  %v966_v4 = vsel %vm671_vm0, %v1527_v6, -inf  ;;  %v954_v8 = vmax.f32 %v952_v22, %v953_v56 }
  0x87   : > { %v949_v41 = vmax.f32 %v947_v26, %v948_v44  ;;  %v959_v59 = vsel %vm671_vm0, %v2025_v37, -inf  ;;  %v1783_v49 = vmax.f32 %v921_v1, %v922_v25  ;;  %v1785_v45 = vmax.f32 %v928_v5, %v929_v36 }
  0x88   : > { %v1787_v47 = vmax.f32 %v935_v60, %v936_v28  ;;  %v943_v12 = vrot.slane %v942_v20, 1  ;;  %v960_v33 = vrot.slane %v959_v59, 4  ;;  %v967_v9 = vrot.slane %v966_v4, 4 }
  0x89   : > { %2026 = vst [vmem:[#allocation14_spill] sm:$0xff] %v1785_v45  ;;  %v950_v54 = vrot.slane %v949_v41, 1  ;;  %v955_v26 = vrot.slane %v954_v8, 2  ;;  %v2028_v3 = vcombine.high %v1527_v6, %v1527_v6  ;;  %v980_v2 = vsel %vm671_vm0, %v1534_v13, -inf }
  0x8a   : > { %2027 = vst [vmem:[#allocation15_spill] sm:$0xff] %v1787_v47  ;;  %v2029_v5 = vcombine.high %v1534_v13, %v1534_v13  ;;  %v1799_v51 = vmax.f32 %v942_v20, %v943_v12  ;;  %v961_v1 = vmax.f32 %v959_v59, %v960_v33  ;;  %v968_v60 = vmax.f32 %v966_v4, %v967_v9 }
  0x8b   : > { %v973_v63 = vsel %vm671_vm0, %v2028_v3, -inf  ;;  %v1801_v10 = vmax.f32 %v949_v41, %v950_v54  ;;  %v956_v22 = vmax.f32 %v954_v8, %v955_v26  ;;  %v981_v44 = vrot.slane %v980_v2, 4 }
  0x8c   : > { %v987_v11 = vsel %vm671_vm0, %v2029_v5, -inf  ;;  %2030 = vst [vmem:[#allocation16_spill] sm:$0xff] %v1799_v51  ;;  %v974_v39 = vrot.slane %v973_v63, 4  ;;  %v962_v25 = vrot.slane %v961_v1, 2  ;;  %v969_v36 = vrot.slane %v968_v60, 2 }
  0x8d   : > { %2031 = vst [vmem:[#allocation17_spill] sm:$0xff] %v1801_v10  ;;  %v988_v6 = vrot.slane %v987_v11, 4  ;;  %v994_v28 = vsel %vm671_vm0, %v1539_v19, -inf  ;;  %v2032_v13 = vcombine.high %v1539_v19, %v1539_v19  ;;  %v957_v20 = vrot.slane %v956_v22, 1 }
  0x8e   : > { %v975_v37 = vmax.f32 %v973_v63, %v974_v39  ;;  %v982_v41 = vmax.f32 %v980_v2, %v981_v44  ;;  %v963_v59 = vmax.f32 %v961_v1, %v962_v25  ;;  %v970_v4 = vmax.f32 %v968_v60, %v969_v36 }
  0x8f   : > { %v1001_v56 = vsel %vm671_vm0, %v2032_v13, -inf  ;;  %v989_v12 = vmax.f32 %v987_v11, %v988_v6  ;;  %v995_v8 = vrot.slane %v994_v28, 4  ;;  %v1809_v33 = vmax.f32 %v956_v22, %v957_v20 }
  0x90   : > { %v1002_v54 = vrot.slane %v1001_v56, 4  ;;  %v976_v9 = vrot.slane %v975_v37, 2  ;;  %v983_v26 = vrot.slane %v982_v41, 2  ;;  %v964_v5 = vrot.slane %v963_v59, 1 }
  0x91   : > { %v990_v3 = vrot.slane %v989_v12, 2  ;;  %v971_v10 = vrot.slane %v970_v4, 1  ;;  %v996_v51 = vmax.f32 %v994_v28, %v995_v8  ;;  %v1008_v63 = vsel %vm671_vm0, %v1542_v23, -inf }
  0x92   : > { %v1003_v47 = vmax.f32 %v1001_v56, %v1002_v54  ;;  %v977_v19 = vmax.f32 %v975_v37, %v976_v9  ;;  %v984_v45 = vmax.f32 %v982_v41, %v983_v26  ;;  %v1813_v2 = vmax.f32 %v963_v59, %v964_v5 }
  0x93   : > { %v991_v13 = vmax.f32 %v989_v12, %v990_v3  ;;  %v1815_v11 = vmax.f32 %v970_v4, %v971_v10  ;;  %v997_v1 = vrot.slane %v996_v51, 2  ;;  %v1009_v6 = vrot.slane %v1008_v63, 4 }
  0x94   : > { %v1004_v60 = vrot.slane %v1003_v47, 2  ;;  %v978_v22 = vrot.slane %v977_v19, 1  ;;  %v985_v39 = vrot.slane %v984_v45, 1  ;;  %v2033_v28 = vcombine.high %v1542_v23, %v1542_v23 }
  0x95   : > { %v992_v44 = vrot.slane %v991_v13, 1  ;;  %v998_v25 = vmax.f32 %v996_v51, %v997_v1  ;;  %v1022_v20 = vsel %vm671_vm0, %v1547_v30, -inf  ;;  %v1010_v12 = vmax.f32 %v1008_v63, %v1009_v6 }
  0x96   : > { %v1005_v36 = vmax.f32 %v1003_v47, %v1004_v60  ;;  %v1015_v56 = vsel %vm671_vm0, %v2033_v28, -inf  ;;  %v1823_v37 = vmax.f32 %v977_v19, %v978_v22  ;;  %v1825_v10 = vmax.f32 %v984_v45, %v985_v39 }
  0x97   : > { %v1827_v41 = vmax.f32 %v991_v13, %v992_v44  ;;  %v999_v59 = vrot.slane %v998_v25, 1  ;;  %v1016_v8 = vrot.slane %v1015_v56, 4  ;;  %v1023_v51 = vrot.slane %v1022_v20, 4 }
  0x98   : > { %2034 = vst [vmem:[#allocation18_spill] sm:$0xff] %v1825_v10  ;;  %v1006_v4 = vrot.slane %v1005_v36, 1  ;;  %v1011_v47 = vrot.slane %v1010_v12, 2  ;;  %v2036_v23 = vcombine.high %v1547_v30, %v1547_v30  ;;  %v1036_v9 = vsel %vm671_vm0, %v1550_v16, -inf }
  0x99   : > { %2035 = vst [vmem:[#allocation19_spill] sm:$0xff] %v1827_v41  ;;  %v2037_v45 = vcombine.high %v1550_v16, %v1550_v16  ;;  %v1839_v3 = vmax.f32 %v998_v25, %v999_v59  ;;  %v1017_v19 = vmax.f32 %v1015_v56, %v1016_v8  ;;  %v1024_v13 = vmax.f32 %v1022_v20, %v1023_v51 }
  0x9a   : > { %v1029_v54 = vsel %vm671_vm0, %v2036_v23, -inf  ;;  %v1841_v5 = vmax.f32 %v1005_v36, %v1006_v4  ;;  %v1012_v63 = vmax.f32 %v1010_v12, %v1011_v47  ;;  %v1037_v60 = vrot.slane %v1036_v9, 4 }
  0x9b   : > { %v1043_v26 = vsel %vm671_vm0, %v2037_v45, -inf  ;;  %2038 = vst [vmem:[#allocation20_spill] sm:$0xff] %v1839_v3  ;;  %v1030_v1 = vrot.slane %v1029_v54, 4  ;;  %v1018_v22 = vrot.slane %v1017_v19, 2  ;;  %v1025_v39 = vrot.slane %v1024_v13, 2 }
  0x9c   : > { %2039 = vst [vmem:[#allocation21_spill] sm:$0xff] %v1841_v5  ;;  %v1044_v30 = vrot.slane %v1043_v26, 4  ;;  %v1050_v44 = vsel %vm671_vm0, %v1557_v17, -inf  ;;  %v2040_v16 = vcombine.high %v1557_v17, %v1557_v17  ;;  %v1013_v25 = vrot.slane %v1012_v63, 1 }
  0x9d   : > { %v1031_v28 = vmax.f32 %v1029_v54, %v1030_v1  ;;  %v1038_v36 = vmax.f32 %v1036_v9, %v1037_v60  ;;  %v1019_v56 = vmax.f32 %v1017_v19, %v1018_v22  ;;  %v1026_v20 = vmax.f32 %v1024_v13, %v1025_v39 }
  0x9e   : > { %v1057_v6 = vsel %vm671_vm0, %v2040_v16, -inf  ;;  %v1045_v59 = vmax.f32 %v1043_v26, %v1044_v30  ;;  %v1051_v12 = vrot.slane %v1050_v44, 4  ;;  %v1849_v8 = vmax.f32 %v1012_v63, %v1013_v25 }
  0x9f   : > { %v1058_v4 = vrot.slane %v1057_v6, 4  ;;  %v1032_v51 = vrot.slane %v1031_v28, 2  ;;  %v1039_v47 = vrot.slane %v1038_v36, 2  ;;  %v1020_v45 = vrot.slane %v1019_v56, 1 }
  0xa0   : > { %v1046_v23 = vrot.slane %v1045_v59, 2  ;;  %v1027_v5 = vrot.slane %v1026_v20, 1  ;;  %v1052_v3 = vmax.f32 %v1050_v44, %v1051_v12  ;;  %v1064_v54 = vsel %vm671_vm0, %v1560_v46, -inf }
  0xa1   : > { %v1059_v41 = vmax.f32 %v1057_v6, %v1058_v4  ;;  %v1033_v17 = vmax.f32 %v1031_v28, %v1032_v51  ;;  %v1040_v10 = vmax.f32 %v1038_v36, %v1039_v47  ;;  %v1853_v9 = vmax.f32 %v1019_v56, %v1020_v45 }
  0xa2   : > { %v1047_v16 = vmax.f32 %v1045_v59, %v1046_v23  ;;  %v1855_v26 = vmax.f32 %v1026_v20, %v1027_v5  ;;  %v1053_v19 = vrot.slane %v1052_v3, 2  ;;  %v1065_v30 = vrot.slane %v1064_v54, 4 }
  0xa3   : > { %v1060_v13 = vrot.slane %v1059_v41, 2  ;;  %v1034_v63 = vrot.slane %v1033_v17, 1  ;;  %v1041_v1 = vrot.slane %v1040_v10, 1  ;;  %v2041_v44 = vcombine.high %v1560_v46, %v1560_v46 }
  0xa4   : > { %v1048_v60 = vrot.slane %v1047_v16, 1  ;;  %v1054_v22 = vmax.f32 %v1052_v3, %v1053_v19  ;;  %v1078_v25 = vsel %vm671_vm0, %v1567_v61, -inf  ;;  %v1066_v59 = vmax.f32 %v1064_v54, %v1065_v30 }
  0xa5   : > { %v1061_v39 = vmax.f32 %v1059_v41, %v1060_v13  ;;  %v1071_v6 = vsel %vm671_vm0, %v2041_v44, -inf  ;;  %v1863_v28 = vmax.f32 %v1033_v17, %v1034_v63  ;;  %v1865_v5 = vmax.f32 %v1040_v10, %v1041_v1 }
  0xa6   : > { %v1867_v36 = vmax.f32 %v1047_v16, %v1048_v60  ;;  %v1055_v56 = vrot.slane %v1054_v22, 1  ;;  %v1072_v12 = vrot.slane %v1071_v6, 4  ;;  %v1079_v3 = vrot.slane %v1078_v25, 4 }
  0xa7   : > { %2042 = vst [vmem:[#allocation22_spill] sm:$0xff] %v1865_v5  ;;  %v1062_v20 = vrot.slane %v1061_v39, 1  ;;  %v1067_v41 = vrot.slane %v1066_v59, 2  ;;  %v2044_v46 = vcombine.high %v1567_v61, %v1567_v61  ;;  %v1092_v51 = vsel %vm671_vm0, %v1574_v43, -inf }
  0xa8   : > { %2043 = vst [vmem:[#allocation23_spill] sm:$0xff] %v1867_v36  ;;  %v2045_v10 = vcombine.high %v1574_v43, %v1574_v43  ;;  %v1879_v23 = vmax.f32 %v1054_v22, %v1055_v56  ;;  %v1073_v17 = vmax.f32 %v1071_v6, %v1072_v12  ;;  %v1080_v16 = vmax.f32 %v1078_v25, %v1079_v3 }
  0xa9   : > { %v1085_v4 = vsel %vm671_vm0, %v2044_v46, -inf  ;;  %v1881_v45 = vmax.f32 %v1061_v39, %v1062_v20  ;;  %v1068_v54 = vmax.f32 %v1066_v59, %v1067_v41  ;;  %v1093_v13 = vrot.slane %v1092_v51, 4 }
  0xaa   : > { %v1099_v47 = vsel %vm671_vm0, %v2045_v10, -inf  ;;  %2046 = vst [vmem:[#allocation24_spill] sm:$0xff] %v1879_v23  ;;  %v1086_v19 = vrot.slane %v1085_v4, 4  ;;  %v1074_v63 = vrot.slane %v1073_v17, 2  ;;  %v1081_v1 = vrot.slane %v1080_v16, 2 }
  0xab   : > { %2047 = vst [vmem:[#allocation25_spill] sm:$0xff] %v1881_v45  ;;  %v1100_v61 = vrot.slane %v1099_v47, 4  ;;  %v1106_v60 = vsel %vm671_vm0, %v1581_v31, -inf  ;;  %v2048_v43 = vcombine.high %v1581_v31, %v1581_v31  ;;  %v1069_v22 = vrot.slane %v1068_v54, 1 }
  0xac   : > { %v1087_v44 = vmax.f32 %v1085_v4, %v1086_v19  ;;  %v1094_v39 = vmax.f32 %v1092_v51, %v1093_v13  ;;  %v1075_v6 = vmax.f32 %v1073_v17, %v1074_v63  ;;  %v1082_v25 = vmax.f32 %v1080_v16, %v1081_v1 }
  0xad   : > { %v1113_v30 = vsel %vm671_vm0, %v2048_v43, -inf  ;;  %v1101_v56 = vmax.f32 %v1099_v47, %v1100_v61  ;;  %v1107_v59 = vrot.slane %v1106_v60, 4  ;;  %v1889_v12 = vmax.f32 %v1068_v54, %v1069_v22 }
  0xae   : > { %v1114_v20 = vrot.slane %v1113_v30, 4  ;;  %v1088_v3 = vrot.slane %v1087_v44, 2  ;;  %v1095_v41 = vrot.slane %v1094_v39, 2  ;;  %v1076_v10 = vrot.slane %v1075_v6, 1 }
  0xaf   : > { %v1102_v46 = vrot.slane %v1101_v56, 2  ;;  %v1083_v45 = vrot.slane %v1082_v25, 1  ;;  %v1108_v23 = vmax.f32 %v1106_v60, %v1107_v59  ;;  %v1120_v4 = vmax.f32 %v1609_v38, %v1649_v55  ;;  %v2055_v59 = vld [vmem:[#allocation11_spill] sm:$0xff] }
  0xb0   : > { %v1115_v31 = vmax.f32 %v1113_v30, %v1114_v20  ;;  %v1089_v36 = vmax.f32 %v1087_v44, %v1088_v3  ;;  %v1096_v43 = vmax.f32 %v1094_v39, %v1095_v41  ;;  %v1893_v51 = vmax.f32 %v1075_v6, %v1076_v10  ;;  %v2049_v44 = vld [vmem:[#allocation4_spill] sm:$0xff]  ;;  %v2050_v39 = vld [vmem:[#allocation2_spill] sm:$0xff]  ;;  %v2056_v20 = vld [vmem:[#allocation7_spill] sm:$0xff] }
  0xb1   : > { %v1103_v5 = vmax.f32 %v1101_v56, %v1102_v46  ;;  %v1895_v47 = vmax.f32 %v1082_v25, %v1083_v45  ;;  %v1109_v17 = vrot.slane %v1108_v23, 2  ;;  %v1121_v61 = vmax.f32 %v1611_v7, %v1653_v42  ;;  %v2054_v6 = vld [vmem:[#allocation6_spill] sm:$0xff]  ;;  %v2057_v41 = vld [vmem:[#allocation12_spill] sm:$0xff]  ;;  %v2060_v10 = vld [vmem:[#allocation9_spill] sm:$0xff] }
  0xb2   : > { %v1116_v16 = vrot.slane %v1115_v31, 2  ;;  %v1090_v54 = vrot.slane %v1089_v36, 1  ;;  %v1097_v19 = vrot.slane %v1096_v43, 1  ;;  %v1122_v38 = vmax.f32 %v1613_v57, %v1655_v21  ;;  %v2051_v57 = vld [vmem:[#allocation5_spill] sm:$0xff]  ;;  %v2052_v21 = vld [vmem:[#allocation3_spill] sm:$0xff]  ;;  %v2058_v46 = vld [vmem:[#allocation8_spill] sm:$0xff] }
  0xb3   : > { %v1104_v13 = vrot.slane %v1103_v5, 1  ;;  %v1110_v63 = vmax.f32 %v1108_v23, %v1109_v17  ;;  %v1123_v55 = vmax.f32 %v1615_v52, %v1657_v24  ;;  %v1124_v7 = vmax.f32 %v1619_v34, %v1659_v53  ;;  %v2063_v17 = vld [vmem:[#allocation19_spill] sm:$0xff] }
  0xb4   : > { %v1117_v1 = vmax.f32 %v1115_v31, %v1116_v16  ;;  %v1091_v45 = vmax.f32 %v1089_v36, %v1090_v54  ;;  %v1907_v60 = vmax.f32 %v1096_v43, %v1097_v19  ;;  %v1125_v23 = vmax.f32 %v1631_v62, %v1661_v18  ;;  %v2053_v36 = vld [vmem:[#allocation10_spill] sm:$0xff]  ;;  %v2064_v16 = vld [vmem:[#allocation15_spill] sm:$0xff]  ;;  %v2065_v19 = vld [vmem:[#allocation20_spill] sm:$0xff] }
  0xb5   : > { %v1909_v30 = vmax.f32 %v1103_v5, %v1104_v13  ;;  %v1111_v42 = vrot.slane %v1110_v63, 1  ;;  %v1126_v56 = vmax.f32 %v2050_v39, %v2049_v44  ;;  %v1127_v52 = vmax.f32 %v2052_v21, %v2051_v57  ;;  %v2062_v31 = vld [vmem:[#allocation14_spill] sm:$0xff]  ;;  %v2071_v44 = vld [vmem:[#allocation24_spill] sm:$0xff]  ;;  %v2072_v57 = vld [vmem:[#allocation25_spill] sm:$0xff] }
  0xb6   : > { %v1118_v22 = vrot.slane %v1117_v1, 1  ;;  %v1128_v24 = vmax.f32 %v1689_v32, %v1729_v35  ;;  %v1129_v34 = vmax.f32 %v1691_v15, %v1731_v50  ;;  %v1130_v53 = vmax.f32 %v1695_v27, %v1733_v58  ;;  %v2059_v35 = vld [vmem:[#allocation13_spill] sm:$0xff] }
  0xb7   : > { %v1112_v5 = vmax.f32 %v1110_v63, %v1111_v42  ;;  %v1131_v18 = vmax.f32 %v1697_v48, %v1743_v29  ;;  %v1132_v25 = vmax.f32 %v2054_v6, %v2053_v36  ;;  %v1133_v3 = vmax.f32 %v2056_v20, %v2055_v59  ;;  %v2061_v29 = vld [vmem:[#allocation18_spill] sm:$0xff]  ;;  %v2070_v42 = vld [vmem:[#allocation23_spill] sm:$0xff] }
  0xb8   : > { %v1119_v62 = vmax.f32 %v1117_v1, %v1118_v22  ;;  %v1134_v32 = vmax.f32 %v2058_v46, %v2057_v41  ;;  %v1135_v15 = vmax.f32 %v2060_v10, %v2059_v35  ;;  %v1136_v27 = vmax.f32 %v1769_v40, %v1809_v33  ;;  %v2066_v40 = vld [vmem:[#allocation16_spill] sm:$0xff]  ;;  %v2069_v63 = vld [vmem:[#allocation22_spill] sm:$0xff] }
  0xb9   : > { %v1137_v50 = vmax.f32 %v1773_v14, %v1813_v2  ;;  %v1138_v48 = vmax.f32 %v1775_v0, %v1815_v11  ;;  %v1139_v58 = vmax.f32 %v1783_v49, %v1823_v37  ;;  %v1140_v43 = vmax.f32 %v2062_v31, %v2061_v29  ;;  %v2067_v14 = vld [vmem:[#allocation21_spill] sm:$0xff] }
  0xba   : > { %v1141_v54 = vmax.f32 %v2064_v16, %v2063_v17  ;;  %v1142_v33 = vmax.f32 %v2066_v40, %v2065_v19  ;;  %v2068_v2 = vld [vmem:[#allocation17_spill] sm:$0xff]  ;;  %v1144_v0 = vmax.f32 %v1849_v8, %v1889_v12  ;;  %v1145_v49 = vmax.f32 %v1853_v9, %v1893_v51 }
  0xbb   : > { %v1143_v13 = vmax.f32 %v2068_v2, %v2067_v14  ;;  %v1146_v11 = vmax.f32 %v1855_v26, %v1895_v47  ;;  %v1147_v37 = vmax.f32 %v1863_v28, %v1091_v45  ;;  %v1148_v1 = vmax.f32 %v2069_v63, %v1907_v60 }
  0xbc   : > { %v1149_v22 = vmax.f32 %v2070_v42, %v1909_v30  ;;  %v1150_v39 = vmax.f32 %v2071_v44, %v1112_v5  ;;  %v1151_v21 = vmax.f32 %v2072_v57, %v1119_v62  ;;  %v1185_v8 = vsel %vm1184_vm1, %v1121_v61, %v1120_v4 }
  0xbd   : > { %v1187_v9 = vsel %vm1186_vm2, %v1122_v38, %v1185_v8  ;;  %v1198_v28 = vsel %vm1184_vm1, %v1129_v34, %v1128_v24  ;;  %v1205_v12 = vsel %vm1184_vm1, %v1137_v50, %v1136_v27  ;;  %v1212_v51 = vsel %vm1184_vm1, %v1145_v49, %v1144_v0 }
  0xbe   : > { %v1189_v26 = vsel %vm1188_vm3, %v1123_v55, %v1187_v9  ;;  %v1199_v45 = vsel %vm1186_vm2, %v1130_v53, %v1198_v28  ;;  %v1206_v60 = vsel %vm1186_vm2, %v1138_v48, %v1205_v12  ;;  %v1213_v30 = vsel %vm1186_vm2, %v1146_v11, %v1212_v51 }
  0xbf   : > { %v1191_v47 = vsel %vm1190_vm4, %v1124_v7, %v1189_v26  ;;  %v1200_v61 = vsel %vm1188_vm3, %v1131_v18, %v1199_v45  ;;  %v1207_v38 = vsel %vm1188_vm3, %v1139_v58, %v1206_v60  ;;  %v1214_v55 = vsel %vm1188_vm3, %v1147_v37, %v1213_v30 }
  0xc0   : > { %v1193_v4 = vsel %vm1192_vm5, %v1125_v23, %v1191_v47  ;;  %v1201_v34 = vsel %vm1190_vm4, %v1132_v25, %v1200_v61  ;;  %v1208_v7 = vsel %vm1190_vm4, %v1140_v43, %v1207_v38  ;;  %v1215_v53 = vsel %vm1190_vm4, %v1148_v1, %v1214_v55 }
  0xc1   : > { %v1195_v24 = vsel %vm1194_vm6, %v1126_v56, %v1193_v4  ;;  %v1202_v62 = vsel %vm1192_vm5, %v1133_v3, %v1201_v34  ;;  %v1209_v23 = vsel %vm1192_vm5, %v1141_v54, %v1208_v7  ;;  %v1216_v18 = vsel %vm1192_vm5, %v1149_v22, %v1215_v53 }
  0xc2   : > { %v1197_v5 = vsel %vm1196_vm7, %v1127_v52, %v1195_v24  ;;  %v1203_v36 = vsel %vm1194_vm6, %v1134_v32, %v1202_v62  ;;  %v1210_v6 = vsel %vm1194_vm6, %v1142_v33, %v1209_v23  ;;  %v1217_v56 = vsel %vm1194_vm6, %v1150_v39, %v1216_v18 }
  0xc3   : > { %1223 = vst [vmem:[%s175_s27] sm:$0xff] %v1197_v5  ;;  %v1204_v25 = vsel %vm1196_vm7, %v1135_v15, %v1203_v36  ;;  %v1211_v59 = vsel %vm1196_vm7, %v1143_v13, %v1210_v6  ;;  %v1218_v20 = vsel %vm1196_vm7, %v1151_v21, %v1217_v56 }
  0xc4   : > { %1224 = vst [vmem:[%s175_s27 + $0x8] sm:$0xff] %v1204_v25  ;;  %1225 = vst [vmem:[%s175_s27 + $0x10] sm:$0xff] %v1211_v59 }
  0xc5   : > { %1226 = vst [vmem:[%s175_s27 + $0x18] sm:$0xff] %v1218_v20 }
  0xc6 PF: > { %s13_s12 = sadd.s32 1, %s1345_s12  }
  0xc7   : > { %p10_p5 = scmp.ge.s32.totalorder %s13_s12, 6  }
  0xc9   :  { %12 = sbr.rel (!%p10_p5) target bundleno = 1 (0x1), region = 62 }

</bundles_post_ra>
